<compile_context>
chip_gen: v7x
topology: tpu7x:2x2x1
jax: 0.10.0
libtpu: 0.0.40
codegen_flags: <defaults>
</compile_context>

<pallas_src>
import functools

import jax
import jax.numpy as jnp
from jax.experimental import pallas as pl
from jax.experimental.pallas import tpu as pltpu


def _round_up(x, m):
    return (x + m - 1) // m * m


def _pick_vmem_limit_bytes():
    # v5e / v6e have 128 MiB physical VMEM; v7x only 64 MiB per TensorCore.
    try:
        kind = jax.devices()[0].device_kind.lower()
    except Exception:
        kind = ""
    if "v5" in kind or "v6" in kind:
        return 100 * 1024 * 1024
    return 48 * 1024 * 1024


# ---------------------------------------------------------------------------
# Fused Pallas kernel: conv3x3+BN+LReLU -> conv3x3+BN+LReLU on one row tile.
# ---------------------------------------------------------------------------

def _unet_block_kernel(x_hbm, m_hbm, w1_ref, s1_ref, t1_ref,
                       w2_ref, s2_ref, t2_ref, o_ref,
                       xwin_ref, mwin_ref, sem, *,
                       Wp, TR, Mtot, neg_slope):
    """One grid step = one image (axis 0) x one row tile (axis 1).

    x_hbm:  (N*Mtot, Cin) f32 in HBM  zero-padded image, rows flattened (HpT*Wp)
    m_hbm:  (Mtot, 1)     f32 in HBM  1.0 on real HxW pixels, 0.0 elsewhere
    w1_ref: (9, Cin, Cpad)  bf16      conv1 weights, tap k = (dy+1)*3 + (dx+1)
    s1/t1:  (1, Cpad)       f32       folded BN1 scale / shift (conv bias folded)
    w2_ref: (9, Cpad, Cpad) bf16      conv2 weights (zero rows/cols on padding)
    s2/t2:  (1, Cpad)       f32       folded BN2 scale / shift
    o_ref:  (1, TR*Wp, Cpad) f32      interior rows of this tile (lane-dense)
    xwin/mwin: VMEM windows of (TR+4)*Wp flattened rows (manual overlapping DMA)
    """
    n = pl.program_id(0)
    t = pl.program_id(1)
    Mw = xwin_ref.shape[0]                       # (TR + 4) * Wp

    # --- fetch this tile's overlapping window (4 padded rows of halo overlap
    # between consecutive tiles, which a Blocked BlockSpec cannot express).
    # TODO(synk): double-buffer / prefetch the next window to hide this DMA.
    base = pl.multiple_of(t * (TR * Wp), 8)
    cx = pltpu.make_async_copy(x_hbm.at[pl.ds(n * Mtot + base, Mw)],
                               xwin_ref, sem.at[0])
    cm = pltpu.make_async_copy(m_hbm.at[pl.ds(base, Mw)], mwin_ref, sem.at[1])
    cx.start()
    cm.start()
    cx.wait()
    cm.wait()

    mask = mwin_ref[...]                         # (Mw, 1)

    def conv3x3(a, w_ref):
        # 3x3 conv as 9 accumulated MXU matmuls over the flattened window.
        # Tap shifts go through the XLU (roll on the sublane axis); the roll
        # wrap-around only corrupts window rows whose results are masked or
        # cropped, so it is harmless.
        acc = None
        k = 0
        for dy in (-1, 0, 1):
            for dx in (-1, 0, 1):
                off = dy * Wp + dx
                tap = a if off == 0 else pltpu.roll(a, (-off) % Mw, axis=0)
                term = jnp.dot(tap.astype(jnp.bfloat16), w_ref[k],
                               preferred_element_type=jnp.float32)
                acc = term if acc is None else acc + term
                k += 1
        return acc

    def bn_lrelu(acc, s, b):
        y = acc * s + b
        return jnp.where(y >= 0.0, y, neg_slope * y)

    # conv1 + BN1 + LeakyReLU; zero the ring so it acts as conv2's zero padding.
    y1 = bn_lrelu(conv3x3(xwin_ref[...], w1_ref), s1_ref[...], t1_ref[...]) * mask
    # TODO(synk): Dropout2d(0.2) would sit here; identity in eval mode.

    # conv2 + BN2 + LeakyReLU; keep only this tile's TR interior rows.
    y2 = bn_lrelu(conv3x3(y1, w2_ref), s2_ref[...], t2_ref[...])
    o_ref[0] = y2[2 * Wp:(TR + 2) * Wp, :].astype(o_ref.dtype)


# ---------------------------------------------------------------------------
# Wrappers
# ---------------------------------------------------------------------------

def unet_block_nhwc(x, params, out_channels, *, neg_slope=0.1, row_tile=None):
    """x: (N, H, W, Cin) -> (N, H, W, out_channels), fused UNetBlock forward."""
    N, H, W, Cin = x.shape
    Cpad = params["w1"].shape[-1]

    Wp = _round_up(W + 2, 8)                    # padded width, sublane friendly
    if row_tile is None:
        row_tile = max(8, (3072 // Wp) // 8 * 8)
    TR = max(1, min(int(row_tile), H))          # output image rows per grid step
    n_tiles = pl.cdiv(H, TR)
    HpT = n_tiles * TR + 4                      # 2-row halo top + bottom fill
    Mtot = HpT * Wp
    Mw = (TR + 4) * Wp                          # flattened rows per window

    # Single zero-pad (rows: 2 halo on top, fill to HpT below; cols: 1 halo
    # left, fill to Wp right) followed by a layout-free reshape to flat rows.
    xp = jnp.pad(x, ((0, 0), (2, HpT - H - 2), (1, Wp - W - 1), (0, 0)))
    xf = xp.reshape(N * Mtot, Cin)

    # Interior mask on the padded grid: 1.0 exactly on the real HxW pixels.
    gr = jnp.arange(HpT, dtype=jnp.int32)
    gc = jnp.arange(Wp, dtype=jnp.int32)
    mask = (((gr >= 2) & (gr <= H + 1))[:, None]
            & ((gc >= 1) & (gc <= W))[None, :]).astype(jnp.float32)
    mask = mask.reshape(Mtot, 1)

    kernel = functools.partial(_unet_block_kernel, Wp=Wp, TR=TR, Mtot=Mtot,
                               neg_slope=neg_slope)

    out = pl.pallas_call(
        kernel,
        out_shape=jax.ShapeDtypeStruct((N, n_tiles * TR * Wp, Cpad), jnp.float32),
        grid=(N, n_tiles),
        in_specs=[
            pl.BlockSpec(memory_space=pl.ANY),               # x (flat, HBM)
            pl.BlockSpec(memory_space=pl.ANY),               # interior mask (HBM)
            pl.BlockSpec(params["w1"].shape, lambda n, t: (0, 0, 0)),
            pl.BlockSpec((1, Cpad), lambda n, t: (0, 0)),
            pl.BlockSpec((1, Cpad), lambda n, t: (0, 0)),
            pl.BlockSpec(params["w2"].shape, lambda n, t: (0, 0, 0)),
            pl.BlockSpec((1, Cpad), lambda n, t: (0, 0)),
            pl.BlockSpec((1, Cpad), lambda n, t: (0, 0)),
        ],
        out_specs=pl.BlockSpec((1, TR * Wp, Cpad), lambda n, t: (n, t, 0)),
        scratch_shapes=[
            pltpu.VMEM((Mw, Cin), jnp.float32),              # input window
            pltpu.VMEM((Mw, 1), jnp.float32),                # mask window
            pltpu.SemaphoreType.DMA((2,)),
        ],
        compiler_params=pltpu.CompilerParams(
            dimension_semantics=("parallel", "parallel"),
            vmem_limit_bytes=_pick_vmem_limit_bytes(),
        ),
    )(xf, mask, params["w1"], params["s1"], params["t1"],
      params["w2"], params["s2"], params["t2"])

    out = out.reshape(N, n_tiles * TR, Wp, Cpad)
    return out[:, :H, 1:W + 1, :out_channels]


def unet_block_forward(params, x_nchw, *, out_channels, neg_slope=0.1,
                       row_tile=None):
    """Matches UNetBlock.forward (NCHW in / NCHW out), eval-mode BN & dropout.

    NOTE: keep the surrounding model NHWC and call unet_block_nhwc directly to
    avoid these two full-tensor layout transposes.
    """
    x = jnp.transpose(x_nchw, (0, 2, 3, 1))
    y = unet_block_nhwc(x, params, out_channels,
                        neg_slope=neg_slope, row_tile=row_tile)
    return jnp.transpose(y, (0, 3, 1, 2))


# ---------------------------------------------------------------------------
# Deterministic parameter init (PyTorch shapes, conv-bias + BN folded, lane-padded)
# ---------------------------------------------------------------------------

def init_unet_block_params(key, in_channels, out_channels, eps=1e-5):
    cpad = _round_up(out_channels, 128)

    def conv_bn(k, ci, ci_pad, co):
        ks = jax.random.split(k, 6)
        w = jax.random.normal(ks[0], (co, ci, 3, 3), jnp.float32) * jnp.sqrt(2.0 / (ci * 9))
        b = jax.random.normal(ks[1], (co,), jnp.float32) * 0.01
        gamma = 1.0 + 0.1 * jax.random.normal(ks[2], (co,), jnp.float32)
        beta = 0.1 * jax.random.normal(ks[3], (co,), jnp.float32)
        mean = 0.1 * jax.random.normal(ks[4], (co,), jnp.float32)
        var = 1.0 + 0.1 * jax.random.uniform(ks[5], (co,), jnp.float32)
        scale = gamma / jnp.sqrt(var + eps)
        shift = (b - mean) * scale + beta
        # (co, ci, 3, 3) -> (9, ci, co) with tap order k = (dy+1)*3 + (dx+1),
        # then zero-pad channels to the lane-padded widths used by the kernel.
        w9 = jnp.transpose(w, (2, 3, 1, 0)).reshape(9, ci, co)
        w9 = jnp.pad(w9, ((0, 0), (0, ci_pad - ci), (0, cpad - co)))
        scale = jnp.pad(scale, (0, cpad - co)).reshape(1, cpad)
        shift = jnp.pad(shift, (0, cpad - co)).reshape(1, cpad)
        return (w9.astype(jnp.bfloat16),
                scale.astype(jnp.float32),
                shift.astype(jnp.float32))

    k1, k2 = jax.random.split(key)
    w1, s1, t1 = conv_bn(k1, in_channels, in_channels, out_channels)
    w2, s2, t2 = conv_bn(k2, out_channels, cpad, out_channels)
    return dict(w1=w1, s1=s1, t1=t1, w2=w2, s2=s2, t2=t2)


# ---------------------------------------------------------------------------
# Pure-JAX reference (same bf16 matmul operands, f32 accumulation)
# ---------------------------------------------------------------------------

def unet_block_reference(params, x_nchw, out_channels, neg_slope=0.1):
    co = out_channels

    def conv_bn_lrelu(x, w9, s, t):
        N, H, W, ci = x.shape
        xp = jnp.pad(x, ((0, 0), (1, 1), (1, 1), (0, 0)))
        taps = [xp[:, dy:dy + H, dx:dx + W, :] for dy in range(3) for dx in range(3)]
        col = jnp.concatenate(taps, axis=-1).astype(jnp.bfloat16)
        wk = w9[:, :ci, :co].reshape(9 * ci, co)
        y = jnp.einsum("nhwk,kc->nhwc", col, wk, preferred_element_type=jnp.float32)
        y = y * s[:, :co].reshape(1, 1, 1, co) + t[:, :co].reshape(1, 1, 1, co)
        return jnp.where(y >= 0.0, y, neg_slope * y)

    x = jnp.transpose(x_nchw, (0, 2, 3, 1))
    y = conv_bn_lrelu(x, params["w1"], params["s1"], params["t1"])
    y = conv_bn_lrelu(y, params["w2"], params["s2"], params["t2"])
    return jnp.transpose(y, (0, 3, 1, 2))


# ---------------------------------------------------------------------------
if __name__ == "__main__":
    key = jax.random.PRNGKey(0)
    pkey, xkey = jax.random.split(key)

    N, C_IN, C_OUT, H, W = 2, 4, 32, 16, 16
    params = init_unet_block_params(pkey, C_IN, C_OUT)
    x = jax.random.uniform(xkey, (N, C_IN, H, W), jnp.float32)

    # row_tile=8 -> two halo'd row tiles per image, so the tile-seam path is
    # exercised by the correctness check below.
    fwd = jax.jit(functools.partial(unet_block_forward,
                                    out_channels=C_OUT, row_tile=8))
    y = fwd(params, x)
    jax.block_until_ready(y)

    assert y.shape == (N, C_OUT, H, W), y.shape
    assert bool(jnp.all(jnp.isfinite(y)))

    # Sanity check against a plain-JAX reference (bf16 operands -> loose tol).
    y_ref = unet_block_reference(params, x, C_OUT)
    err = float(jnp.max(jnp.abs(y - y_ref)))
    assert err < 5e-2, f"max abs error vs reference: {err}"

    print("KERNEL_OK")
</pallas_src>

<mosaic_0001>
module attributes {stable_mosaic.version = 11 : i64} {
  func.func @_unet_block_kernel(%arg0: i32, %arg1: i32, %arg2: memref<960x4xf32, #tpu.memory_space<any>>, %arg3: memref<480x1xf32, #tpu.memory_space<any>>, %arg4: memref<9x4x128xbf16, #tpu.memory_space<vmem>>, %arg5: memref<1x128xf32, #tpu.memory_space<vmem>>, %arg6: memref<1x128xf32, #tpu.memory_space<vmem>>, %arg7: memref<9x128x128xbf16, #tpu.memory_space<vmem>>, %arg8: memref<1x128xf32, #tpu.memory_space<vmem>>, %arg9: memref<1x128xf32, #tpu.memory_space<vmem>>, %arg10: memref<1x192x128xf32, #tpu.memory_space<vmem>>, %arg11: memref<288x4xf32, #tpu.memory_space<vmem>>, %arg12: memref<288x1xf32, #tpu.memory_space<vmem>>, %arg13: memref<2x!tpu.dma_semaphore, #tpu.memory_space<semaphore_mem>>) attributes {dimension_semantics = [#tpu.dimension_semantics<parallel>, #tpu.dimension_semantics<parallel>], iteration_bounds = array<i64: 2, 2>, scalar_prefetch = 0 : i64, scratch_operands = 3 : i64, tpu.core_type = #tpu.core_type<tc>, window_params = [{}, {}, {pipeline_mode = #tpu.pipeline_mode<synchronous>, transform_indices = @transform_2, window_bounds = array<i64: 9, 4, 128>}, {pipeline_mode = #tpu.pipeline_mode<synchronous>, transform_indices = @transform_3, window_bounds = array<i64: 1, 128>}, {pipeline_mode = #tpu.pipeline_mode<synchronous>, transform_indices = @transform_4, window_bounds = array<i64: 1, 128>}, {pipeline_mode = #tpu.pipeline_mode<synchronous>, transform_indices = @transform_5, window_bounds = array<i64: 9, 128, 128>}, {pipeline_mode = #tpu.pipeline_mode<synchronous>, transform_indices = @transform_6, window_bounds = array<i64: 1, 128>}, {pipeline_mode = #tpu.pipeline_mode<synchronous>, transform_indices = @transform_7, window_bounds = array<i64: 1, 128>}, {transform_indices = @transform_8, window_bounds = array<i64: 1, 192, 128>}]} {
    %c192_i32 = arith.constant 192 : i32
    %0 = arith.muli %arg1, %c192_i32 : i32
    %1 = tpu.assume_multiple %0, 8 : i32
    %c480_i32 = arith.constant 480 : i32
    %2 = arith.muli %arg0, %c480_i32 : i32
    %3 = arith.addi %2, %1 : i32
    %c0_i32 = arith.constant 0 : i32
    %c0_i32_0 = arith.constant 0 : i32
    %4 = tpu.memref_slice %arg2[%3, %c0_i32_0] : memref<960x4xf32, #tpu.memory_space<any>> -> memref<288x4xf32, #tpu.memory_space<any>>
    %5 = tpu.memref_slice %arg13[%c0_i32] : memref<2x!tpu.dma_semaphore, #tpu.memory_space<semaphore_mem>> -> memref<1x!tpu.dma_semaphore, #tpu.memory_space<semaphore_mem>>
    %6 = tpu.memref_squeeze %5 : memref<1x!tpu.dma_semaphore, #tpu.memory_space<semaphore_mem>> -> memref<!tpu.dma_semaphore, #tpu.memory_space<semaphore_mem>>
    tpu.enqueue_dma source(%4 : memref<288x4xf32, #tpu.memory_space<any>>) target(%arg11 : memref<288x4xf32, #tpu.memory_space<vmem>>) target_semaphore(%6 : memref<!tpu.dma_semaphore, #tpu.memory_space<semaphore_mem>>)
    %c1_i32 = arith.constant 1 : i32
    %c0_i32_1 = arith.constant 0 : i32
    %7 = tpu.memref_slice %arg3[%1, %c0_i32_1] : memref<480x1xf32, #tpu.memory_space<any>> -> memref<288x1xf32, #tpu.memory_space<any>>
    %8 = tpu.memref_slice %arg13[%c1_i32] : memref<2x!tpu.dma_semaphore, #tpu.memory_space<semaphore_mem>> -> memref<1x!tpu.dma_semaphore, #tpu.memory_space<semaphore_mem>>
    %9 = tpu.memref_squeeze %8 : memref<1x!tpu.dma_semaphore, #tpu.memory_space<semaphore_mem>> -> memref<!tpu.dma_semaphore, #tpu.memory_space<semaphore_mem>>
    tpu.enqueue_dma source(%7 : memref<288x1xf32, #tpu.memory_space<any>>) target(%arg12 : memref<288x1xf32, #tpu.memory_space<vmem>>) target_semaphore(%9 : memref<!tpu.dma_semaphore, #tpu.memory_space<semaphore_mem>>)
    %c0_i32_2 = arith.constant 0 : i32
    %c0_i32_3 = arith.constant 0 : i32
    %10 = tpu.memref_slice %arg2[%3, %c0_i32_3] : memref<960x4xf32, #tpu.memory_space<any>> -> memref<288x4xf32, #tpu.memory_space<any>>
    %11 = tpu.memref_slice %arg13[%c0_i32_2] : memref<2x!tpu.dma_semaphore, #tpu.memory_space<semaphore_mem>> -> memref<1x!tpu.dma_semaphore, #tpu.memory_space<semaphore_mem>>
    %12 = tpu.memref_squeeze %11 : memref<1x!tpu.dma_semaphore, #tpu.memory_space<semaphore_mem>> -> memref<!tpu.dma_semaphore, #tpu.memory_space<semaphore_mem>>
    tpu.wait_dma2 semaphore(%12 : memref<!tpu.dma_semaphore, #tpu.memory_space<semaphore_mem>>) src(%10 : memref<288x4xf32, #tpu.memory_space<any>>) dst(%arg11 : memref<288x4xf32, #tpu.memory_space<vmem>>)
    %c1_i32_4 = arith.constant 1 : i32
    %c0_i32_5 = arith.constant 0 : i32
    %13 = tpu.memref_slice %arg3[%1, %c0_i32_5] : memref<480x1xf32, #tpu.memory_space<any>> -> memref<288x1xf32, #tpu.memory_space<any>>
    %14 = tpu.memref_slice %arg13[%c1_i32_4] : memref<2x!tpu.dma_semaphore, #tpu.memory_space<semaphore_mem>> -> memref<1x!tpu.dma_semaphore, #tpu.memory_space<semaphore_mem>>
    %15 = tpu.memref_squeeze %14 : memref<1x!tpu.dma_semaphore, #tpu.memory_space<semaphore_mem>> -> memref<!tpu.dma_semaphore, #tpu.memory_space<semaphore_mem>>
    tpu.wait_dma2 semaphore(%15 : memref<!tpu.dma_semaphore, #tpu.memory_space<semaphore_mem>>) src(%13 : memref<288x1xf32, #tpu.memory_space<any>>) dst(%arg12 : memref<288x1xf32, #tpu.memory_space<vmem>>)
    %c0 = arith.constant 0 : index
    %c0_6 = arith.constant 0 : index
    %16 = vector.load %arg12[%c0, %c0_6] : memref<288x1xf32, #tpu.memory_space<vmem>>, vector<288x1xf32>
    %c0_7 = arith.constant 0 : index
    %c0_8 = arith.constant 0 : index
    %17 = vector.load %arg11[%c0_7, %c0_8] : memref<288x4xf32, #tpu.memory_space<vmem>>, vector<288x4xf32>
    %c25_i32 = arith.constant 25 : i32
    %18 = tpu.dynamic_rotate %17 by %c25_i32 dim 0 : vector<288x4xf32>, i32 -> vector<288x4xf32>
    %19 = arith.truncf %18 : vector<288x4xf32> to vector<288x4xbf16>
    %c0_9 = arith.constant 0 : index
    %c0_10 = arith.constant 0 : index
    %c0_11 = arith.constant 0 : index
    %20 = vector.load %arg4[%c0_9, %c0_10, %c0_11] : memref<9x4x128xbf16, #tpu.memory_space<vmem>>, vector<1x4x128xbf16>
    %21 = vector.shape_cast %20 : vector<1x4x128xbf16> to vector<4x128xbf16>
    %cst = arith.constant dense<0.000000e+00> : vector<288x128xf32>
    %22 = tpu.matmul %19, %21, %cst {dimension_numbers = #tpu.dot_dimension_numbers<[1], [0], [0], [1], [0, 0, 1, 1], [], []>} : vector<288x4xbf16>, vector<4x128xbf16>, vector<288x128xf32> -> vector<288x128xf32>
    %c24_i32 = arith.constant 24 : i32
    %23 = tpu.dynamic_rotate %17 by %c24_i32 dim 0 : vector<288x4xf32>, i32 -> vector<288x4xf32>
    %24 = arith.truncf %23 : vector<288x4xf32> to vector<288x4xbf16>
    %c1 = arith.constant 1 : index
    %c0_12 = arith.constant 0 : index
    %c0_13 = arith.constant 0 : index
    %25 = vector.load %arg4[%c1, %c0_12, %c0_13] : memref<9x4x128xbf16, #tpu.memory_space<vmem>>, vector<1x4x128xbf16>
    %26 = vector.shape_cast %25 : vector<1x4x128xbf16> to vector<4x128xbf16>
    %cst_14 = arith.constant dense<0.000000e+00> : vector<288x128xf32>
    %27 = tpu.matmul %24, %26, %cst_14 {dimension_numbers = #tpu.dot_dimension_numbers<[1], [0], [0], [1], [0, 0, 1, 1], [], []>} : vector<288x4xbf16>, vector<4x128xbf16>, vector<288x128xf32> -> vector<288x128xf32>
    %28 = arith.addf %22, %27 : vector<288x128xf32>
    %c23_i32 = arith.constant 23 : i32
    %29 = tpu.dynamic_rotate %17 by %c23_i32 dim 0 : vector<288x4xf32>, i32 -> vector<288x4xf32>
    %30 = arith.truncf %29 : vector<288x4xf32> to vector<288x4xbf16>
    %c2 = arith.constant 2 : index
    %c0_15 = arith.constant 0 : index
    %c0_16 = arith.constant 0 : index
    %31 = vector.load %arg4[%c2, %c0_15, %c0_16] : memref<9x4x128xbf16, #tpu.memory_space<vmem>>, vector<1x4x128xbf16>
    %32 = vector.shape_cast %31 : vector<1x4x128xbf16> to vector<4x128xbf16>
    %cst_17 = arith.constant dense<0.000000e+00> : vector<288x128xf32>
    %33 = tpu.matmul %30, %32, %cst_17 {dimension_numbers = #tpu.dot_dimension_numbers<[1], [0], [0], [1], [0, 0, 1, 1], [], []>} : vector<288x4xbf16>, vector<4x128xbf16>, vector<288x128xf32> -> vector<288x128xf32>
    %34 = arith.addf %28, %33 : vector<288x128xf32>
    %c1_i32_18 = arith.constant 1 : i32
    %35 = tpu.dynamic_rotate %17 by %c1_i32_18 dim 0 : vector<288x4xf32>, i32 -> vector<288x4xf32>
    %36 = arith.truncf %35 : vector<288x4xf32> to vector<288x4xbf16>
    %c3 = arith.constant 3 : index
    %c0_19 = arith.constant 0 : index
    %c0_20 = arith.constant 0 : index
    %37 = vector.load %arg4[%c3, %c0_19, %c0_20] : memref<9x4x128xbf16, #tpu.memory_space<vmem>>, vector<1x4x128xbf16>
    %38 = vector.shape_cast %37 : vector<1x4x128xbf16> to vector<4x128xbf16>
    %cst_21 = arith.constant dense<0.000000e+00> : vector<288x128xf32>
    %39 = tpu.matmul %36, %38, %cst_21 {dimension_numbers = #tpu.dot_dimension_numbers<[1], [0], [0], [1], [0, 0, 1, 1], [], []>} : vector<288x4xbf16>, vector<4x128xbf16>, vector<288x128xf32> -> vector<288x128xf32>
    %40 = arith.addf %34, %39 : vector<288x128xf32>
    %41 = arith.truncf %17 : vector<288x4xf32> to vector<288x4xbf16>
    %c4 = arith.constant 4 : index
    %c0_22 = arith.constant 0 : index
    %c0_23 = arith.constant 0 : index
    %42 = vector.load %arg4[%c4, %c0_22, %c0_23] : memref<9x4x128xbf16, #tpu.memory_space<vmem>>, vector<1x4x128xbf16>
    %43 = vector.shape_cast %42 : vector<1x4x128xbf16> to vector<4x128xbf16>
    %cst_24 = arith.constant dense<0.000000e+00> : vector<288x128xf32>
    %44 = tpu.matmul %41, %43, %cst_24 {dimension_numbers = #tpu.dot_dimension_numbers<[1], [0], [0], [1], [0, 0, 1, 1], [], []>} : vector<288x4xbf16>, vector<4x128xbf16>, vector<288x128xf32> -> vector<288x128xf32>
    %45 = arith.addf %40, %44 : vector<288x128xf32>
    %c287_i32 = arith.constant 287 : i32
    %46 = tpu.dynamic_rotate %17 by %c287_i32 dim 0 : vector<288x4xf32>, i32 -> vector<288x4xf32>
    %47 = arith.truncf %46 : vector<288x4xf32> to vector<288x4xbf16>
    %c5 = arith.constant 5 : index
    %c0_25 = arith.constant 0 : index
    %c0_26 = arith.constant 0 : index
    %48 = vector.load %arg4[%c5, %c0_25, %c0_26] : memref<9x4x128xbf16, #tpu.memory_space<vmem>>, vector<1x4x128xbf16>
    %49 = vector.shape_cast %48 : vector<1x4x128xbf16> to vector<4x128xbf16>
    %cst_27 = arith.constant dense<0.000000e+00> : vector<288x128xf32>
    %50 = tpu.matmul %47, %49, %cst_27 {dimension_numbers = #tpu.dot_dimension_numbers<[1], [0], [0], [1], [0, 0, 1, 1], [], []>} : vector<288x4xbf16>, vector<4x128xbf16>, vector<288x128xf32> -> vector<288x128xf32>
    %51 = arith.addf %45, %50 : vector<288x128xf32>
    %c265_i32 = arith.constant 265 : i32
    %52 = tpu.dynamic_rotate %17 by %c265_i32 dim 0 : vector<288x4xf32>, i32 -> vector<288x4xf32>
    %53 = arith.truncf %52 : vector<288x4xf32> to vector<288x4xbf16>
    %c6 = arith.constant 6 : index
    %c0_28 = arith.constant 0 : index
    %c0_29 = arith.constant 0 : index
    %54 = vector.load %arg4[%c6, %c0_28, %c0_29] : memref<9x4x128xbf16, #tpu.memory_space<vmem>>, vector<1x4x128xbf16>
    %55 = vector.shape_cast %54 : vector<1x4x128xbf16> to vector<4x128xbf16>
    %cst_30 = arith.constant dense<0.000000e+00> : vector<288x128xf32>
    %56 = tpu.matmul %53, %55, %cst_30 {dimension_numbers = #tpu.dot_dimension_numbers<[1], [0], [0], [1], [0, 0, 1, 1], [], []>} : vector<288x4xbf16>, vector<4x128xbf16>, vector<288x128xf32> -> vector<288x128xf32>
    %57 = arith.addf %51, %56 : vector<288x128xf32>
    %c264_i32 = arith.constant 264 : i32
    %58 = tpu.dynamic_rotate %17 by %c264_i32 dim 0 : vector<288x4xf32>, i32 -> vector<288x4xf32>
    %59 = arith.truncf %58 : vector<288x4xf32> to vector<288x4xbf16>
    %c7 = arith.constant 7 : index
    %c0_31 = arith.constant 0 : index
    %c0_32 = arith.constant 0 : index
    %60 = vector.load %arg4[%c7, %c0_31, %c0_32] : memref<9x4x128xbf16, #tpu.memory_space<vmem>>, vector<1x4x128xbf16>
    %61 = vector.shape_cast %60 : vector<1x4x128xbf16> to vector<4x128xbf16>
    %cst_33 = arith.constant dense<0.000000e+00> : vector<288x128xf32>
    %62 = tpu.matmul %59, %61, %cst_33 {dimension_numbers = #tpu.dot_dimension_numbers<[1], [0], [0], [1], [0, 0, 1, 1], [], []>} : vector<288x4xbf16>, vector<4x128xbf16>, vector<288x128xf32> -> vector<288x128xf32>
    %63 = arith.addf %57, %62 : vector<288x128xf32>
    %c263_i32 = arith.constant 263 : i32
    %64 = tpu.dynamic_rotate %17 by %c263_i32 dim 0 : vector<288x4xf32>, i32 -> vector<288x4xf32>
    %65 = arith.truncf %64 : vector<288x4xf32> to vector<288x4xbf16>
    %c8 = arith.constant 8 : index
    %c0_34 = arith.constant 0 : index
    %c0_35 = arith.constant 0 : index
    %66 = vector.load %arg4[%c8, %c0_34, %c0_35] : memref<9x4x128xbf16, #tpu.memory_space<vmem>>, vector<1x4x128xbf16>
    %67 = vector.shape_cast %66 : vector<1x4x128xbf16> to vector<4x128xbf16>
    %cst_36 = arith.constant dense<0.000000e+00> : vector<288x128xf32>
    %68 = tpu.matmul %65, %67, %cst_36 {dimension_numbers = #tpu.dot_dimension_numbers<[1], [0], [0], [1], [0, 0, 1, 1], [], []>} : vector<288x4xbf16>, vector<4x128xbf16>, vector<288x128xf32> -> vector<288x128xf32>
    %69 = arith.addf %63, %68 : vector<288x128xf32>
    %c0_37 = arith.constant 0 : index
    %c0_38 = arith.constant 0 : index
    %70 = vector.load %arg5[%c0_37, %c0_38] : memref<1x128xf32, #tpu.memory_space<vmem>>, vector<1x128xf32>
    %c0_39 = arith.constant 0 : index
    %c0_40 = arith.constant 0 : index
    %71 = vector.load %arg6[%c0_39, %c0_40] : memref<1x128xf32, #tpu.memory_space<vmem>>, vector<1x128xf32>
    %72 = vector.broadcast %70 : vector<1x128xf32> to vector<288x128xf32>
    %73 = arith.mulf %69, %72 : vector<288x128xf32>
    %74 = vector.broadcast %71 : vector<1x128xf32> to vector<288x128xf32>
    %75 = arith.addf %73, %74 : vector<288x128xf32>
    %cst_41 = arith.constant 0.000000e+00 : f32
    %76 = vector.broadcast %cst_41 : f32 to vector<288x128xf32>
    %77 = arith.cmpf oge, %75, %76 : vector<288x128xf32>
    %cst_42 = arith.constant 1.000000e-01 : f32
    %78 = vector.broadcast %cst_42 : f32 to vector<288x128xf32>
    %79 = arith.mulf %78, %75 : vector<288x128xf32>
    %80 = arith.select %77, %75, %79 : vector<288x128xi1>, vector<288x128xf32>
    %81 = vector.broadcast %16 : vector<288x1xf32> to vector<288x128xf32>
    %82 = arith.mulf %80, %81 : vector<288x128xf32>
    %c25_i32_43 = arith.constant 25 : i32
    %83 = tpu.dynamic_rotate %82 by %c25_i32_43 dim 0 : vector<288x128xf32>, i32 -> vector<288x128xf32>
    %84 = arith.truncf %83 : vector<288x128xf32> to vector<288x128xbf16>
    %c0_44 = arith.constant 0 : index
    %c0_45 = arith.constant 0 : index
    %c0_46 = arith.constant 0 : index
    %85 = vector.load %arg7[%c0_44, %c0_45, %c0_46] : memref<9x128x128xbf16, #tpu.memory_space<vmem>>, vector<1x128x128xbf16>
    %86 = vector.shape_cast %85 : vector<1x128x128xbf16> to vector<128x128xbf16>
    %cst_47 = arith.constant dense<0.000000e+00> : vector<288x128xf32>
    %87 = tpu.matmul %84, %86, %cst_47 {dimension_numbers = #tpu.dot_dimension_numbers<[1], [0], [0], [1], [0, 0, 1, 1], [], []>} : vector<288x128xbf16>, vector<128x128xbf16>, vector<288x128xf32> -> vector<288x128xf32>
    %c24_i32_48 = arith.constant 24 : i32
    %88 = tpu.dynamic_rotate %82 by %c24_i32_48 dim 0 : vector<288x128xf32>, i32 -> vector<288x128xf32>
    %89 = arith.truncf %88 : vector<288x128xf32> to vector<288x128xbf16>
    %c1_49 = arith.constant 1 : index
    %c0_50 = arith.constant 0 : index
    %c0_51 = arith.constant 0 : index
    %90 = vector.load %arg7[%c1_49, %c0_50, %c0_51] : memref<9x128x128xbf16, #tpu.memory_space<vmem>>, vector<1x128x128xbf16>
    %91 = vector.shape_cast %90 : vector<1x128x128xbf16> to vector<128x128xbf16>
    %cst_52 = arith.constant dense<0.000000e+00> : vector<288x128xf32>
    %92 = tpu.matmul %89, %91, %cst_52 {dimension_numbers = #tpu.dot_dimension_numbers<[1], [0], [0], [1], [0, 0, 1, 1], [], []>} : vector<288x128xbf16>, vector<128x128xbf16>, vector<288x128xf32> -> vector<288x128xf32>
    %93 = arith.addf %87, %92 : vector<288x128xf32>
    %c23_i32_53 = arith.constant 23 : i32
    %94 = tpu.dynamic_rotate %82 by %c23_i32_53 dim 0 : vector<288x128xf32>, i32 -> vector<288x128xf32>
    %95 = arith.truncf %94 : vector<288x128xf32> to vector<288x128xbf16>
    %c2_54 = arith.constant 2 : index
    %c0_55 = arith.constant 0 : index
    %c0_56 = arith.constant 0 : index
    %96 = vector.load %arg7[%c2_54, %c0_55, %c0_56] : memref<9x128x128xbf16, #tpu.memory_space<vmem>>, vector<1x128x128xbf16>
    %97 = vector.shape_cast %96 : vector<1x128x128xbf16> to vector<128x128xbf16>
    %cst_57 = arith.constant dense<0.000000e+00> : vector<288x128xf32>
    %98 = tpu.matmul %95, %97, %cst_57 {dimension_numbers = #tpu.dot_dimension_numbers<[1], [0], [0], [1], [0, 0, 1, 1], [], []>} : vector<288x128xbf16>, vector<128x128xbf16>, vector<288x128xf32> -> vector<288x128xf32>
    %99 = arith.addf %93, %98 : vector<288x128xf32>
    %c1_i32_58 = arith.constant 1 : i32
    %100 = tpu.dynamic_rotate %82 by %c1_i32_58 dim 0 : vector<288x128xf32>, i32 -> vector<288x128xf32>
    %101 = arith.truncf %100 : vector<288x128xf32> to vector<288x128xbf16>
    %c3_59 = arith.constant 3 : index
    %c0_60 = arith.constant 0 : index
    %c0_61 = arith.constant 0 : index
    %102 = vector.load %arg7[%c3_59, %c0_60, %c0_61] : memref<9x128x128xbf16, #tpu.memory_space<vmem>>, vector<1x128x128xbf16>
    %103 = vector.shape_cast %102 : vector<1x128x128xbf16> to vector<128x128xbf16>
    %cst_62 = arith.constant dense<0.000000e+00> : vector<288x128xf32>
    %104 = tpu.matmul %101, %103, %cst_62 {dimension_numbers = #tpu.dot_dimension_numbers<[1], [0], [0], [1], [0, 0, 1, 1], [], []>} : vector<288x128xbf16>, vector<128x128xbf16>, vector<288x128xf32> -> vector<288x128xf32>
    %105 = arith.addf %99, %104 : vector<288x128xf32>
    %106 = arith.truncf %82 : vector<288x128xf32> to vector<288x128xbf16>
    %c4_63 = arith.constant 4 : index
    %c0_64 = arith.constant 0 : index
    %c0_65 = arith.constant 0 : index
    %107 = vector.load %arg7[%c4_63, %c0_64, %c0_65] : memref<9x128x128xbf16, #tpu.memory_space<vmem>>, vector<1x128x128xbf16>
    %108 = vector.shape_cast %107 : vector<1x128x128xbf16> to vector<128x128xbf16>
    %cst_66 = arith.constant dense<0.000000e+00> : vector<288x128xf32>
    %109 = tpu.matmul %106, %108, %cst_66 {dimension_numbers = #tpu.dot_dimension_numbers<[1], [0], [0], [1], [0, 0, 1, 1], [], []>} : vector<288x128xbf16>, vector<128x128xbf16>, vector<288x128xf32> -> vector<288x128xf32>
    %110 = arith.addf %105, %109 : vector<288x128xf32>
    %c287_i32_67 = arith.constant 287 : i32
    %111 = tpu.dynamic_rotate %82 by %c287_i32_67 dim 0 : vector<288x128xf32>, i32 -> vector<288x128xf32>
    %112 = arith.truncf %111 : vector<288x128xf32> to vector<288x128xbf16>
    %c5_68 = arith.constant 5 : index
    %c0_69 = arith.constant 0 : index
    %c0_70 = arith.constant 0 : index
    %113 = vector.load %arg7[%c5_68, %c0_69, %c0_70] : memref<9x128x128xbf16, #tpu.memory_space<vmem>>, vector<1x128x128xbf16>
    %114 = vector.shape_cast %113 : vector<1x128x128xbf16> to vector<128x128xbf16>
    %cst_71 = arith.constant dense<0.000000e+00> : vector<288x128xf32>
    %115 = tpu.matmul %112, %114, %cst_71 {dimension_numbers = #tpu.dot_dimension_numbers<[1], [0], [0], [1], [0, 0, 1, 1], [], []>} : vector<288x128xbf16>, vector<128x128xbf16>, vector<288x128xf32> -> vector<288x128xf32>
    %116 = arith.addf %110, %115 : vector<288x128xf32>
    %c265_i32_72 = arith.constant 265 : i32
    %117 = tpu.dynamic_rotate %82 by %c265_i32_72 dim 0 : vector<288x128xf32>, i32 -> vector<288x128xf32>
    %118 = arith.truncf %117 : vector<288x128xf32> to vector<288x128xbf16>
    %c6_73 = arith.constant 6 : index
    %c0_74 = arith.constant 0 : index
    %c0_75 = arith.constant 0 : index
    %119 = vector.load %arg7[%c6_73, %c0_74, %c0_75] : memref<9x128x128xbf16, #tpu.memory_space<vmem>>, vector<1x128x128xbf16>
    %120 = vector.shape_cast %119 : vector<1x128x128xbf16> to vector<128x128xbf16>
    %cst_76 = arith.constant dense<0.000000e+00> : vector<288x128xf32>
    %121 = tpu.matmul %118, %120, %cst_76 {dimension_numbers = #tpu.dot_dimension_numbers<[1], [0], [0], [1], [0, 0, 1, 1], [], []>} : vector<288x128xbf16>, vector<128x128xbf16>, vector<288x128xf32> -> vector<288x128xf32>
    %122 = arith.addf %116, %121 : vector<288x128xf32>
    %c264_i32_77 = arith.constant 264 : i32
    %123 = tpu.dynamic_rotate %82 by %c264_i32_77 dim 0 : vector<288x128xf32>, i32 -> vector<288x128xf32>
    %124 = arith.truncf %123 : vector<288x128xf32> to vector<288x128xbf16>
    %c7_78 = arith.constant 7 : index
    %c0_79 = arith.constant 0 : index
    %c0_80 = arith.constant 0 : index
    %125 = vector.load %arg7[%c7_78, %c0_79, %c0_80] : memref<9x128x128xbf16, #tpu.memory_space<vmem>>, vector<1x128x128xbf16>
    %126 = vector.shape_cast %125 : vector<1x128x128xbf16> to vector<128x128xbf16>
    %cst_81 = arith.constant dense<0.000000e+00> : vector<288x128xf32>
    %127 = tpu.matmul %124, %126, %cst_81 {dimension_numbers = #tpu.dot_dimension_numbers<[1], [0], [0], [1], [0, 0, 1, 1], [], []>} : vector<288x128xbf16>, vector<128x128xbf16>, vector<288x128xf32> -> vector<288x128xf32>
    %128 = arith.addf %122, %127 : vector<288x128xf32>
    %c263_i32_82 = arith.constant 263 : i32
    %129 = tpu.dynamic_rotate %82 by %c263_i32_82 dim 0 : vector<288x128xf32>, i32 -> vector<288x128xf32>
    %130 = arith.truncf %129 : vector<288x128xf32> to vector<288x128xbf16>
    %c8_83 = arith.constant 8 : index
    %c0_84 = arith.constant 0 : index
    %c0_85 = arith.constant 0 : index
    %131 = vector.load %arg7[%c8_83, %c0_84, %c0_85] : memref<9x128x128xbf16, #tpu.memory_space<vmem>>, vector<1x128x128xbf16>
    %132 = vector.shape_cast %131 : vector<1x128x128xbf16> to vector<128x128xbf16>
    %cst_86 = arith.constant dense<0.000000e+00> : vector<288x128xf32>
    %133 = tpu.matmul %130, %132, %cst_86 {dimension_numbers = #tpu.dot_dimension_numbers<[1], [0], [0], [1], [0, 0, 1, 1], [], []>} : vector<288x128xbf16>, vector<128x128xbf16>, vector<288x128xf32> -> vector<288x128xf32>
    %134 = arith.addf %128, %133 : vector<288x128xf32>
    %c0_87 = arith.constant 0 : index
    %c0_88 = arith.constant 0 : index
    %135 = vector.load %arg8[%c0_87, %c0_88] : memref<1x128xf32, #tpu.memory_space<vmem>>, vector<1x128xf32>
    %c0_89 = arith.constant 0 : index
    %c0_90 = arith.constant 0 : index
    %136 = vector.load %arg9[%c0_89, %c0_90] : memref<1x128xf32, #tpu.memory_space<vmem>>, vector<1x128xf32>
    %137 = vector.broadcast %135 : vector<1x128xf32> to vector<288x128xf32>
    %138 = arith.mulf %134, %137 : vector<288x128xf32>
    %139 = vector.broadcast %136 : vector<1x128xf32> to vector<288x128xf32>
    %140 = arith.addf %138, %139 : vector<288x128xf32>
    %cst_91 = arith.constant 0.000000e+00 : f32
    %141 = vector.broadcast %cst_91 : f32 to vector<288x128xf32>
    %142 = arith.cmpf oge, %140, %141 : vector<288x128xf32>
    %cst_92 = arith.constant 1.000000e-01 : f32
    %143 = vector.broadcast %cst_92 : f32 to vector<288x128xf32>
    %144 = arith.mulf %143, %140 : vector<288x128xf32>
    %145 = arith.select %142, %140, %144 : vector<288x128xi1>, vector<288x128xf32>
    %146 = vector.extract_strided_slice %145 {offsets = [48, 0], sizes = [192, 128], strides = [1, 1]} : vector<288x128xf32> to vector<192x128xf32>
    %c0_93 = arith.constant 0 : index
    %c0_94 = arith.constant 0 : index
    %c0_95 = arith.constant 0 : index
    %147 = vector.load %arg10[%c0_93, %c0_94, %c0_95] : memref<1x192x128xf32, #tpu.memory_space<vmem>>, vector<1x192x128xf32>
    %148 = vector.shape_cast %147 : vector<1x192x128xf32> to vector<192x128xf32>
    %149 = vector.shape_cast %146 : vector<192x128xf32> to vector<1x192x128xf32>
    tpu.vector_store %arg10[%c0_93, %c0_94, %c0_95], %149 {strides = array<i32>} : memref<1x192x128xf32, #tpu.memory_space<vmem>>, vector<1x192x128xf32>,
    return
  }
  func.func @transform_2(%arg0: i32, %arg1: i32) -> (i32, i32, i32) {
    %c0_i32 = arith.constant 0 : i32
    %c0_i32_0 = arith.constant 0 : i32
    %c0_i32_1 = arith.constant 0 : i32
    %c0_i32_2 = arith.constant 0 : i32
    return %c0_i32, %c0_i32_0, %c0_i32_1 : i32, i32, i32
  }
  func.func @transform_3(%arg0: i32, %arg1: i32) -> (i32, i32) {
    %c0_i32 = arith.constant 0 : i32
    %c0_i32_0 = arith.constant 0 : i32
    %c0_i32_1 = arith.constant 0 : i32
    return %c0_i32, %c0_i32_0 : i32, i32
  }
  func.func @transform_4(%arg0: i32, %arg1: i32) -> (i32, i32) {
    %c0_i32 = arith.constant 0 : i32
    %c0_i32_0 = arith.constant 0 : i32
    %c0_i32_1 = arith.constant 0 : i32
    return %c0_i32, %c0_i32_0 : i32, i32
  }
  func.func @transform_5(%arg0: i32, %arg1: i32) -> (i32, i32, i32) {
    %c0_i32 = arith.constant 0 : i32
    %c0_i32_0 = arith.constant 0 : i32
    %c0_i32_1 = arith.constant 0 : i32
    %c0_i32_2 = arith.constant 0 : i32
    return %c0_i32, %c0_i32_0, %c0_i32_1 : i32, i32, i32
  }
  func.func @transform_6(%arg0: i32, %arg1: i32) -> (i32, i32) {
    %c0_i32 = arith.constant 0 : i32
    %c0_i32_0 = arith.constant 0 : i32
    %c0_i32_1 = arith.constant 0 : i32
    return %c0_i32, %c0_i32_0 : i32, i32
  }
  func.func @transform_7(%arg0: i32, %arg1: i32) -> (i32, i32) {
    %c0_i32 = arith.constant 0 : i32
    %c0_i32_0 = arith.constant 0 : i32
    %c0_i32_1 = arith.constant 0 : i32
    return %c0_i32, %c0_i32_0 : i32, i32
  }
  func.func @transform_8(%arg0: i32, %arg1: i32) -> (i32, i32, i32) {
    %c0_i32 = arith.constant 0 : i32
    %c0_i32_0 = arith.constant 0 : i32
    return %arg0, %arg1, %c0_i32 : i32, i32, i32
  }
}

</mosaic_0001>

<bundles_post_ra>
// kernel: unet_block_forward.1
= control target key start
LH: loop header
LB: loop body
LE: loop exit
PB: predicated region body
PF: predicated region fallthrough
CT: control target
= control target key end

     0   :  { %s8541_s27 = smov 0   ;;  %s8543_s28 = smov 0   ;;  %s11441_s0 = inlined_call_operand.vmem [shape: f32[960,4], index: 0, kind: input, shape index: {}]   ;;  %s11442_s1 = inlined_call_operand.vmem [shape: f32[480,1], index: 1, kind: input, shape index: {}]   ;;  %s11443_s2 = inlined_call_operand.vmem [shape: bf16[9,4,128], index: 2, kind: input, shape index: {}]   ;;  %s11444_s3 = inlined_call_operand.vmem [shape: f32[1,128], index: 3, kind: input, shape index: {}]   ;;  %s11445_s4 = inlined_call_operand.vmem [shape: f32[1,128], index: 4, kind: input, shape index: {}]   ;;  %s11446_s5 = inlined_call_operand.vmem [shape: bf16[9,128,128], index: 5, kind: input, shape index: {}]   ;;  %s11447_s6 = inlined_call_operand.vmem [shape: f32[1,128], index: 6, kind: input, shape index: {}]   ;;  %s11448_s7 = inlined_call_operand.vmem [shape: f32[1,128], index: 7, kind: input, shape index: {}]   ;;  %s11449_s8 = inlined_call_operand.vmem [shape: f32[2,384,128], index: 8, kind: output, shape index: {}]  }
   0x1   :  { %s8545_s29 = smov 0   ;;  %s8547_s30 = smov 0  }
   0x2   :  { %s8549_s9 = smov 0  }
   0x3 LB: > { %s27_s10 = sadd.s32 1, %s8485_s29  ;;  %s30_s11 = sadd.s32 1, %s8489_s30  ;;  %s8493_s9 = sphi %s8549_s9, %s18_s9   ;;  %s8489_s30 = sphi %s8547_s30, %s12369_s30   ;;  %s8485_s29 = sphi %s8545_s29, %s12368_s29   ;;  %s8481_s28 = sphi %s8543_s28, %s12367_s28   ;;  %s8477_s27 = sphi %s8541_s27, %s12366_s27  }
   0x4   : > { %p28_p0 = scmp.ge.s32.totalorder %s27_s10, 2  ;;  %p6203_p1 = scmp.ge.s32.totalorder %s8493_s9, 1 }
   0x5   : > { %p218_p2 = scmp.lt.s32.totalorder %s8493_s9, 5 }
   0x6   : > { %s12371_s10 = smov (%p28_p0, %s27_s10), 0  ;;  %s12373_s11 = smov (!%p28_p0, %s30_s11), %s8489_s30 }
   0x7   : > { %p219_p3 = pnand %p6203_p1, %p218_p2  ;;  %p32_p4 = scmp.ge.s32.totalorder %s12373_s11, 2 }
   0x9   : > { %s12375_s11 = smov (%p32_p4, %s12373_s11), 0  ;;  %222 = sbr.rel (%p219_p3) target bundleno = 1722 (0x6ba), region = 44 }
  0x10   : > { %s247_s12 = smul.u32 24, %s8477_s27  ;;  %p248_p5 = scmp.lt.s32.totalorder %s8481_s28, 1 }
  0x11   : > { %s258_s13 = smul.u32 192, %s8477_s27 }
  0x12   : > { %s249_s14 = scalar_select %p248_p5, %s8481_s28, 1 }
  0x13   : > { %p250_p6 = scmp.lt.s32.totalorder %s247_s12, 47  ;;  %s259_s15 = smul.u32 480, %s8481_s28 }
  0x14   : > { %s8335_s16 = smul.u32 48, %s249_s14 }
  0x15   : > { %s12377_s12 = smov (!%p250_p6, %s247_s12), 47  ;;  %s260_s17 = sadd.s32 %s259_s15, %s258_s13 }
  0x16   : > { %s253_s18 = sadd.s32 %s8335_s16, %s12377_s12  ;;  %s8580_s21 = scalar_lea.vmem %s11441_s0, %s260_s17 }
  0x17   : > { %s6204_s22 = sshll.u32 %s253_s18, 3  ;;  %v8583_v0 = vld [vmem:[%s8580_s21] sm:$0xff]  ;;  %v8586_v1 = vld [vmem:[%s8580_s21 + $0x8] sm:$0xff]  ;;  %v8589_v2 = vld [vmem:[%s8580_s21 + $0x10] sm:$0xff] }
  0x18   : > { %11719 = vst [vmem:[#allocation9_spill] sm:$0xff] %v8589_v2  ;;  %s8594_s25 = scalar_lea.vmem %s11449_s8, %s6204_s22  ;;  %v8597_v3 = vld [vmem:[%s8580_s21 + $0x18] sm:$0xff]  ;;  %v8600_v4 = vld [vmem:[%s8580_s21 + $0x20] sm:$0xff]  ;;  %v8603_v5 = vld [vmem:[%s8580_s21 + $0x28] sm:$0xff] }
  0x19   : > { %11720 = vst [vmem:[#allocation10_spill] sm:$0xff] %v8597_v3  ;;  %v8606_v6 = vld [vmem:[%s8580_s21 + $0x30] sm:$0xff]  ;;  %v8609_v7 = vld [vmem:[%s8580_s21 + $0x38] sm:$0xff]  ;;  %v8612_v8 = vld [vmem:[%s8580_s21 + $0x40] sm:$0xff] }
  0x1a   : > { %v8615_v9 = vld [vmem:[%s8580_s21 + $0x48] sm:$0xff]  ;;  %v8618_v10 = vld [vmem:[%s8580_s21 + $0x50] sm:$0xff]  ;;  %v8621_v11 = vld [vmem:[%s8580_s21 + $0x58] sm:$0xff] }
  0x1b   : > { %v8624_v12 = vld [vmem:[%s8580_s21 + $0x60] sm:$0xff]  ;;  %v8627_v13 = vld [vmem:[%s8580_s21 + $0x68] sm:$0xff]  ;;  %v8630_v14 = vld [vmem:[%s8580_s21 + $0x70] sm:$0xff] }
  0x1c   : > { %v8633_v15 = vld [vmem:[%s8580_s21 + $0x78] sm:$0xff]  ;;  %v8636_v16 = vld [vmem:[%s8580_s21 + $0x80] sm:$0xff]  ;;  %v8639_v17 = vld [vmem:[%s8580_s21 + $0x88] sm:$0xff] }
  0x1d   : > { %v8642_v18 = vld [vmem:[%s8580_s21 + $0x90] sm:$0xff]  ;;  %v8645_v19 = vld [vmem:[%s8580_s21 + $0x98] sm:$0xff]  ;;  %v8648_v20 = vld [vmem:[%s8580_s21 + $0xa0] sm:$0xff] }
  0x1e   : > { %v8651_v21 = vld [vmem:[%s8580_s21 + $0xa8] sm:$0xff]  ;;  %v8654_v22 = vld [vmem:[%s8580_s21 + $0xb0] sm:$0xff]  ;;  %v8657_v23 = vld [vmem:[%s8580_s21 + $0xb8] sm:$0xff] }
  0x1f   : > { %v8660_v24 = vld [vmem:[%s8580_s21 + $0xc0] sm:$0xff]  ;;  %v8663_v25 = vld [vmem:[%s8580_s21 + $0xc8] sm:$0xff]  ;;  %v8666_v26 = vld [vmem:[%s8580_s21 + $0xd0] sm:$0xff] }
  0x20   : > { %v8669_v27 = vld [vmem:[%s8580_s21 + $0xd8] sm:$0xff]  ;;  %v8672_v28 = vld [vmem:[%s8580_s21 + $0xe0] sm:$0xff]  ;;  %v8675_v29 = vld [vmem:[%s8580_s21 + $0xe8] sm:$0xff] }
  0x21   : > { %v8678_v30 = vld [vmem:[%s8580_s21 + $0xf0] sm:$0xff]  ;;  %v8681_v31 = vld [vmem:[%s8580_s21 + $0xf8] sm:$0xff]  ;;  %v8684_v32 = vld [vmem:[%s8580_s21 + $0x100] sm:$0xff] }
  0x22   : > { %v8687_v33 = vld [vmem:[%s8580_s21 + $0x108] sm:$0xff]  ;;  %v8690_v34 = vld [vmem:[%s8580_s21 + $0x110] sm:$0xff]  ;;  %v8693_v35 = vld [vmem:[%s8580_s21 + $0x118] sm:$0xff] }
  0x23   : > { %11721 = vst [vmem:[#allocation11_spill] sm:$0xff] %v8690_v34  ;;  %11722 = vst [vmem:[#allocation12_spill] sm:$0xff] %v8693_v35 }
  0x24   : > { %373 = vsyncadd [#allocation4], 4608  ;;  %s8700_s12 = scalar_lea.vmem %s11442_s1, %s258_s13 }
  0x25   : > { %v8703_v36 = vld [vmem:[%s8700_s12] sm:$0xff]  ;;  %v8706_v37 = vld [vmem:[%s8700_s12 + $0x8] sm:$0xff]  ;;  %v8709_v38 = vld [vmem:[%s8700_s12 + $0x10] sm:$0xff] }
  0x26   : > { %11723 = vst [vmem:[#allocation13_spill] sm:$0xff] %v8703_v36  ;;  %11724 = vst [vmem:[#allocation14_spill] sm:$0xff] %v8706_v37  ;;  %v8712_v39 = vld [vmem:[%s8700_s12 + $0x18] sm:$0xff]  ;;  %v8715_v40 = vld [vmem:[%s8700_s12 + $0x20] sm:$0xff] }
  0x27   : > { %11725 = vst [vmem:[#allocation15_spill] sm:$0xff] %v8709_v38  ;;  %11726 = vst [vmem:[#allocation16_spill] sm:$0xff] %v8712_v39  ;;  %v8718_v41 = vld [vmem:[%s8700_s12 + $0x28] sm:$0xff]  ;;  %v8721_v42 = vld [vmem:[%s8700_s12 + $0x30] sm:$0xff] }
  0x28   : > { %11727 = vst [vmem:[#allocation17_spill] sm:$0xff] %v8715_v40  ;;  %11728 = vst [vmem:[#allocation18_spill] sm:$0xff] %v8718_v41  ;;  %v8724_v43 = vld [vmem:[%s8700_s12 + $0x38] sm:$0xff]  ;;  %v8727_v44 = vld [vmem:[%s8700_s12 + $0x40] sm:$0xff] }
  0x29   : > { %11729 = vst [vmem:[#allocation19_spill] sm:$0xff] %v8721_v42  ;;  %11730 = vst [vmem:[#allocation20_spill] sm:$0xff] %v8724_v43  ;;  %v8730_v45 = vld [vmem:[%s8700_s12 + $0x48] sm:$0xff]  ;;  %v8733_v46 = vld [vmem:[%s8700_s12 + $0x50] sm:$0xff] }
  0x2a   : > { %11731 = vst [vmem:[#allocation21_spill] sm:$0xff] %v8727_v44  ;;  %11732 = vst [vmem:[#allocation22_spill] sm:$0xff] %v8730_v45  ;;  %v8736_v47 = vld [vmem:[%s8700_s12 + $0x58] sm:$0xff]  ;;  %v8739_v48 = vld [vmem:[%s8700_s12 + $0x60] sm:$0xff] }
  0x2b   : > { %11733 = vst [vmem:[#allocation23_spill] sm:$0xff] %v8733_v46  ;;  %11734 = vst [vmem:[#allocation24_spill] sm:$0xff] %v8736_v47  ;;  %v8742_v49 = vld [vmem:[%s8700_s12 + $0x68] sm:$0xff]  ;;  %v8745_v50 = vld [vmem:[%s8700_s12 + $0x70] sm:$0xff] }
  0x2c   : > { %11735 = vst [vmem:[#allocation25_spill] sm:$0xff] %v8739_v48  ;;  %11736 = vst [vmem:[#allocation26_spill] sm:$0xff] %v8742_v49  ;;  %v8748_v51 = vld [vmem:[%s8700_s12 + $0x78] sm:$0xff]  ;;  %v8751_v52 = vld [vmem:[%s8700_s12 + $0x80] sm:$0xff] }
  0x2d   : > { %11737 = vst [vmem:[#allocation27_spill] sm:$0xff] %v8745_v50  ;;  %11738 = vst [vmem:[#allocation28_spill] sm:$0xff] %v8748_v51  ;;  %v8754_v53 = vld [vmem:[%s8700_s12 + $0x88] sm:$0xff]  ;;  %v8757_v54 = vld [vmem:[%s8700_s12 + $0x90] sm:$0xff] }
  0x2e   : > { %11739 = vst [vmem:[#allocation29_spill] sm:$0xff] %v8751_v52  ;;  %11740 = vst [vmem:[#allocation30_spill] sm:$0xff] %v8754_v53  ;;  %v8760_v55 = vld [vmem:[%s8700_s12 + $0x98] sm:$0xff]  ;;  %v8763_v56 = vld [vmem:[%s8700_s12 + $0xa0] sm:$0xff] }
  0x2f   : > { %11741 = vst [vmem:[#allocation31_spill] sm:$0xff] %v8757_v54  ;;  %11742 = vst [vmem:[#allocation32_spill] sm:$0xff] %v8760_v55  ;;  %v8766_v57 = vld [vmem:[%s8700_s12 + $0xa8] sm:$0xff]  ;;  %v8769_v58 = vld [vmem:[%s8700_s12 + $0xb0] sm:$0xff] }
  0x30   : > { %11743 = vst [vmem:[#allocation33_spill] sm:$0xff] %v8763_v56  ;;  %11744 = vst [vmem:[#allocation34_spill] sm:$0xff] %v8766_v57  ;;  %v8772_v59 = vld [vmem:[%s8700_s12 + $0xb8] sm:$0xff]  ;;  %v8775_v60 = vld [vmem:[%s8700_s12 + $0xc0] sm:$0xff] }
  0x31   : > { %11745 = vst [vmem:[#allocation35_spill] sm:$0xff] %v8769_v58  ;;  %11746 = vst [vmem:[#allocation36_spill] sm:$0xff] %v8772_v59  ;;  %v8778_v61 = vld [vmem:[%s8700_s12 + $0xc8] sm:$0xff]  ;;  %v8781_v62 = vld [vmem:[%s8700_s12 + $0xd0] sm:$0xff] }
  0x32   : > { %11747 = vst [vmem:[#allocation37_spill] sm:$0xff] %v8775_v60  ;;  %11748 = vst [vmem:[#allocation38_spill] sm:$0xff] %v8778_v61  ;;  %v8784_v63 = vld [vmem:[%s8700_s12 + $0xd8] sm:$0xff]  ;;  %v8787_v36 = vld [vmem:[%s8700_s12 + $0xe0] sm:$0xff] }
  0x33   : > { %11749 = vst [vmem:[#allocation39_spill] sm:$0xff] %v8781_v62  ;;  %11750 = vst [vmem:[#allocation40_spill] sm:$0xff] %v8784_v63  ;;  %v8790_v55 = vld [vmem:[%s8700_s12 + $0xe8] sm:$0xff]  ;;  %v8793_v54 = vld [vmem:[%s8700_s12 + $0xf0] sm:$0xff] }
  0x34   : > { %11751 = vst [vmem:[#allocation41_spill] sm:$0xff] %v8787_v36  ;;  %11752 = vst [vmem:[#allocation42_spill] sm:$0xff] %v8790_v55  ;;  %v8796_v56 = vld [vmem:[%s8700_s12 + $0xf8] sm:$0xff]  ;;  %v8799_v57 = vld [vmem:[%s8700_s12 + $0x100] sm:$0xff] }
  0x35   : > { %11753 = vst [vmem:[#allocation43_spill] sm:$0xff] %v8793_v54  ;;  %11754 = vst [vmem:[#allocation44_spill] sm:$0xff] %v8796_v56  ;;  %v8802_v58 = vld [vmem:[%s8700_s12 + $0x108] sm:$0xff]  ;;  %v8805_v59 = vld [vmem:[%s8700_s12 + $0x110] sm:$0xff] }
  0x36   : > { %11755 = vst [vmem:[#allocation45_spill] sm:$0xff] %v8799_v57  ;;  %11756 = vst [vmem:[#allocation46_spill] sm:$0xff] %v8802_v58  ;;  %v8808_v60 = vld [vmem:[%s8700_s12 + $0x118] sm:$0xff] }
  0x37   : > { %11757 = vst [vmem:[#allocation47_spill] sm:$0xff] %v8805_v59  ;;  %11758 = vst [vmem:[#allocation48_spill] sm:$0xff] %v8808_v60 }
  0x38   : > { %487 = vsyncadd [#allocation4 + $0x1], 4608 }
  0x39   : > { %8471 = dma.done.wait [#allocation4], 4608 }
  0x3a   : > { %8472 = vsyncadd [#allocation4], 4294962688 }
  0x3b   : > { %8473 = dma.done.wait [#allocation4 + $0x1], 4608 }
  0x3c   : > { %8474 = vsyncadd [#allocation4 + $0x1], 4294962688  ;;  %v8812_v55 = vpack.c.bf16 %v8690_v34, %v8687_v33  ;;  %vm679_vm0 = vcmask 31744   ;;  %vm734_vm1 = vcmask 1041408   ;;  %v601_v57 = vlaneseq  ;;  %v6205_v59 = vld [vmem:[%s11443_s2 + $0x2] sm:$0x3] }
  0x3d   : > { %v658_v60 = vld [vmem:[%s11443_s2] sm:$0x3]  ;;  %8326 = vmatprep.subr.msk.bf16.mxu0 %vm734_vm1, %v6205_v59  ;;  %v736_v58 = vsel %vm734_vm1, %v6205_v59, 0  ;;  %v8826_v56 = vpack.c.bf16 %v8583_v0, %v8693_v35  ;;  %v11454_v36 = vrot.slane %v8586_v1, 7  ;;  %v567_v63 = vrot.slane %v8589_v2, 7 }
  0x3e   : > { %11759 = vst [vmem:[#allocation49_spill] sm:$0xff] %v8812_v55  ;;  %6990 = vmatprep.mubr.msk.bf16.mxu0 %vm679_vm0, %v8812_v55  ;;  %v8828_v54 = vshrl.u32 %v601_v57, 7  ;;  %6989 = vmatpush3.bf16.msra.mxu0 %v736_v58  ;;  %v8832_v55 = vpack.c.bf16 %v8589_v2, %v8586_v1  ;;  %v11453_v62 = vrot.slane %v8597_v3, 7  ;;  %v970_v59 = vsel %vm734_vm1, %v658_v60, 0  ;;  %v6242_v57 = vld [vmem:[%s11443_s2 + $0x4] sm:$0x3] }
  0x3f   : > { %11760 = vst [vmem:[#allocation50_spill] sm:$0xff] %v8826_v56  ;;  %8327 = vmatprep.subr.msk.bf16.mxu0 %vm734_vm1, %v658_v60  ;;  %v1152_v61 = vrot.slane %v8597_v3, 1  ;;  %v8895_v53 = vpack.c.bf16 %v8630_v14, %v8627_v13  ;;  %v8918_v52 = vpack.c.bf16 %v8636_v16, %v8633_v15  ;;  %v8979_v51 = vpack.c.bf16 %v8684_v32, %v8681_v31 }
  0x40   : > { %11761 = vst [vmem:[#allocation51_spill] sm:$0xff] %v8828_v54  ;;  %11762 = vst [vmem:[#allocation52_spill] sm:$0xff] %v8832_v55  ;;  %vm603_vm2 = vcmp.lt.s32.totalorder %v8828_v54, 1  ;;  %vm1185_vm3 = vcmp.lt.s32.totalorder %v8828_v54, 7  ;;  %v600_v50 = vrot.slane %v8693_v35, 7  ;;  %v1297_v47 = vsel %vm734_vm1, %v6242_v57, 0 }
  0x41   : > { %6991 = vmatmul.mubr.msk.bf16.vlgmr.msra.gmra.mrb[0].mxu0 %vm679_vm0, %v8826_v56  ;;  %v8851_v58 = vsel %vm603_vm2, %v11454_v36, %v567_v63  ;;  %v8857_v60 = vsel %vm603_vm2, %v567_v63, %v11453_v62  ;;  %v8868_v56 = vpack.c.bf16 %v8606_v6, %v8603_v5  ;;  %v8876_v63 = vpack.c.bf16 %v8612_v8, %v8609_v7 }
  0x42   : > { %7027 = vmatpush3.bf16.msra.mxu0 %v970_v59  ;;  %6994 = vmatprep.mubr.msk.bf16.mxu0 %vm679_vm0, %v8832_v55  ;;  %v8864_v55 = vpack.c.bf16 %v8600_v4, %v8597_v3  ;;  %v8880_v59 = vpack.c.bf16 %v8618_v10, %v8615_v9  ;;  %v8888_v62 = vpack.c.bf16 %v8624_v12, %v8621_v11  ;;  %v11459_v36 = vrot.slane %v8589_v2, 1 }
  0x43   : > { %8328 = vmatprep.subr.msk.bf16.mxu0 %vm734_vm1, %v6242_v57  ;;  %11764 = vst [vmem:[#allocation54_spill] sm:$0xff] %v8868_v56  ;;  %11765 = vst [vmem:[#allocation55_spill] sm:$0xff] %v8876_v63  ;;  %v571_v46 = vrot.slane %v8606_v6, 7  ;;  %v574_v43 = vrot.slane %v8615_v9, 7  ;;  %v576_v37 = vrot.slane %v8621_v11, 7 }
  0x44   : > { %11763 = vst [vmem:[#allocation53_spill] sm:$0xff] %v8864_v55  ;;  %11766 = vst [vmem:[#allocation56_spill] sm:$0xff] %v8880_v59 }
  0x45   : > { %11767 = vst [vmem:[#allocation57_spill] sm:$0xff] %v8888_v62  ;;  %11768 = vst [vmem:[#allocation58_spill] sm:$0xff] %v8895_v53 }
  0x46   : > { %11771 = vst [vmem:[#allocation61_spill] sm:$0xff] %v8918_v52  ;;  %11782 = vst [vmem:[#allocation71_spill] sm:$0xff] %v8979_v51 }
  0x49   : > { %6995 = vmatmul.mubr.msk.bf16.gmra.mrb[4].mxu0 %vm679_vm0, %v8864_v55  ;;  %v8934_v55 = vpack.c.bf16 %v8654_v22, %v8651_v21 }
  0x4a   : > { %6998 = vmatprep.mubr.msk.bf16.mxu0 %vm679_vm0, %v8868_v56  ;;  %v11460_v56 = vrot.slane %v8600_v4, 1 }
  0x4b   : > { %11774 = vst [vmem:[#allocation64_spill] sm:$0xff] %v8934_v55 }
  0x51   : > { %6999 = vmatmul.mubr.msk.bf16.gmra.mrb[8].mxu0 %vm679_vm0, %v8876_v63  ;;  %v8908_v63 = vsel %vm1185_vm3, %v1152_v61, %v11460_v56  ;;  %v8942_v56 = vpack.c.bf16 %v8660_v24, %v8657_v23 }
  0x52   : > { %7002 = vmatprep.mubr.msk.bf16.mxu0 %vm679_vm0, %v8880_v59  ;;  %v8902_v59 = vsel %vm1185_vm3, %v11459_v36, %v1152_v61  ;;  %11770 = vst [vmem:[#allocation60_spill] sm:$0xff] %v8908_v63  ;;  %v8922_v36 = vpack.c.bf16 %v8642_v18, %v8639_v17  ;;  %v8930_v61 = vpack.c.bf16 %v8648_v20, %v8645_v19 }
  0x53   : > { %11769 = vst [vmem:[#allocation59_spill] sm:$0xff] %v8902_v59  ;;  %11775 = vst [vmem:[#allocation65_spill] sm:$0xff] %v8942_v56 }
  0x54   : > { %11772 = vst [vmem:[#allocation62_spill] sm:$0xff] %v8922_v36  ;;  %11773 = vst [vmem:[#allocation63_spill] sm:$0xff] %v8930_v61 }
  0x59   : > { %7003 = vmatmul.mubr.msk.bf16.gmra.mrb[12].mxu0 %vm679_vm0, %v8888_v62  ;;  %v8961_v62 = vpack.c.bf16 %v8678_v30, %v8675_v29 }
  0x5a   : > { %7006 = vmatprep.mubr.msk.bf16.mxu0 %vm679_vm0, %v8895_v53  ;;  %v8957_v53 = vpack.c.bf16 %v8672_v28, %v8669_v27 }
  0x5b   : > { %11778 = vst [vmem:[#allocation68_spill] sm:$0xff] %v8961_v62 }
  0x5c   : > { %11777 = vst [vmem:[#allocation67_spill] sm:$0xff] %v8957_v53 }
  0x61   : > { %7007 = vmatmul.mubr.msk.bf16.gmra.mrb[16].mxu0 %vm679_vm0, %v8918_v52 }
  0x62   : > { %7010 = vmatprep.mubr.msk.bf16.mxu0 %vm679_vm0, %v8922_v36  ;;  %v8946_v36 = vpack.c.bf16 %v8666_v26, %v8663_v25 }
  0x64   : > { %11776 = vst [vmem:[#allocation66_spill] sm:$0xff] %v8946_v36 }
  0x69   : > { %7011 = vmatmul.mubr.msk.bf16.gmra.mrb[20].mxu0 %vm679_vm0, %v8930_v61  ;;  %v598_v61 = vrot.slane %v8687_v33, 7 }
  0x6a   : > { %7014 = vmatprep.mubr.msk.bf16.mxu0 %vm679_vm0, %v8934_v55  ;;  %v599_v55 = vrot.slane %v8690_v34, 7 }
  0x6c   : > { %v8969_v52 = vsel %vm603_vm2, %v598_v61, %v599_v55  ;;  %v8991_v49 = vsel %vm603_vm2, %v599_v55, %v600_v50 }
  0x6d   : > { %11779 = vst [vmem:[#allocation69_spill] sm:$0xff] %v8969_v52  ;;  %11784 = vst [vmem:[#allocation73_spill] sm:$0xff] %v8991_v49 }
  0x71   : > { %7015 = vmatmul.mubr.msk.bf16.gmra.mrb[24].mxu0 %vm679_vm0, %v8942_v56 }
  0x72   : > { %7018 = vmatprep.mubr.msk.bf16.mxu0 %vm679_vm0, %v8946_v36  ;;  %v11780_v36 = vrot.slane %v8684_v32, 7 }
  0x74   : > { %v8975_v56 = vsel %vm603_vm2, %v11780_v36, %v598_v61  ;;  %v11785_v61 = vrot.slane %v8586_v1, 7 }
  0x75   : > { %11781 = vst [vmem:[#allocation70_spill] sm:$0xff] %v8975_v56 }
  0x79   : > { %7019 = vmatmul.mubr.msk.bf16.gmra.mrb[28].mxu0 %vm679_vm0, %v8957_v53  ;;  %v8984_v53 = vpack.c.bf16 %v8969_v52, %v8975_v56  ;;  %v583_v52 = vrot.slane %v8642_v18, 7 }
  0x7a   : > { %7022 = vmatprep.mubr.msk.bf16.mxu0 %vm679_vm0, %v8961_v62  ;;  %v565_v62 = vrot.slane %v8583_v0, 7 }
  0x7b   : > { %11783 = vst [vmem:[#allocation72_spill] sm:$0xff] %v8984_v53 }
  0x7c   : > { %v8997_v36 = vsel %vm603_vm2, %v600_v50, %v565_v62  ;;  %v9003_v48 = vsel %vm603_vm2, %v565_v62, %v11785_v61  ;;  %v570_v50 = vrot.slane %v8603_v5, 7  ;;  %v9020_v62 = vld [vmem:[%s11443_s2 + $0x6] sm:$0x3]  ;;  %v11788_v61 = vrot.slane %v8597_v3, 7 }
  0x7d   : > { %v9011_v55 = vpack.c.bf16 %v8851_v58, %v9003_v48 }
  0x7e   : > { %v9034_v45 = vsel %vm603_vm2, %v570_v50, %v571_v46 }
  0x7f   : > { %11787 = vst [vmem:[#allocation75_spill] sm:$0xff] %v9011_v55 }
  0x81   : > { %7023 = vmatmul.mubr.msk.bf16.gmra.mrb[32].mxu0 %vm679_vm0, %v8979_v51  ;;  %v9007_v51 = vpack.c.bf16 %v8997_v36, %v8991_v49  ;;  %v580_v49 = vrot.slane %v8633_v15, 7 }
  0x82   : > { %7028 = vmatprep.mubr.msk.bf16.mxu0 %vm679_vm0, %v8984_v53  ;;  %v569_v53 = vrot.slane %v8600_v4, 7 }
  0x83   : > { %11786 = vst [vmem:[#allocation74_spill] sm:$0xff] %v9007_v51 }
  0x84   : > { %v9030_v57 = vsel %vm603_vm2, %v11788_v61, %v569_v53  ;;  %v9038_v44 = vsel %vm603_vm2, %v569_v53, %v570_v50  ;;  %v572_v61 = vrot.slane %v8609_v7, 7  ;;  %v575_v53 = vrot.slane %v8618_v10, 7 }
  0x86   : > { %v9064_v42 = vsel %vm603_vm2, %v571_v46, %v572_v61  ;;  %v9068_v41 = vsel %vm603_vm2, %v574_v43, %v575_v53  ;;  %v577_v46 = vrot.slane %v8624_v12, 7 }
  0x89   : > { %7029 = vmatmul.mubr.msk.bf16.vlgmr.msra.gmra.mrb[0].mxu0 %vm679_vm0, %v9007_v51  ;;  %v573_v51 = vrot.slane %v8612_v8, 7 }
  0x8a   : > { %7065 = vmatpush3.bf16.msra.mxu0 %v1297_v47  ;;  %7032 = vmatprep.mubr.msk.bf16.mxu0 %vm679_vm0, %v9011_v55  ;;  %v9044_v47 = vpack.c.bf16 %v9030_v57, %v8857_v60  ;;  %v9048_v55 = vpack.c.bf16 %v9034_v45, %v9038_v44 }
  0x8b   : > { %8329 = vmatprep.subr.msk.bf16.mxu0 %vm734_vm1, %v9020_v62  ;;  %v9060_v50 = vsel %vm603_vm2, %v572_v61, %v573_v51  ;;  %v9072_v40 = vsel %vm603_vm2, %v573_v51, %v574_v43  ;;  %v578_v61 = vrot.slane %v8627_v13, 7  ;;  %v9092_v43 = vsel %vm603_vm2, %v576_v37, %v577_v46 }
  0x8c   : > { %11789 = vst [vmem:[#allocation76_spill] sm:$0xff] %v9044_v47  ;;  %11790 = vst [vmem:[#allocation77_spill] sm:$0xff] %v9048_v55  ;;  %v9076_v38 = vpack.c.bf16 %v9060_v50, %v9064_v42  ;;  %v9080_v39 = vpack.c.bf16 %v9068_v41, %v9072_v40  ;;  %v9096_v51 = vsel %vm603_vm2, %v575_v53, %v576_v37  ;;  %v581_v37 = vrot.slane %v8636_v16, 7 }
  0x8d   : > { %11793 = vst [vmem:[#allocation80_spill] sm:$0xff] %v9092_v43  ;;  %v9104_v3 = vsel %vm603_vm2, %v577_v46, %v578_v61  ;;  %v582_v53 = vrot.slane %v8639_v17, 7 }
  0x8e   : > { %11791 = vst [vmem:[#allocation78_spill] sm:$0xff] %v9076_v38  ;;  %11792 = vst [vmem:[#allocation79_spill] sm:$0xff] %v9080_v39  ;;  %v9124_v46 = vsel %vm603_vm2, %v580_v49, %v581_v37 }
  0x8f   : > { %11795 = vst [vmem:[#allocation82_spill] sm:$0xff] %v9104_v3  ;;  %11798 = vst [vmem:[#allocation85_spill] sm:$0xff] %v9124_v46  ;;  %v9132_v56 = vsel %vm603_vm2, %v582_v53, %v583_v52 }
  0x90   : > { %11800 = vst [vmem:[#allocation87_spill] sm:$0xff] %v9132_v56 }
  0x91   : > { %7033 = vmatmul.mubr.msk.bf16.gmra.mrb[4].mxu0 %vm679_vm0, %v9044_v47 }
  0x92   : > { %7036 = vmatprep.mubr.msk.bf16.mxu0 %vm679_vm0, %v9048_v55  ;;  %v579_v55 = vrot.slane %v8630_v14, 7 }
  0x94   : > { %v9100_v47 = vsel %vm603_vm2, %v578_v61, %v579_v55  ;;  %v9128_v61 = vsel %vm603_vm2, %v579_v55, %v580_v49  ;;  %v585_v49 = vrot.slane %v8648_v20, 7  ;;  %v586_v55 = vrot.slane %v8651_v21, 7 }
  0x95   : > { %11794 = vst [vmem:[#allocation81_spill] sm:$0xff] %v9100_v47  ;;  %11799 = vst [vmem:[#allocation86_spill] sm:$0xff] %v9128_v61 }
  0x99   : > { %7037 = vmatmul.mubr.msk.bf16.gmra.mrb[8].mxu0 %vm679_vm0, %v9076_v38  ;;  %v9108_v38 = vpack.c.bf16 %v9092_v43, %v9096_v51  ;;  %v587_v43 = vrot.slane %v8654_v22, 7 }
  0x9a   : > { %7040 = vmatprep.mubr.msk.bf16.mxu0 %vm679_vm0, %v9080_v39  ;;  %v9112_v39 = vpack.c.bf16 %v9100_v47, %v9104_v3  ;;  %v9136_v47 = vsel %vm603_vm2, %v581_v37, %v582_v53  ;;  %v584_v3 = vrot.slane %v8645_v19, 7 }
  0x9b   : > { %11796 = vst [vmem:[#allocation83_spill] sm:$0xff] %v9108_v38  ;;  %11801 = vst [vmem:[#allocation88_spill] sm:$0xff] %v9136_v47 }
  0x9c   : > { %11797 = vst [vmem:[#allocation84_spill] sm:$0xff] %v9112_v39  ;;  %v9156_v37 = vsel %vm603_vm2, %v584_v3, %v585_v49  ;;  %v9160_v53 = vsel %vm603_vm2, %v583_v52, %v584_v3  ;;  %v589_v3 = vrot.slane %v8660_v24, 7  ;;  %v590_v52 = vrot.slane %v8663_v25, 7 }
  0x9d   : > { %11804 = vst [vmem:[#allocation91_spill] sm:$0xff] %v9156_v37  ;;  %11805 = vst [vmem:[#allocation92_spill] sm:$0xff] %v9160_v53 }
  0xa1   : > { %7041 = vmatmul.mubr.msk.bf16.gmra.mrb[12].mxu0 %vm679_vm0, %v9108_v38  ;;  %v9140_v38 = vpack.c.bf16 %v9124_v46, %v9128_v61  ;;  %v588_v46 = vrot.slane %v8657_v23, 7  ;;  %v591_v61 = vrot.slane %v8666_v26, 7 }
  0xa2   : > { %7044 = vmatprep.mubr.msk.bf16.mxu0 %vm679_vm0, %v9112_v39  ;;  %v9144_v39 = vpack.c.bf16 %v9132_v56, %v9136_v47  ;;  %v9164_v56 = vsel %vm603_vm2, %v586_v55, %v587_v43  ;;  %v9168_v47 = vsel %vm603_vm2, %v585_v49, %v586_v55 }
  0xa3   : > { %11802 = vst [vmem:[#allocation89_spill] sm:$0xff] %v9140_v38  ;;  %11806 = vst [vmem:[#allocation93_spill] sm:$0xff] %v9164_v56  ;;  %v9188_v49 = vsel %vm603_vm2, %v588_v46, %v589_v3  ;;  %v9192_v55 = vsel %vm603_vm2, %v587_v43, %v588_v46  ;;  %v593_v43 = vrot.slane %v8672_v28, 7  ;;  %v594_v46 = vrot.slane %v8675_v29, 7 }
  0xa4   : > { %11803 = vst [vmem:[#allocation90_spill] sm:$0xff] %v9144_v39  ;;  %11807 = vst [vmem:[#allocation94_spill] sm:$0xff] %v9168_v47 }
  0xa5   : > { %11810 = vst [vmem:[#allocation97_spill] sm:$0xff] %v9188_v49  ;;  %11811 = vst [vmem:[#allocation98_spill] sm:$0xff] %v9192_v55 }
  0xa9   : > { %7045 = vmatmul.mubr.msk.bf16.gmra.mrb[16].mxu0 %vm679_vm0, %v9140_v38  ;;  %v9172_v38 = vpack.c.bf16 %v9156_v37, %v9160_v53  ;;  %v592_v37 = vrot.slane %v8669_v27, 7  ;;  %v595_v53 = vrot.slane %v8678_v30, 7 }
  0xaa   : > { %7048 = vmatprep.mubr.msk.bf16.mxu0 %vm679_vm0, %v9144_v39  ;;  %v9176_v39 = vpack.c.bf16 %v9164_v56, %v9168_v47  ;;  %v9196_v56 = vsel %vm603_vm2, %v590_v52, %v591_v61  ;;  %v9200_v47 = vsel %vm603_vm2, %v589_v3, %v590_v52 }
  0xab   : > { %11808 = vst [vmem:[#allocation95_spill] sm:$0xff] %v9172_v38  ;;  %11812 = vst [vmem:[#allocation99_spill] sm:$0xff] %v9196_v56  ;;  %v9220_v3 = vsel %vm603_vm2, %v592_v37, %v593_v43  ;;  %v9224_v52 = vsel %vm603_vm2, %v591_v61, %v592_v37  ;;  %v1183_v37 = vrot.slane %v8690_v34, 1 }
  0xac   : > { %11809 = vst [vmem:[#allocation96_spill] sm:$0xff] %v9176_v39  ;;  %11813 = vst [vmem:[#allocation100_spill] sm:$0xff] %v9200_v47 }
  0xb1   : > { %7049 = vmatmul.mubr.msk.bf16.gmra.mrb[20].mxu0 %vm679_vm0, %v9172_v38  ;;  %v9204_v38 = vpack.c.bf16 %v9188_v49, %v9192_v55  ;;  %v596_v49 = vrot.slane %v8681_v31, 7  ;;  %v1184_v55 = vrot.slane %v8693_v35, 1  ;;  %v11821_v35 = vrot.slane %v8687_v33, 1 }
  0xb2   : > { %7052 = vmatprep.mubr.msk.bf16.mxu0 %vm679_vm0, %v9176_v39  ;;  %v9208_v39 = vpack.c.bf16 %v9196_v56, %v9200_v47  ;;  %v9228_v56 = vsel %vm603_vm2, %v594_v46, %v595_v53  ;;  %v9232_v47 = vsel %vm603_vm2, %v593_v43, %v594_v46  ;;  %v11819_v43 = vrot.slane %v8684_v32, 7 }
  0xb3   : > { %11814 = vst [vmem:[#allocation101_spill] sm:$0xff] %v9204_v38  ;;  %11816 = vst [vmem:[#allocation103_spill] sm:$0xff] %v9228_v56  ;;  %v9262_v61 = vsel %vm1185_vm3, %v1183_v37, %v1184_v55 }
  0xb4   : > { %11815 = vst [vmem:[#allocation102_spill] sm:$0xff] %v9208_v39  ;;  %v9254_v46 = vsel %vm603_vm2, %v596_v49, %v11819_v43  ;;  %11820 = vst [vmem:[#allocation106_spill] sm:$0xff] %v9262_v61  ;;  %v1149_v43 = vrot.slane %v8583_v0, 1 }
  0xb6   : > { %v9284_v34 = vsel %vm1185_vm3, %v1184_v55, %v1149_v43 }
  0xb7   : > { %11825 = vst [vmem:[#allocation110_spill] sm:$0xff] %v9284_v34 }
  0xb9   : > { %7053 = vmatmul.mubr.msk.bf16.gmra.mrb[24].mxu0 %vm679_vm0, %v9204_v38  ;;  %v9236_v38 = vpack.c.bf16 %v9220_v3, %v9224_v52 }
  0xba   : > { %7056 = vmatprep.mubr.msk.bf16.mxu0 %vm679_vm0, %v9208_v39  ;;  %v9240_v39 = vpack.c.bf16 %v9228_v56, %v9232_v47  ;;  %v9258_v56 = vsel %vm603_vm2, %v595_v53, %v596_v49  ;;  %v1150_v49 = vrot.slane %v8586_v1, 1 }
  0xbb   : > { %11817 = vst [vmem:[#allocation104_spill] sm:$0xff] %v9236_v38 }
  0xbc   : > { %11818 = vst [vmem:[#allocation105_spill] sm:$0xff] %v9240_v39 }
  0xc1   : > { %7057 = vmatmul.mubr.msk.bf16.gmra.mrb[28].mxu0 %vm679_vm0, %v9236_v38  ;;  %v9268_v38 = vsel %vm1185_vm3, %v11821_v35, %v1183_v37  ;;  %v9290_v35 = vsel %vm1185_vm3, %v1149_v43, %v1150_v49  ;;  %v11827_v37 = vrot.slane %v8589_v2, 1  ;;  %v1587_v43 = vsel %vm734_vm1, %v9020_v62, 0 }
  0xc2   : > { %7060 = vmatprep.mubr.msk.bf16.mxu0 %vm679_vm0, %v9240_v39  ;;  %11822 = vst [vmem:[#allocation107_spill] sm:$0xff] %v9268_v38  ;;  %v9272_v39 = vpack.c.bf16 %v9254_v46, %v9258_v56  ;;  %v9277_v53 = vpack.c.bf16 %v9262_v61, %v9268_v38  ;;  %11826 = vst [vmem:[#allocation111_spill] sm:$0xff] %v9290_v35  ;;  %v1155_v38 = vrot.slane %v8606_v6, 1  ;;  %v1156_v2 = vrot.slane %v8609_v7, 1 }
  0xc3   : > { %v9296_v61 = vsel %vm1185_vm3, %v1150_v49, %v11827_v37  ;;  %v9314_v49 = vld [vmem:[%s11443_s2 + $0x8] sm:$0x3]  ;;  %v11831_v37 = vrot.slane %v8600_v4, 1 }
  0xc4   : > { %11823 = vst [vmem:[#allocation108_spill] sm:$0xff] %v9272_v39  ;;  %11824 = vst [vmem:[#allocation109_spill] sm:$0xff] %v9277_v53  ;;  %v9304_v55 = vpack.c.bf16 %v8902_v59, %v9296_v61  ;;  %v1877_v54 = vsel %vm734_vm1, %v9314_v49, 0 }
  0xc5   : > { %11828 = vst [vmem:[#allocation112_spill] sm:$0xff] %v9296_v61  ;;  %v1159_v61 = vrot.slane %v8618_v10, 1 }
  0xc6   : > { %11830 = vst [vmem:[#allocation114_spill] sm:$0xff] %v9304_v55 }
  0xc9   : > { %7061 = vmatmul.mubr.msk.bf16.gmra.mrb[32].mxu0 %vm679_vm0, %v9272_v39  ;;  %v9300_v39 = vpack.c.bf16 %v9290_v35, %v9284_v34  ;;  %v9328_v34 = vsel %vm1185_vm3, %v1155_v38, %v1156_v2  ;;  %v1164_v35 = vrot.slane %v8633_v15, 1 }
  0xca   : > { %7066 = vmatprep.mubr.msk.bf16.mxu0 %vm679_vm0, %v9277_v53  ;;  %v1154_v53 = vrot.slane %v8603_v5, 1  ;;  %11833 = vst [vmem:[#allocation116_spill] sm:$0xff] %v9328_v34 }
  0xcb   : > { %11829 = vst [vmem:[#allocation113_spill] sm:$0xff] %v9300_v39 }
  0xcc   : > { %v9324_v62 = vsel %vm1185_vm3, %v11831_v37, %v1154_v53  ;;  %v9332_v59 = vsel %vm1185_vm3, %v1154_v53, %v1155_v38  ;;  %v1157_v37 = vrot.slane %v8612_v8, 1  ;;  %v1160_v38 = vrot.slane %v8621_v11, 1 }
  0xcd   : > { %11832 = vst [vmem:[#allocation115_spill] sm:$0xff] %v9324_v62  ;;  %11834 = vst [vmem:[#allocation117_spill] sm:$0xff] %v9332_v59 }
  0xd1   : > { %7067 = vmatmul.mubr.msk.bf16.vlgmr.msra.gmra.mrb[0].mxu0 %vm679_vm0, %v9300_v39  ;;  %v1158_v39 = vrot.slane %v8615_v9, 1 }
  0xd2   : > { %7103 = vmatpush3.bf16.msra.mxu0 %v1587_v43  ;;  %7070 = vmatprep.mubr.msk.bf16.mxu0 %vm679_vm0, %v9304_v55  ;;  %v9338_v43 = vpack.c.bf16 %v9324_v62, %v8908_v63  ;;  %v9342_v55 = vpack.c.bf16 %v9328_v34, %v9332_v59  ;;  %v9358_v34 = vsel %vm1185_vm3, %v1156_v2, %v1157_v37  ;;  %v1161_v62 = vrot.slane %v8624_v12, 1 }
  0xd3   : > { %8330 = vmatprep.subr.msk.bf16.mxu0 %vm734_vm1, %v9314_v49  ;;  %v9354_v53 = vsel %vm1185_vm3, %v1157_v37, %v1158_v39  ;;  %11838 = vst [vmem:[#allocation121_spill] sm:$0xff] %v9358_v34  ;;  %v9362_v63 = vsel %vm1185_vm3, %v1159_v61, %v1160_v38  ;;  %v9366_v59 = vsel %vm1185_vm3, %v1158_v39, %v1159_v61  ;;  %v1162_v2 = vrot.slane %v8627_v13, 1  ;;  %v11872_v49 = vld [vmem:[#allocation86_spill] sm:$0xff] }
  0xd4   : > { %11835 = vst [vmem:[#allocation118_spill] sm:$0xff] %v9338_v43  ;;  %11836 = vst [vmem:[#allocation119_spill] sm:$0xff] %v9342_v55  ;;  %v1163_v37 = vrot.slane %v8630_v14, 1  ;;  %v9390_v61 = vsel %vm1185_vm3, %v1160_v38, %v1161_v62  ;;  %v1167_v38 = vrot.slane %v8642_v18, 1 }
  0xd5   : > { %11837 = vst [vmem:[#allocation120_spill] sm:$0xff] %v9354_v53  ;;  %11839 = vst [vmem:[#allocation122_spill] sm:$0xff] %v9362_v63  ;;  %v9386_v39 = vsel %vm1185_vm3, %v1161_v62, %v1162_v2  ;;  %v1166_v62 = vrot.slane %v8639_v17, 1 }
  0xd6   : > { %11840 = vst [vmem:[#allocation123_spill] sm:$0xff] %v9366_v59  ;;  %11843 = vst [vmem:[#allocation126_spill] sm:$0xff] %v9386_v39 }
  0xd7   : > { %11844 = vst [vmem:[#allocation127_spill] sm:$0xff] %v9390_v61 }
  0xd9   : > { %7071 = vmatmul.mubr.msk.bf16.gmra.mrb[4].mxu0 %vm679_vm0, %v9338_v43  ;;  %v9370_v43 = vpack.c.bf16 %v9354_v53, %v9358_v34  ;;  %v1165_v53 = vrot.slane %v8636_v16, 1  ;;  %v1168_v34 = vrot.slane %v8645_v19, 1 }
  0xda   : > { %7074 = vmatprep.mubr.msk.bf16.mxu0 %vm679_vm0, %v9342_v55  ;;  %v9374_v55 = vpack.c.bf16 %v9362_v63, %v9366_v59  ;;  %v9394_v63 = vsel %vm1185_vm3, %v1163_v37, %v1164_v35  ;;  %v9398_v59 = vsel %vm1185_vm3, %v1162_v2, %v1163_v37 }
  0xdb   : > { %11841 = vst [vmem:[#allocation124_spill] sm:$0xff] %v9370_v43  ;;  %11845 = vst [vmem:[#allocation128_spill] sm:$0xff] %v9394_v63  ;;  %v9418_v2 = vsel %vm1185_vm3, %v1165_v53, %v1166_v62  ;;  %v9422_v37 = vsel %vm1185_vm3, %v1164_v35, %v1165_v53  ;;  %v1170_v35 = vrot.slane %v8651_v21, 1  ;;  %v1171_v53 = vrot.slane %v8654_v22, 1 }
  0xdc   : > { %11842 = vst [vmem:[#allocation125_spill] sm:$0xff] %v9374_v55  ;;  %11846 = vst [vmem:[#allocation129_spill] sm:$0xff] %v9398_v59 }
  0xdd   : > { %11849 = vst [vmem:[#allocation132_spill] sm:$0xff] %v9418_v2  ;;  %11850 = vst [vmem:[#allocation133_spill] sm:$0xff] %v9422_v37 }
  0xe1   : > { %7075 = vmatmul.mubr.msk.bf16.gmra.mrb[8].mxu0 %vm679_vm0, %v9370_v43  ;;  %v9402_v43 = vpack.c.bf16 %v9386_v39, %v9390_v61  ;;  %v1169_v39 = vrot.slane %v8648_v20, 1  ;;  %v1172_v61 = vrot.slane %v8657_v23, 1 }
  0xe2   : > { %7078 = vmatprep.mubr.msk.bf16.mxu0 %vm679_vm0, %v9374_v55  ;;  %v9406_v55 = vpack.c.bf16 %v9394_v63, %v9398_v59  ;;  %v9426_v63 = vsel %vm1185_vm3, %v1167_v38, %v1168_v34  ;;  %v9430_v59 = vsel %vm1185_vm3, %v1166_v62, %v1167_v38 }
  0xe3   : > { %11847 = vst [vmem:[#allocation130_spill] sm:$0xff] %v9402_v43  ;;  %11851 = vst [vmem:[#allocation134_spill] sm:$0xff] %v9426_v63  ;;  %v9450_v62 = vsel %vm1185_vm3, %v1169_v39, %v1170_v35  ;;  %v9454_v38 = vsel %vm1185_vm3, %v1168_v34, %v1169_v39  ;;  %v1174_v34 = vrot.slane %v8663_v25, 1  ;;  %v1175_v39 = vrot.slane %v8666_v26, 1 }
  0xe4   : > { %11848 = vst [vmem:[#allocation131_spill] sm:$0xff] %v9406_v55  ;;  %11852 = vst [vmem:[#allocation135_spill] sm:$0xff] %v9430_v59 }
  0xe5   : > { %11855 = vst [vmem:[#allocation138_spill] sm:$0xff] %v9450_v62  ;;  %11856 = vst [vmem:[#allocation139_spill] sm:$0xff] %v9454_v38 }
  0xe9   : > { %7079 = vmatmul.mubr.msk.bf16.gmra.mrb[12].mxu0 %vm679_vm0, %v9402_v43  ;;  %v9434_v43 = vpack.c.bf16 %v9418_v2, %v9422_v37  ;;  %v1173_v2 = vrot.slane %v8660_v24, 1  ;;  %v1176_v37 = vrot.slane %v8669_v27, 1 }
  0xea   : > { %7082 = vmatprep.mubr.msk.bf16.mxu0 %vm679_vm0, %v9406_v55  ;;  %v9438_v55 = vpack.c.bf16 %v9426_v63, %v9430_v59  ;;  %v9458_v63 = vsel %vm1185_vm3, %v1171_v53, %v1172_v61  ;;  %v9462_v59 = vsel %vm1185_vm3, %v1170_v35, %v1171_v53 }
  0xeb   : > { %11853 = vst [vmem:[#allocation136_spill] sm:$0xff] %v9434_v43  ;;  %11857 = vst [vmem:[#allocation140_spill] sm:$0xff] %v9458_v63  ;;  %v9482_v35 = vsel %vm1185_vm3, %v1173_v2, %v1174_v34  ;;  %v9486_v53 = vsel %vm1185_vm3, %v1172_v61, %v1173_v2  ;;  %v1178_v61 = vrot.slane %v8675_v29, 1  ;;  %v1179_v2 = vrot.slane %v8678_v30, 1 }
  0xec   : > { %11854 = vst [vmem:[#allocation137_spill] sm:$0xff] %v9438_v55  ;;  %11858 = vst [vmem:[#allocation141_spill] sm:$0xff] %v9462_v59 }
  0xed   : > { %11861 = vst [vmem:[#allocation144_spill] sm:$0xff] %v9482_v35 }
  0xf1   : > { %7083 = vmatmul.mubr.msk.bf16.gmra.mrb[16].mxu0 %vm679_vm0, %v9434_v43  ;;  %v9466_v43 = vpack.c.bf16 %v9450_v62, %v9454_v38  ;;  %v1177_v62 = vrot.slane %v8672_v28, 1  ;;  %v1180_v38 = vrot.slane %v8681_v31, 1 }
  0xf2   : > { %7086 = vmatprep.mubr.msk.bf16.mxu0 %vm679_vm0, %v9438_v55  ;;  %v9470_v55 = vpack.c.bf16 %v9458_v63, %v9462_v59  ;;  %v9490_v63 = vsel %vm1185_vm3, %v1175_v39, %v1176_v37  ;;  %v9494_v59 = vsel %vm1185_vm3, %v1174_v34, %v1175_v39 }
  0xf3   : > { %11859 = vst [vmem:[#allocation142_spill] sm:$0xff] %v9466_v43  ;;  %11862 = vst [vmem:[#allocation145_spill] sm:$0xff] %v9490_v63  ;;  %v9514_v34 = vsel %vm1185_vm3, %v1177_v62, %v1178_v61  ;;  %v9518_v39 = vsel %vm1185_vm3, %v1176_v37, %v1177_v62  ;;  %v11867_v37 = vrot.slane %v8687_v33, 1 }
  0xf4   : > { %11860 = vst [vmem:[#allocation143_spill] sm:$0xff] %v9470_v55  ;;  %11863 = vst [vmem:[#allocation146_spill] sm:$0xff] %v9494_v59 }
  0xf9   : > { %7087 = vmatmul.mubr.msk.bf16.gmra.mrb[20].mxu0 %vm679_vm0, %v9466_v43  ;;  %v9498_v43 = vpack.c.bf16 %v9482_v35, %v9486_v53  ;;  %v1181_v35 = vrot.slane %v8684_v32, 1 }
  0xfa   : > { %7090 = vmatprep.mubr.msk.bf16.mxu0 %vm679_vm0, %v9470_v55  ;;  %v9502_v55 = vpack.c.bf16 %v9490_v63, %v9494_v59  ;;  %v9522_v63 = vsel %vm1185_vm3, %v1179_v2, %v1180_v38  ;;  %v9526_v59 = vsel %vm1185_vm3, %v1178_v61, %v1179_v2 }
  0xfb   : > { %11864 = vst [vmem:[#allocation147_spill] sm:$0xff] %v9498_v43  ;;  %v9545_v62 = vsel %vm1185_vm3, %v1181_v35, %v11867_v37  ;;  %v9549_v61 = vsel %vm1185_vm3, %v1180_v38, %v1181_v35  ;;  %v1514_v37 = vpack.c.bf16 %v9038_v44, %v9030_v57  ;;  %v6299_v38 = vld [vmem:[%s11443_s2 + $0xa] sm:$0x3]  ;;  %v11868_v35 = vpack.c.bf16 %v8857_v60, %v8851_v58  ;;  %v11869_v60 = vld [vmem:[#allocation80_spill] sm:$0xff]  ;;  %v11871_v57 = vld [vmem:[#allocation81_spill] sm:$0xff] }
  0xfc   : > { %11865 = vst [vmem:[#allocation148_spill] sm:$0xff] %v9502_v55  ;;  %v9553_v2 = vpack.c.bf16 %v9545_v62, %v9549_v61  ;;  %v1515_v44 = vpack.c.bf16 %v9064_v42, %v9034_v45  ;;  %v1517_v58 = vpack.c.bf16 %v9096_v51, %v9068_v41  ;;  %v1519_v42 = vpack.c.bf16 %v11872_v49, %v11871_v57  ;;  %v11873_v45 = vld [vmem:[#allocation85_spill] sm:$0xff]  ;;  %v11877_v51 = vld [vmem:[#allocation91_spill] sm:$0xff] }
  0xfd   : > { %v11883_v49 = vld [vmem:[#allocation99_spill] sm:$0xff] }
 0x101   : > { %7091 = vmatmul.mubr.msk.bf16.gmra.mrb[24].mxu0 %vm679_vm0, %v9498_v43  ;;  %v9530_v43 = vpack.c.bf16 %v9514_v34, %v9518_v39 }
 0x102   : > { %7094 = vmatprep.mubr.msk.bf16.mxu0 %vm679_vm0, %v9502_v55  ;;  %v9534_v55 = vpack.c.bf16 %v9522_v63, %v9526_v59 }
 0x103   : > { %11866 = vst [vmem:[#allocation149_spill] sm:$0xff] %v9530_v43 }
 0x109   : > { %7095 = vmatmul.mubr.msk.bf16.gmra.mrb[28].mxu0 %vm679_vm0, %v9530_v43  ;;  %v1512_v43 = vpack.c.bf16 %v9003_v48, %v8997_v36  ;;  %v1516_v48 = vpack.c.bf16 %v9072_v40, %v9060_v50  ;;  %v11870_v36 = vld [vmem:[#allocation82_spill] sm:$0xff]  ;;  %v11875_v50 = vld [vmem:[#allocation87_spill] sm:$0xff] }
 0x10a   : > { %7098 = vmatprep.mubr.msk.bf16.mxu0 %vm679_vm0, %v9534_v55 }
 0x111   : > { %7099 = vmatmul.mubr.msk.bf16.gmra.mrb[32].mxu0 %vm679_vm0, %v9553_v2 }
 0x112   : > { %7104 = vmatprep.mubr.msk.bf16.mxu0 %vm679_vm0, %v1512_v43  ;;  %v11874_v43 = vld [vmem:[#allocation88_spill] sm:$0xff] }
 0x113   : > { %v1520_v40 = vpack.c.bf16 %v11874_v43, %v11873_v45  ;;  %v1526_v45 = vpack.c.bf16 %v9232_v47, %v9220_v3  ;;  %v11884_v43 = vld [vmem:[#allocation103_spill] sm:$0xff]  ;;  %v1802_v47 = vpack.c.bf16 %v8586_v1, %v8583_v0  ;;  %v11888_v3 = vld [vmem:[#allocation9_spill] sm:$0xff]  ;;  %v1805_v0 = vpack.c.bf16 %v8609_v7, %v8606_v6 }
 0x114   : > { %v1806_v1 = vpack.c.bf16 %v8615_v9, %v8612_v8  ;;  %v1809_v6 = vpack.c.bf16 %v8633_v15, %v8630_v14  ;;  %v1810_v7 = vpack.c.bf16 %v8639_v17, %v8636_v16  ;;  %v1811_v8 = vpack.c.bf16 %v8645_v19, %v8642_v18  ;;  %v11890_v16 = vld [vmem:[#allocation11_spill] sm:$0xff]  ;;  %v11891_v17 = vld [vmem:[#allocation12_spill] sm:$0xff] }
 0x115   : > { %v1812_v9 = vpack.c.bf16 %v8651_v21, %v8648_v20  ;;  %v1817_v14 = vpack.c.bf16 %v8681_v31, %v8678_v30  ;;  %v1818_v15 = vpack.c.bf16 %v8687_v33, %v8684_v32  ;;  %v1819_v18 = vpack.c.bf16 %v11891_v17, %v11890_v16  ;;  %v11892_v19 = vld [vmem:[#allocation111_spill] sm:$0xff]  ;;  %v11893_v20 = vld [vmem:[#allocation112_spill] sm:$0xff]  ;;  %v11900_v31 = vld [vmem:[#allocation121_spill] sm:$0xff] }
 0x116   : > { %v2092_v21 = vpack.c.bf16 %v11893_v20, %v11892_v19  ;;  %v11899_v30 = vld [vmem:[#allocation116_spill] sm:$0xff]  ;;  %v11930_v16 = vld [vmem:[#allocation95_spill] sm:$0xff]  ;;  %v8495_v19 = vmov 0   ;;  %v11933_v20 = vld [vmem:[#allocation14_spill] sm:$0xff] }
 0x117   : > { %v2095_v32 = vpack.c.bf16 %v11900_v31, %v11899_v30  ;;  %v11901_v33 = vld [vmem:[#allocation120_spill] sm:$0xff]  ;;  %8377 = vset.pattern.permute.xlu0 %v8495_v19  ;;  %8378 = vset.pattern.permute.xlu1 %v8495_v19  ;;  %v11943_v30 = vld [vmem:[#allocation105_spill] sm:$0xff]  ;;  %v11990_v19 = vld [vmem:[#allocation71_spill] sm:$0xff] }
 0x118   : > { %v11931_v17 = vld [vmem:[#allocation96_spill] sm:$0xff]  ;;  %3237 = vperm.xlu0 %8377, %v11933_v20   ;;  %v11991_v20 = vld [vmem:[#allocation49_spill] sm:$0xff] }
 0x119   : > { %7105 = vmatmul.mubr.msk.bf16.vlgmr.msra.gmra.mrb[0].mxu0 %vm679_vm0, %v11868_v35  ;;  %v11878_v35 = vld [vmem:[#allocation94_spill] sm:$0xff]  ;;  %v11944_v31 = vld [vmem:[#allocation108_spill] sm:$0xff] }
 0x11a   : > { %7141 = vmatpush3.bf16.msra.mxu0 %v1877_v54  ;;  %7108 = vmatprep.mubr.msk.bf16.mxu0 %vm679_vm0, %v1514_v37  ;;  %v1518_v54 = vpack.c.bf16 %v11870_v36, %v11869_v60  ;;  %v11876_v37 = vld [vmem:[#allocation92_spill] sm:$0xff]  ;;  %v11881_v36 = vld [vmem:[#allocation97_spill] sm:$0xff] }
 0x11b   : > { %8331 = vmatprep.subr.msk.bf16.mxu0 %vm734_vm1, %v6299_v38  ;;  %v1521_v41 = vpack.c.bf16 %v11876_v37, %v11875_v50  ;;  %v11885_v50 = vld [vmem:[#allocation70_spill] sm:$0xff] }
 0x11c   : > { %v1528_v37 = vpack.c.bf16 %v11885_v50, %v9254_v46  ;;  %v1804_v46 = vpack.c.bf16 %v8603_v5, %v8600_v4  ;;  %v1807_v4 = vpack.c.bf16 %v8621_v11, %v8618_v10  ;;  %v1808_v5 = vpack.c.bf16 %v8627_v13, %v8624_v12  ;;  %v11909_v50 = vld [vmem:[#allocation132_spill] sm:$0xff] }
 0x11d   : > { %v1813_v10 = vpack.c.bf16 %v8657_v23, %v8654_v22  ;;  %v1814_v11 = vpack.c.bf16 %v8663_v25, %v8660_v24  ;;  %v1815_v12 = vpack.c.bf16 %v8669_v27, %v8666_v26  ;;  %v1816_v13 = vpack.c.bf16 %v8675_v29, %v8672_v28  ;;  %v11894_v22 = vld [vmem:[#allocation115_spill] sm:$0xff]  ;;  %v11895_v23 = vld [vmem:[#allocation117_spill] sm:$0xff]  ;;  %v6337_v26 = vld [vmem:[%s11443_s2 + $0xe] sm:$0x3] }
 0x11e   : > { %v2094_v24 = vpack.c.bf16 %v11895_v23, %v11894_v22  ;;  %v11896_v27 = vld [vmem:[#allocation60_spill] sm:$0xff]  ;;  %v11897_v28 = vld [vmem:[#allocation59_spill] sm:$0xff]  ;;  %v11936_v23 = vld [vmem:[#allocation17_spill] sm:$0xff] }
 0x11f   : > { %v11898_v29 = vpack.c.bf16 %v11896_v27, %v11897_v28  ;;  %v11935_v22 = vld [vmem:[#allocation15_spill] sm:$0xff]  ;;  %v11941_v28 = vld [vmem:[#allocation20_spill] sm:$0xff] }
 0x120   : > { %3242 = vperm.xlu0 %8377, %v11935_v22   ;;  %v11940_v27 = vld [vmem:[#allocation19_spill] sm:$0xff]  ;;  %v11993_v22 = vld [vmem:[#allocation52_spill] sm:$0xff] }
 0x121   : > { %7109 = vmatmul.mubr.msk.bf16.gmra.mrb[4].mxu0 %vm679_vm0, %v1515_v44  ;;  %v1522_v44 = vpack.c.bf16 %v11878_v35, %v11877_v51  ;;  %v11887_v51 = vld [vmem:[#allocation73_spill] sm:$0xff]  ;;  %v11889_v35 = vld [vmem:[#allocation10_spill] sm:$0xff] }
 0x122   : > { %7112 = vmatprep.mubr.msk.bf16.mxu0 %vm679_vm0, %v1516_v48  ;;  %v11879_v48 = vld [vmem:[#allocation93_spill] sm:$0xff] }
 0x129   : > { %7113 = vmatmul.mubr.msk.bf16.gmra.mrb[8].mxu0 %vm679_vm0, %v1517_v58  ;;  %v11880_v58 = vld [vmem:[#allocation98_spill] sm:$0xff] }
 0x12a   : > { %7116 = vmatprep.mubr.msk.bf16.mxu0 %vm679_vm0, %v1518_v54  ;;  %v1523_v60 = vpack.c.bf16 %v11880_v58, %v11879_v48  ;;  %v11882_v54 = vld [vmem:[#allocation100_spill] sm:$0xff]  ;;  %v6318_v48 = vld [vmem:[%s11443_s2 + $0xc] sm:$0x3] }
 0x12b   : > { %v1524_v57 = vpack.c.bf16 %v11882_v54, %v11881_v36  ;;  %v2385_v25 = vsel %vm734_vm1, %v6318_v48, 0  ;;  %v11904_v36 = vld [vmem:[#allocation127_spill] sm:$0xff] }
 0x131   : > { %7117 = vmatmul.mubr.msk.bf16.gmra.mrb[12].mxu0 %vm679_vm0, %v1519_v42  ;;  %v1525_v42 = vpack.c.bf16 %v9224_v52, %v11883_v49  ;;  %v11906_v49 = vld [vmem:[#allocation129_spill] sm:$0xff] }
 0x132   : > { %7120 = vmatprep.mubr.msk.bf16.mxu0 %vm679_vm0, %v1520_v40  ;;  %v1527_v40 = vpack.c.bf16 %v9258_v56, %v11884_v43  ;;  %v1803_v56 = vpack.c.bf16 %v11889_v35, %v11888_v3  ;;  %v11908_v43 = vld [vmem:[#allocation133_spill] sm:$0xff]  ;;  %v11913_v3 = vld [vmem:[#allocation138_spill] sm:$0xff] }
 0x133   : > { %v11914_v35 = vld [vmem:[#allocation141_spill] sm:$0xff] }
 0x139   : > { %7121 = vmatmul.mubr.msk.bf16.gmra.mrb[16].mxu0 %vm679_vm0, %v1521_v41  ;;  %v11886_v41 = vld [vmem:[#allocation69_spill] sm:$0xff] }
 0x13a   : > { %7124 = vmatprep.mubr.msk.bf16.mxu0 %vm679_vm0, %v1522_v44  ;;  %v1529_v52 = vpack.c.bf16 %v11887_v51, %v11886_v41  ;;  %v2167_v44 = vsel %vm734_vm1, %v6299_v38, 0  ;;  %v11902_v38 = vld [vmem:[#allocation123_spill] sm:$0xff]  ;;  %v11911_v51 = vld [vmem:[#allocation134_spill] sm:$0xff] }
 0x13b   : > { %v2096_v58 = vpack.c.bf16 %v11902_v38, %v11901_v33  ;;  %v11946_v33 = vld [vmem:[#allocation23_spill] sm:$0xff]  ;;  %v11947_v38 = vld [vmem:[#allocation24_spill] sm:$0xff] }
 0x141   : > { %7125 = vmatmul.mubr.msk.bf16.gmra.mrb[20].mxu0 %vm679_vm0, %v1523_v60  ;;  %v11903_v60 = vld [vmem:[#allocation122_spill] sm:$0xff] }
 0x142   : > { %7128 = vmatprep.mubr.msk.bf16.mxu0 %vm679_vm0, %v1524_v57  ;;  %v2097_v54 = vpack.c.bf16 %v11904_v36, %v11903_v60  ;;  %v11905_v57 = vld [vmem:[#allocation126_spill] sm:$0xff]  ;;  %v11949_v60 = vld [vmem:[#allocation72_spill] sm:$0xff] }
 0x143   : > { %v11950_v36 = vld [vmem:[#allocation74_spill] sm:$0xff] }
 0x149   : > { %7129 = vmatmul.mubr.msk.bf16.gmra.mrb[24].mxu0 %vm679_vm0, %v1525_v42  ;;  %v2098_v42 = vpack.c.bf16 %v11906_v49, %v11905_v57  ;;  %v11952_v57 = vld [vmem:[#allocation27_spill] sm:$0xff]  ;;  %v11953_v49 = vld [vmem:[#allocation28_spill] sm:$0xff] }
 0x14a   : > { %7132 = vmatprep.mubr.msk.bf16.mxu0 %vm679_vm0, %v1526_v45  ;;  %v11907_v45 = vld [vmem:[#allocation128_spill] sm:$0xff] }
 0x151   : > { %7133 = vmatmul.mubr.msk.bf16.gmra.mrb[28].mxu0 %vm679_vm0, %v1527_v40  ;;  %v2099_v40 = vpack.c.bf16 %v11908_v43, %v11907_v45  ;;  %v11955_v45 = vld [vmem:[#allocation75_spill] sm:$0xff]  ;;  %v11956_v43 = vld [vmem:[#allocation53_spill] sm:$0xff] }
 0x152   : > { %7136 = vmatprep.mubr.msk.bf16.mxu0 %vm679_vm0, %v1528_v37  ;;  %v11910_v37 = vld [vmem:[#allocation135_spill] sm:$0xff] }
 0x153   : > { %v2100_v41 = vpack.c.bf16 %v11910_v37, %v11909_v50  ;;  %v11958_v50 = vld [vmem:[#allocation31_spill] sm:$0xff] }
 0x159   : > { %7137 = vmatmul.mubr.msk.bf16.gmra.mrb[32].mxu0 %vm679_vm0, %v1529_v52  ;;  %v11912_v52 = vld [vmem:[#allocation139_spill] sm:$0xff] }
 0x15a   : > { %7142 = vmatprep.mubr.msk.bf16.mxu0 %vm679_vm0, %v1802_v47  ;;  %v2101_v47 = vpack.c.bf16 %v11912_v52, %v11911_v51  ;;  %v11960_v51 = vld [vmem:[#allocation33_spill] sm:$0xff]  ;;  %v11961_v52 = vld [vmem:[#allocation54_spill] sm:$0xff] }
 0x161   : > { %7143 = vmatmul.mubr.msk.bf16.vlgmr.msra.gmra.mrb[0].mxu0 %vm679_vm0, %v1803_v56  ;;  %v2102_v56 = vpack.c.bf16 %v11914_v35, %v11913_v3  ;;  %v11963_v3 = vld [vmem:[#allocation34_spill] sm:$0xff]  ;;  %v11964_v35 = vld [vmem:[#allocation35_spill] sm:$0xff] }
 0x162   : > { %7179 = vmatpush3.bf16.msra.mxu0 %v2167_v44  ;;  %7146 = vmatprep.mubr.msk.bf16.mxu0 %vm679_vm0, %v1804_v46  ;;  %v11915_v46 = vld [vmem:[#allocation140_spill] sm:$0xff] }
 0x163   : > { %8332 = vmatprep.subr.msk.bf16.mxu0 %vm734_vm1, %v6318_v48  ;;  %v2103_v44 = vpack.c.bf16 %v9486_v53, %v11915_v46  ;;  %v11916_v48 = vld [vmem:[#allocation144_spill] sm:$0xff]  ;;  %v2107_v53 = vpack.c.bf16 %v9549_v61, %v9522_v63  ;;  %v6356_v63 = vld [vmem:[%s11443_s2 + $0x10] sm:$0x3]  ;;  %v11923_v61 = vld [vmem:[#allocation77_spill] sm:$0xff] }
 0x164   : > { %v2821_v37 = vsel %vm734_vm1, %v6356_v63, 0  ;;  %v11966_v46 = vld [vmem:[#allocation37_spill] sm:$0xff] }
 0x169   : > { %7147 = vmatmul.mubr.msk.bf16.gmra.mrb[4].mxu0 %vm679_vm0, %v1805_v0  ;;  %v11917_v0 = vld [vmem:[#allocation146_spill] sm:$0xff] }
 0x16a   : > { %7150 = vmatprep.mubr.msk.bf16.mxu0 %vm679_vm0, %v1806_v1  ;;  %v2104_v1 = vpack.c.bf16 %v11917_v0, %v11916_v48  ;;  %v11968_v48 = vld [vmem:[#allocation57_spill] sm:$0xff] }
 0x16b   : > { %v8379_v0 = vld [vmem:[%s11446_s5 + $0x40] sm:$0xff]  }
 0x16c   : > { %7798 = vmatprep.subr.bf16.mxu1 %v8379_v0 }
 0x16d   : > { %7806 = vmatpush3.bf16.msra.mxu1 %v8379_v0 }
 0x171   : > { %7151 = vmatmul.mubr.msk.bf16.gmra.mrb[8].mxu0 %vm679_vm0, %v1807_v4  ;;  %v11918_v4 = vld [vmem:[#allocation145_spill] sm:$0xff] }
 0x172   : > { %7154 = vmatprep.mubr.msk.bf16.mxu0 %vm679_vm0, %v1808_v5  ;;  %v2105_v5 = vpack.c.bf16 %v9518_v39, %v11918_v4  ;;  %v11970_v4 = vld [vmem:[#allocation39_spill] sm:$0xff] }
 0x179   : > { %7155 = vmatmul.mubr.msk.bf16.gmra.mrb[12].mxu0 %vm679_vm0, %v1809_v6  ;;  %v2106_v6 = vpack.c.bf16 %v9526_v59, %v9514_v34  ;;  %v11922_v59 = vld [vmem:[#allocation76_spill] sm:$0xff]  ;;  %v2603_v34 = vsel %vm734_vm1, %v6337_v26, 0 }
 0x17a   : > { %7158 = vmatprep.mubr.msk.bf16.mxu0 %vm679_vm0, %v1810_v7  ;;  %v11919_v7 = vld [vmem:[#allocation107_spill] sm:$0xff] }
 0x181   : > { %7159 = vmatmul.mubr.msk.bf16.gmra.mrb[16].mxu0 %vm679_vm0, %v1811_v8  ;;  %v2108_v8 = vpack.c.bf16 %v11919_v7, %v9545_v62  ;;  %v11924_v62 = vld [vmem:[#allocation78_spill] sm:$0xff] }
 0x182   : > { %7162 = vmatprep.mubr.msk.bf16.mxu0 %vm679_vm0, %v1812_v9  ;;  %v11920_v9 = vld [vmem:[#allocation106_spill] sm:$0xff] }
 0x183   : > { %v11973_v7 = vld [vmem:[#allocation58_spill] sm:$0xff] }
 0x189   : > { %7163 = vmatmul.mubr.msk.bf16.gmra.mrb[20].mxu0 %vm679_vm0, %v1813_v10  ;;  %v11921_v10 = vld [vmem:[#allocation110_spill] sm:$0xff] }
 0x18a   : > { %7166 = vmatprep.mubr.msk.bf16.mxu0 %vm679_vm0, %v1814_v11  ;;  %v2109_v39 = vpack.c.bf16 %v11921_v10, %v11920_v9  ;;  %v11925_v11 = vld [vmem:[#allocation79_spill] sm:$0xff]  ;;  %v11975_v10 = vld [vmem:[#allocation42_spill] sm:$0xff] }
 0x18b   : > { %v8381_v9 = vld [vmem:[%s11446_s5 + $0x50] sm:$0xff]  }
 0x191   : > { %7167 = vmatmul.mubr.msk.bf16.gmra.mrb[24].mxu0 %vm679_vm0, %v1815_v12  ;;  %v11926_v12 = vld [vmem:[#allocation83_spill] sm:$0xff] }
 0x192   : > { %7170 = vmatprep.mubr.msk.bf16.mxu0 %vm679_vm0, %v1816_v13  ;;  %v11927_v13 = vld [vmem:[#allocation84_spill] sm:$0xff] }
 0x199   : > { %7171 = vmatmul.mubr.msk.bf16.gmra.mrb[28].mxu0 %vm679_vm0, %v1817_v14  ;;  %v11928_v14 = vld [vmem:[#allocation89_spill] sm:$0xff] }
 0x19a   : > { %7174 = vmatprep.mubr.msk.bf16.mxu0 %vm679_vm0, %v1818_v15  ;;  %v11929_v15 = vld [vmem:[#allocation90_spill] sm:$0xff] }
 0x1a1   : > { %7175 = vmatmul.mubr.msk.bf16.gmra.mrb[32].mxu0 %vm679_vm0, %v1819_v18  ;;  %v11932_v18 = vld [vmem:[#allocation101_spill] sm:$0xff] }
 0x1a2   : > { %7180 = vmatprep.mubr.msk.bf16.mxu0 %vm679_vm0, %v2092_v21  ;;  %v11934_v21 = vld [vmem:[#allocation16_spill] sm:$0xff] }
 0x1a3   : > { %3247 = vperm.xlu1 %8378, %v11934_v21   ;;  %v11992_v21 = vld [vmem:[#allocation50_spill] sm:$0xff] }
 0x1a7   : > { %3252 = vperm.xlu1 %8378, %v11936_v23   ;;  %v11994_v23 = vld [vmem:[#allocation118_spill] sm:$0xff] }
 0x1a9   : > { %7181 = vmatmul.mubr.msk.bf16.vlgmr.msra.gmra.mrb[0].mxu0 %vm679_vm0, %v11898_v29  ;;  %v11942_v29 = vld [vmem:[#allocation21_spill] sm:$0xff] }
 0x1aa   : > { %7217 = vmatpush3.bf16.msra.mxu0 %v2385_v25  ;;  %7184 = vmatprep.mubr.msk.bf16.mxu0 %vm679_vm0, %v2094_v24  ;;  %v11937_v24 = vld [vmem:[#allocation102_spill] sm:$0xff]  ;;  %v11938_v25 = vld [vmem:[#allocation104_spill] sm:$0xff] }
 0x1ab   : > { %8333 = vmatprep.subr.msk.bf16.mxu0 %vm734_vm1, %v6337_v26  ;;  %v11939_v26 = vld [vmem:[#allocation18_spill] sm:$0xff]  ;;  %3262 = vperm.xlu1 %8378, %v11940_v27  }
 0x1ac   : > { %3257 = vperm.xlu0 %8377, %v11939_v26   ;;  %v11997_v26 = vld [vmem:[#allocation125_spill] sm:$0xff]  ;;  %v11998_v27 = vld [vmem:[#allocation130_spill] sm:$0xff] }
 0x1af   : > { %3272 = vperm.xlu1 %8378, %v11942_v29   ;;  %v12000_v29 = vld [vmem:[#allocation136_spill] sm:$0xff] }
 0x1b0   : > { %3267 = vperm.xlu0 %8377, %v11941_v28   ;;  %v11999_v28 = vld [vmem:[#allocation131_spill] sm:$0xff] }
 0x1b1   : > { %7185 = vmatmul.mubr.msk.bf16.gmra.mrb[4].mxu0 %vm679_vm0, %v2095_v32  ;;  %v11945_v32 = vld [vmem:[#allocation22_spill] sm:$0xff] }
 0x1b2   : > { %7188 = vmatprep.mubr.msk.bf16.mxu0 %vm679_vm0, %v2096_v58  ;;  %v11948_v58 = vld [vmem:[#allocation25_spill] sm:$0xff] }
 0x1b3   : > { %3282 = vperm.xlu1 %8378, %v11946_v33   ;;  %v12004_v33 = vld [vmem:[#allocation147_spill] sm:$0xff] }
 0x1b4   : > { %3277 = vperm.xlu0 %8377, %v11945_v32   ;;  %v12003_v32 = vld [vmem:[#allocation143_spill] sm:$0xff] }
 0x1b7   : > { %3292 = vperm.xlu1 %8378, %v11948_v58   ;;  %v12006_v58 = vld [vmem:[#allocation149_spill] sm:$0xff] }
 0x1b8   : > { %3287 = vperm.xlu0 %8377, %v11947_v38   ;;  %v12005_v38 = vld [vmem:[#allocation148_spill] sm:$0xff] }
 0x1b9   : > { %7189 = vmatmul.mubr.msk.bf16.gmra.mrb[8].mxu0 %vm679_vm0, %v2097_v54  ;;  %v11951_v54 = vld [vmem:[#allocation26_spill] sm:$0xff] }
 0x1ba   : > { %7192 = vmatprep.mubr.msk.bf16.mxu0 %vm679_vm0, %v2098_v42  ;;  %v11954_v42 = vld [vmem:[#allocation29_spill] sm:$0xff] }
 0x1bb   : > { %3302 = vperm.xlu1 %8378, %v11952_v57   ;;  %v8382_v57 = vld [vmem:[%s11446_s5 + $0x58] sm:$0xff]  }
 0x1bc   : > { %3297 = vperm.xlu0 %8377, %v11951_v54   ;;  %v12009_v54 = vld [vmem:[#allocation114_spill] sm:$0xff] }
 0x1bf   : > { %3312 = vperm.xlu1 %8378, %v11954_v42   ;;  %v8386_v42 = vld [vmem:[%s11446_s5 + $0x78] sm:$0xff]  }
 0x1c0   : > { %3307 = vperm.xlu0 %8377, %v11953_v49   ;;  %v8385_v49 = vld [vmem:[%s11446_s5 + $0x70] sm:$0xff]  }
 0x1c1   : > { %7193 = vmatmul.mubr.msk.bf16.gmra.mrb[12].mxu0 %vm679_vm0, %v2099_v40  ;;  %v11957_v40 = vld [vmem:[#allocation30_spill] sm:$0xff] }
 0x1c2   : > { %7196 = vmatprep.mubr.msk.bf16.mxu0 %vm679_vm0, %v2100_v41  ;;  %v11959_v41 = vld [vmem:[#allocation32_spill] sm:$0xff] }
 0x1c3   : > { %3322 = vperm.xlu1 %8378, %v11958_v50  }
 0x1c4   : > { %3317 = vperm.xlu0 %8377, %v11957_v40  }
 0x1c7   : > { %3332 = vperm.xlu1 %8378, %v11960_v51  }
 0x1c8   : > { %3327 = vperm.xlu0 %8377, %v11959_v41  }
 0x1c9   : > { %7197 = vmatmul.mubr.msk.bf16.gmra.mrb[16].mxu0 %vm679_vm0, %v2101_v47  ;;  %v11962_v47 = vld [vmem:[#allocation55_spill] sm:$0xff] }
 0x1ca   : > { %7200 = vmatprep.mubr.msk.bf16.mxu0 %vm679_vm0, %v2102_v56  ;;  %v11965_v56 = vld [vmem:[#allocation36_spill] sm:$0xff] }
 0x1cb   : > { %3342 = vperm.xlu1 %8378, %v11964_v35  }
 0x1cc   : > { %3337 = vperm.xlu0 %8377, %v11963_v3  }
 0x1cf   : > { %3352 = vperm.xlu1 %8378, %v11966_v46  }
 0x1d0   : > { %3347 = vperm.xlu0 %8377, %v11965_v56  }
 0x1d1   : > { %7201 = vmatmul.mubr.msk.bf16.gmra.mrb[20].mxu0 %vm679_vm0, %v2103_v44  ;;  %v11967_v44 = vld [vmem:[#allocation56_spill] sm:$0xff] }
 0x1d2   : > { %7204 = vmatprep.mubr.msk.bf16.mxu0 %vm679_vm0, %v2104_v1  ;;  %v11969_v1 = vld [vmem:[#allocation38_spill] sm:$0xff] }
 0x1d3   : > { %3362 = vperm.xlu1 %8378, %v11970_v4   ;;  %v9944_v4 = vld [vmem:[%s11444_s3] ss:$0 sm:$0xff] }
 0x1d4   : > { %3357 = vperm.xlu0 %8377, %v11969_v1  }
 0x1d9   : > { %7205 = vmatmul.mubr.msk.bf16.gmra.mrb[24].mxu0 %vm679_vm0, %v2105_v5  ;;  %v8380_v5 = vld [vmem:[%s11446_s5 + $0x48] sm:$0xff]  }
 0x1da   : > { %7208 = vmatprep.mubr.msk.bf16.mxu0 %vm679_vm0, %v2106_v6  ;;  %v11971_v6 = vld [vmem:[#allocation40_spill] sm:$0xff]  ;;  %7799 = vmatprep.subr.bf16.mxu1 %v8380_v5 }
 0x1db   : > { %3367 = vperm.xlu0 %8377, %v11971_v6   ;;  %7807 = vmatpush3.bf16.msra.mxu1 %v8380_v5 }
 0x1dc   : > { %7800 = vmatprep.subr.bf16.mxu1 %v8381_v9 }
 0x1df   : > { %3377 = vperm.xlu0 %8377, %v11975_v10   ;;  %7808 = vmatpush3.bf16.msra.mxu1 %v8381_v9 }
 0x1e0   : > { %7801 = vmatprep.subr.bf16.mxu1 %v8382_v57 }
 0x1e1   : > { %7209 = vmatmul.mubr.msk.bf16.gmra.mrb[28].mxu0 %vm679_vm0, %v2107_v53  ;;  %v11972_v53 = vld [vmem:[#allocation41_spill] sm:$0xff] }
 0x1e2   : > { %7212 = vmatprep.mubr.msk.bf16.mxu0 %vm679_vm0, %v2108_v8  ;;  %3372 = vperm.xlu1 %8378, %v11972_v53   ;;  %v11974_v8 = vld [vmem:[#allocation61_spill] sm:$0xff] }
 0x1e3   : > { %7809 = vmatpush3.bf16.msra.mxu1 %v8382_v57  ;;  %v9951_v53 = vld [vmem:[%s11445_s4] ss:$0 sm:$0xff] }
 0x1e9   : > { %7213 = vmatmul.mubr.msk.bf16.gmra.mrb[32].mxu0 %vm679_vm0, %v2109_v39  ;;  %v11976_v39 = vld [vmem:[#allocation43_spill] sm:$0xff] }
 0x1ea   : > { %7218 = vmatprep.mubr.msk.bf16.mxu0 %vm679_vm0, %v11922_v59  ;;  %3382 = vperm.xlu1 %8378, %v11976_v39   ;;  %v11977_v59 = vld [vmem:[#allocation44_spill] sm:$0xff] }
 0x1eb   : > { %3387 = vperm.xlu0 %8377, %v11977_v59  }
 0x1f1   : > { %7219 = vmatmul.mubr.msk.bf16.vlgmr.msra.gmra.mrb[0].mxu0 %vm679_vm0, %v11923_v61  ;;  %v11980_v61 = vld [vmem:[#allocation63_spill] sm:$0xff] }
 0x1f2   : > { %7255 = vmatpush3.bf16.msra.mxu0 %v2603_v34  ;;  %7222 = vmatprep.mubr.msk.bf16.mxu0 %vm679_vm0, %v11924_v62  ;;  %v11978_v34 = vld [vmem:[#allocation45_spill] sm:$0xff]  ;;  %v11981_v62 = vld [vmem:[#allocation46_spill] sm:$0xff] }
 0x1f3   : > { %8334 = vmatprep.subr.msk.bf16.mxu0 %vm734_vm1, %v6356_v63  ;;  %3392 = vperm.xlu1 %8378, %v11978_v34   ;;  %v11979_v63 = vld [vmem:[#allocation62_spill] sm:$0xff] }
 0x1f4   : > { %3397 = vperm.xlu0 %8377, %v11981_v62  }
 0x1f9   : > { %7223 = vmatmul.mubr.msk.bf16.gmra.mrb[4].mxu0 %vm679_vm0, %v11925_v11  ;;  %v11982_v11 = vld [vmem:[#allocation47_spill] sm:$0xff] }
 0x1fa   : > { %7226 = vmatprep.mubr.msk.bf16.mxu0 %vm679_vm0, %v11926_v12  ;;  %3402 = vperm.xlu1 %8378, %v11982_v11   ;;  %v11983_v12 = vld [vmem:[#allocation13_spill] sm:$0xff] }
 0x1fb   : > { %3232 = vperm.xlu0 %8377, %v11983_v12  }
 0x201   : > { %7227 = vmatmul.mubr.msk.bf16.gmra.mrb[8].mxu0 %vm679_vm0, %v11927_v13  ;;  %v11984_v13 = vld [vmem:[#allocation48_spill] sm:$0xff] }
 0x202   : > { %7230 = vmatprep.mubr.msk.bf16.mxu0 %vm679_vm0, %v11928_v14  ;;  %3407 = vperm.xlu1 %8378, %v11984_v13   ;;  %v11985_v14 = vld [vmem:[#allocation64_spill] sm:$0xff] }
 0x209   : > { %7231 = vmatmul.mubr.msk.bf16.gmra.mrb[12].mxu0 %vm679_vm0, %v11929_v15  ;;  %v11986_v15 = vld [vmem:[#allocation65_spill] sm:$0xff] }
 0x20a   : > { %7234 = vmatprep.mubr.msk.bf16.mxu0 %vm679_vm0, %v11930_v16  ;;  %v11987_v16 = vld [vmem:[#allocation66_spill] sm:$0xff] }
 0x211   : > { %7235 = vmatmul.mubr.msk.bf16.gmra.mrb[16].mxu0 %vm679_vm0, %v11931_v17  ;;  %v11988_v17 = vld [vmem:[#allocation67_spill] sm:$0xff] }
 0x212   : > { %7238 = vmatprep.mubr.msk.bf16.mxu0 %vm679_vm0, %v11932_v18  ;;  %v11989_v18 = vld [vmem:[#allocation68_spill] sm:$0xff] }
 0x219   : > { %7239 = vmatmul.mubr.msk.bf16.gmra.mrb[20].mxu0 %vm679_vm0, %v11937_v24  ;;  %v11995_v24 = vld [vmem:[#allocation119_spill] sm:$0xff] }
 0x21a   : > { %7242 = vmatprep.mubr.msk.bf16.mxu0 %vm679_vm0, %v11938_v25  ;;  %v11996_v25 = vld [vmem:[#allocation124_spill] sm:$0xff] }
 0x221   : > { %7243 = vmatmul.mubr.msk.bf16.gmra.mrb[24].mxu0 %vm679_vm0, %v11943_v30  ;;  %v12001_v30 = vld [vmem:[#allocation137_spill] sm:$0xff] }
 0x222   : > { %7246 = vmatprep.mubr.msk.bf16.mxu0 %vm679_vm0, %v11944_v31  ;;  %v12002_v31 = vld [vmem:[#allocation142_spill] sm:$0xff] }
 0x229   : > { %7247 = vmatmul.mubr.msk.bf16.gmra.mrb[28].mxu0 %vm679_vm0, %v11949_v60  ;;  %v12007_v60 = vld [vmem:[#allocation109_spill] sm:$0xff] }
 0x22a   : > { %7250 = vmatprep.mubr.msk.bf16.mxu0 %vm679_vm0, %v11950_v36  ;;  %v12008_v36 = vld [vmem:[#allocation113_spill] sm:$0xff] }
 0x231   : > { %7251 = vmatmul.mubr.msk.bf16.gmra.mrb[32].mxu0 %vm679_vm0, %v11955_v45  ;;  %v9914_v45 = vld [vmem:[%s11446_s5] sm:$0xff]  }
 0x232   : > { %7256 = vmatprep.mubr.msk.bf16.mxu0 %vm679_vm0, %v11956_v43  ;;  %v3238_v43 = vpop.permute.xlu0 %3237 }
 0x236   : > { %v3243_v40 = vpop.permute.xlu0 %3242 }
 0x239   : > { %7257 = vmatmul.mubr.msk.bf16.vlgmr.msra.gmra.mrb[0].mxu0 %vm679_vm0, %v11961_v52  ;;  %v3248_v52 = vpop.permute.xlu1 %3247 }
 0x23a   : > { %7293 = vmatpush3.bf16.msra.mxu0 %v2821_v37  ;;  %7260 = vmatprep.mubr.msk.bf16.mxu0 %vm679_vm0, %v11962_v47  ;;  %v9917_v50 = vpop.permute.xlu0 %3257 }
 0x23b   : > { %7330 = vmatprep.subr.bf16.mxu0 %v8379_v0 }
 0x23d   : > { %v3253_v3 = vpop.permute.xlu1 %3252 }
 0x23e   : > { %v9919_v37 = vpop.permute.xlu0 %3267 }
 0x241   : > { %7261 = vmatmul.mubr.msk.bf16.gmra.mrb[4].mxu0 %vm679_vm0, %v11967_v44  ;;  %v9929_v56 = vpop.permute.xlu1 %3262 }
 0x242   : > { %7264 = vmatprep.mubr.msk.bf16.mxu0 %vm679_vm0, %v11968_v48  ;;  %v9921_v41 = vpop.permute.xlu0 %3277 }
 0x245   : > { %v9933_v44 = vpop.permute.xlu1 %3272 }
 0x246   : > { %v9923_v51 = vpop.permute.xlu0 %3287 }
 0x249   : > { %7265 = vmatmul.mubr.msk.bf16.gmra.mrb[8].mxu0 %vm679_vm0, %v11973_v7 }
 0x24a   : > { %7268 = vmatprep.mubr.msk.bf16.mxu0 %vm679_vm0, %v11974_v8  ;;  %v9925_v47 = vpop.permute.xlu0 %3297 }
 0x24e   : > { %v9927_v35 = vpop.permute.xlu0 %3307 }
 0x251   : > { %7269 = vmatmul.mubr.msk.bf16.gmra.mrb[12].mxu0 %vm679_vm0, %v11979_v63 }
 0x252   : > { %7272 = vmatprep.mubr.msk.bf16.mxu0 %vm679_vm0, %v11980_v61  ;;  %v9931_v46 = vpop.permute.xlu0 %3317 }
 0x256   : > { %v9935_v48 = vpop.permute.xlu0 %3327 }
 0x259   : > { %7273 = vmatmul.mubr.msk.bf16.gmra.mrb[16].mxu0 %vm679_vm0, %v11985_v14 }
 0x25a   : > { %7276 = vmatprep.mubr.msk.bf16.mxu0 %vm679_vm0, %v11986_v15  ;;  %v9939_v1 = vpop.permute.xlu0 %3337 }
 0x25e   : > { %v9953_v7 = vpop.permute.xlu0 %3347 }
 0x261   : > { %7277 = vmatmul.mubr.msk.bf16.gmra.mrb[20].mxu0 %vm679_vm0, %v11987_v16 }
 0x262   : > { %7280 = vmatprep.mubr.msk.bf16.mxu0 %vm679_vm0, %v11988_v17  ;;  %v9963_v13 = vpop.permute.xlu0 %3357 }
 0x269   : > { %7281 = vmatmul.mubr.msk.bf16.gmra.mrb[24].mxu0 %vm679_vm0, %v11989_v18 }
 0x26a   : > { %7284 = vmatprep.mubr.msk.bf16.mxu0 %vm679_vm0, %v11990_v19 }
 0x271   : > { %7285 = vmatmul.mubr.msk.bf16.gmra.mrb[28].mxu0 %vm679_vm0, %v11991_v20 }
 0x272   : > { %7288 = vmatprep.mubr.msk.bf16.mxu0 %vm679_vm0, %v11992_v21 }
 0x279   : > { %7289 = vmatmul.mubr.msk.bf16.gmra.mrb[32].mxu0 %vm679_vm0, %v11993_v22 }
 0x27a   : > { %7294 = vmatprep.mubr.msk.bf16.mxu0 %vm679_vm0, %v11994_v23 }
 0x281   : > { %7295 = vmatmul.mubr.msk.bf16.vlgmr.msra.gmra.mrb[0].mxu0 %vm679_vm0, %v11995_v24 }
 0x282   : > { %7298 = vmatprep.mubr.msk.bf16.mxu0 %vm679_vm0, %v11996_v25  ;;  %7331 = vmatpush3.bf16.msra.mxu0 %v8379_v0  ;;  %v9937_v0 = vpop.permute.xlu1 %3282 }
 0x283   : > { %7332 = vmatprep.subr.bf16.mxu0 %v8380_v5 }
 0x286   : > { %7333 = vmatpush3.bf16.msra.mxu0 %v8380_v5  ;;  %v9946_v5 = vpop.permute.xlu1 %3292 }
 0x287   : > { %7334 = vmatprep.subr.bf16.mxu0 %v8381_v9 }
 0x289   : > { %7299 = vmatmul.mubr.msk.bf16.gmra.mrb[4].mxu0 %vm679_vm0, %v11997_v26 }
 0x28a   : > { %7302 = vmatprep.mubr.msk.bf16.mxu0 %vm679_vm0, %v11998_v27  ;;  %7335 = vmatpush3.bf16.msra.mxu0 %v8381_v9  ;;  %v9960_v11 = vpop.permute.xlu1 %3302 }
 0x28b   : > { %7336 = vmatprep.subr.bf16.mxu0 %v8382_v57 }
 0x28e   : > { %7337 = vmatpush3.bf16.msra.mxu0 %v8382_v57 }
 0x291   : > { %7303 = vmatmul.mubr.msk.bf16.gmra.mrb[8].mxu0 %vm679_vm0, %v11999_v28  ;;  %v9972_v28 = vpop.permute.xlu1 %3312 }
 0x292   : > { %7306 = vmatprep.mubr.msk.bf16.mxu0 %vm679_vm0, %v12000_v29 }
 0x299   : > { %7307 = vmatmul.mubr.msk.bf16.gmra.mrb[12].mxu0 %vm679_vm0, %v12001_v30 }
 0x29a   : > { %7310 = vmatprep.mubr.msk.bf16.mxu0 %vm679_vm0, %v12002_v31 }
 0x2a1   : > { %7311 = vmatmul.mubr.msk.bf16.gmra.mrb[16].mxu0 %vm679_vm0, %v12003_v32  ;;  %v9977_v32 = vpop.permute.xlu0 %3367 }
 0x2a2   : > { %7314 = vmatprep.mubr.msk.bf16.mxu0 %vm679_vm0, %v12004_v33 }
 0x2a9   : > { %7315 = vmatmul.mubr.msk.bf16.gmra.mrb[20].mxu0 %vm679_vm0, %v12005_v38 }
 0x2aa   : > { %7318 = vmatprep.mubr.msk.bf16.mxu0 %vm679_vm0, %v12006_v58 }
 0x2b1   : > { %7319 = vmatmul.mubr.msk.bf16.gmra.mrb[24].mxu0 %vm679_vm0, %v9534_v55  ;;  %v8383_v55 = vld [vmem:[%s11446_s5 + $0x60] sm:$0xff]  }
 0x2b2   : > { %7322 = vmatprep.mubr.msk.bf16.mxu0 %vm679_vm0, %v9553_v2  ;;  %7802 = vmatprep.subr.bf16.mxu1 %v8383_v55  ;;  %v8384_v2 = vld [vmem:[%s11446_s5 + $0x68] sm:$0xff]  }
 0x2b3   : > { %7338 = vmatprep.subr.bf16.mxu0 %v8383_v55  ;;  %7810 = vmatpush3.bf16.msra.mxu1 %v8383_v55 }
 0x2b4   : > { %7339 = vmatpush3.bf16.msra.mxu0 %v8383_v55  ;;  %7803 = vmatprep.subr.bf16.mxu1 %v8384_v2 }
 0x2b5   : > { %7340 = vmatprep.subr.bf16.mxu0 %v8384_v2 }
 0x2b7   : > { %7811 = vmatpush3.bf16.msra.mxu1 %v8384_v2 }
 0x2b8   : > { %7341 = vmatpush3.bf16.msra.mxu0 %v8384_v2  ;;  %7804 = vmatprep.subr.bf16.mxu1 %v8385_v49 }
 0x2b9   : > { %7323 = vmatmul.mubr.msk.bf16.gmra.mrb[28].mxu0 %vm679_vm0, %v12007_v60  ;;  %7342 = vmatprep.subr.bf16.mxu0 %v8385_v49 }
 0x2ba   : > { %7326 = vmatprep.mubr.msk.bf16.mxu0 %vm679_vm0, %v12008_v36 }
 0x2bb   : > { %7812 = vmatpush3.bf16.msra.mxu1 %v8385_v49 }
 0x2bc   : > { %7343 = vmatpush3.bf16.msra.mxu0 %v8385_v49  ;;  %7805 = vmatprep.subr.bf16.mxu1 %v8386_v42 }
 0x2bd   : > { %7344 = vmatprep.subr.bf16.mxu0 %v8386_v42 }
 0x2bf   : > { %7813 = vmatpush3.bf16.msra.mxu1 %v8386_v42 }
 0x2c0   : > { %7345 = vmatpush3.bf16.msra.mxu0 %v8386_v42  ;;  %7382 = vmatprep.subr.bf16.mxu1 %v9914_v45 }
 0x2c1   : > { %7327 = vmatmul.mubr.msk.bf16.gmra.mrb[32].mxu0 %vm679_vm0, %v12009_v54 }
 0x354   : > { %v7296_v6 = vpop.f32.mrb[0].mxu0 }
 0x355   : > { %v3046_v8 = vmul.f32 %v7296_v6, %v9944_v4  ;;  %v2857_v9 = vpop.f32.mrb[1].mxu0 }
 0x356   : > { %v7297_v10 = vpop.f32.mrb[2].mxu0  ;;  %v3044_v57 = vmul.f32 %v9944_v4, %v2857_v9 }
 0x357   : > { %v3088_v39 = vadd.f32 %v9951_v53, %v3046_v8  ;;  %v3047_v59 = vmul.f32 %v7297_v10, %v9944_v4  ;;  %v2860_v34 = vpop.f32.mrb[3].mxu0  ;;  %v9993_v10 = vpop.permute.xlu1 %3322 }
 0x358   : > { %v3045_v63 = vmul.f32 %v9944_v4, %v2860_v34 }
 0x359   : > { %vm3124_vm4 = vcmp.ge.f32.partialorder %v3088_v39, 0.0  ;;  %v3160_v61 = vmul.f32 0.1, %v3088_v39  ;;  %v3089_v62 = vadd.f32 %v9951_v53, %v3047_v59 }
 0x35a   : > { %v3087_v12 = vadd.f32 %v9951_v53, %v3045_v63  ;;  %v9998_v63 = vpop.permute.xlu0 %3377 }
 0x35b   : > { %vm3125_vm5 = vcmp.ge.f32.partialorder %v3089_v62, 0.0  ;;  %v3161_v14 = vmul.f32 0.1, %v3089_v62  ;;  %v3196_v15 = vsel %vm3124_vm4, %v3088_v39, %v3160_v61 }
 0x35c   : > { %vm3123_vm6 = vcmp.ge.f32.partialorder %v3087_v12, 0.0  ;;  %v3159_v16 = vmul.f32 0.1, %v3087_v12  ;;  %v7300_v17 = vpop.f32.mrb[4].mxu0  ;;  %v9967_v24 = vmul.f32 %v3243_v40, %v3196_v15 }
 0x35d   : > { %v3050_v18 = vmul.f32 %v7300_v17, %v9944_v4  ;;  %v2873_v19 = vpop.f32.mrb[5].mxu0  ;;  %v3197_v20 = vsel %vm3125_vm5, %v3089_v62, %v3161_v14 }
 0x35e   : > { %v3195_v21 = vsel %vm3123_vm6, %v3087_v12, %v3159_v16  ;;  %v3048_v22 = vmul.f32 %v9944_v4, %v2873_v19  ;;  %v7301_v23 = vpop.f32.mrb[6].mxu0  ;;  %12010 = vst [vmem:[#allocation80_spill] sm:$0xff] %v9967_v24  ;;  %v9979_v33 = vmul.f32 %v3248_v52, %v3197_v20 }
 0x35f   : > { %v9969_v25 = vmul.f32 %v3238_v43, %v3195_v21  ;;  %v3092_v26 = vadd.f32 %v9951_v53, %v3050_v18  ;;  %v2876_v27 = vpop.f32.mrb[7].mxu0  ;;  %v3051_v30 = vmul.f32 %v7301_v23, %v9944_v4  ;;  %v3448_v43 = vrot.slane %v9967_v24, 7 }
 0x360   : > { %v3090_v29 = vadd.f32 %v9951_v53, %v3048_v22  ;;  %v3049_v31 = vmul.f32 %v9944_v4, %v2876_v27  ;;  %12012 = vst [vmem:[#allocation81_spill] sm:$0xff] %v9979_v33  ;;  %v11560_v34 = vrot.slane %v9979_v33, 7 }
 0x361   : > { %12011 = vst [vmem:[#allocation82_spill] sm:$0xff] %v9969_v25  ;;  %vm3128_vm7 = vcmp.ge.f32.partialorder %v3092_v26, 0.0  ;;  %v3164_v38 = vmul.f32 0.1, %v3092_v26  ;;  %v9983_v58 = vpack.c.bf16 %v9967_v24, %v9969_v25  ;;  %v3093_v36 = vadd.f32 %v9951_v53, %v3051_v30 }
 0x362   : > { %vm3126_vm8 = vcmp.ge.f32.partialorder %v3090_v29, 0.0  ;;  %v3162_v60 = vmul.f32 0.1, %v3090_v29  ;;  %v3091_v54 = vadd.f32 %v9951_v53, %v3049_v31  ;;  %v11561_v59 = vrot.slane %v9969_v25, 7  ;;  %v10035_v31 = vpop.permute.xlu1 %3332 }
 0x363   : > { %12013 = vst [vmem:[#allocation86_spill] sm:$0xff] %v9983_v58  ;;  %7350 = vmatprep.mubr.bf16.mxu1 %v9983_v58  ;;  %v3200_v55 = vsel %vm3128_vm7, %v3092_v26, %v3164_v38  ;;  %v3165_v49 = vmul.f32 0.1, %v3093_v36  ;;  %vm3129_vm10 = vcmp.ge.f32.partialorder %v3093_v36, 0.0  ;;  %v10026_v26 = vadd.f32 %v9951_v53, %v3044_v57  ;;  %v10047_v57 = vpop.permute.xlu0 %3387 }
 0x364   : > { %v3198_v2 = vsel %vm3126_vm8, %v3090_v29, %v3162_v60  ;;  %v7304_v42 = vpop.f32.mrb[8].mxu0  ;;  %vm3127_vm9 = vcmp.ge.f32.partialorder %v3091_v54, 0.0  ;;  %v3163_v52 = vmul.f32 0.1, %v3091_v54  ;;  %v10033_v30 = vsel %vm603_vm2, %v3448_v43, %v11560_v34 }
 0x365   : > { %v9990_v40 = vmul.f32 %v3253_v3, %v3198_v2  ;;  %v3054_v6 = vmul.f32 %v7304_v42, %v9944_v4  ;;  %v2889_v8 = vpop.f32.mrb[9].mxu0  ;;  %v10001_v3 = vmul.f32 %v9929_v56, %v3200_v55  ;;  %v8388_v56 = vld [vmem:[%s11446_s5 + $0x8] sm:$0xff]   ;;  %v3201_v19 = vsel %vm3129_vm10, %v3093_v36, %v3165_v49  ;;  %12020 = vst [vmem:[#allocation94_spill] sm:$0xff] %v10033_v30 }
 0x366   : > { %v3052_v9 = vmul.f32 %v9944_v4, %v2889_v8  ;;  %v7305_v39 = vpop.f32.mrb[10].mxu0  ;;  %v3199_v61 = vsel %vm3127_vm9, %v3091_v54, %v3163_v52  ;;  %v8389_v54 = vld [vmem:[%s11446_s5 + $0x10] sm:$0xff]   ;;  %v10050_v55 = vmul.f32 %v9919_v37, %v3201_v19  ;;  %vm3122_vm1 = vcmp.ge.f32.partialorder %v10026_v26, 0.0 }
 0x367   : > { %12014 = vst [vmem:[#allocation85_spill] sm:$0xff] %v9990_v40  ;;  %12015 = vst [vmem:[#allocation88_spill] sm:$0xff] %v10001_v3  ;;  %v3096_v62 = vadd.f32 %v9951_v53, %v3054_v6  ;;  %v3055_v12 = vmul.f32 %v7305_v39, %v9944_v4  ;;  %v2892_v14 = vpop.f32.mrb[11].mxu0  ;;  %v10006_v15 = vmul.f32 %v9917_v50, %v3199_v61 }
 0x368   : > { %v3094_v16 = vadd.f32 %v9951_v53, %v3052_v9  ;;  %v3053_v17 = vmul.f32 %v9944_v4, %v2892_v14  ;;  %v10012_v18 = vpack.c.bf16 %v9990_v40, %v9979_v33  ;;  %12022 = vst [vmem:[#allocation98_spill] sm:$0xff] %v10050_v55 }
 0x369   : > { %12016 = vst [vmem:[#allocation87_spill] sm:$0xff] %v10006_v15  ;;  %vm3132_vm11 = vcmp.ge.f32.partialorder %v3096_v62, 0.0  ;;  %v3168_v20 = vmul.f32 0.1, %v3096_v62  ;;  %v3097_v21 = vadd.f32 %v9951_v53, %v3055_v12  ;;  %v10023_v23 = vpack.c.bf16 %v10001_v3, %v10006_v15 }
 0x36a   : > { %12017 = vst [vmem:[#allocation92_spill] sm:$0xff] %v10012_v18  ;;  %vm3130_vm12 = vcmp.ge.f32.partialorder %v3094_v16, 0.0  ;;  %v3166_v50 = vmul.f32 0.1, %v3094_v16  ;;  %v3095_v22 = vadd.f32 %v9951_v53, %v3053_v17  ;;  %7351 = vmatmul.mubr.bf16.vlgmr.msra.gmra.mrb[0].mxu1 %v10012_v18 }
 0x36b   : > { %12018 = vst [vmem:[#allocation91_spill] sm:$0xff] %v10023_v23  ;;  %v3204_v27 = vsel %vm3132_vm11, %v3096_v62, %v3168_v20  ;;  %7383 = vmatpush3.bf16.msra.mxu1 %v9914_v45  ;;  %7354 = vmatprep.mubr.bf16.mxu1 %v10023_v23  ;;  %v10045_v45 = vsel %vm603_vm2, %v11561_v59, %v3448_v43  ;;  %vm3133_vm14 = vcmp.ge.f32.partialorder %v3097_v21, 0.0  ;;  %v3169_v6 = vmul.f32 0.1, %v3097_v21 }
 0x36c   : > { %v3202_v38 = vsel %vm3130_vm12, %v3094_v16, %v3166_v50  ;;  %vm3131_vm13 = vcmp.ge.f32.partialorder %v3095_v22, 0.0  ;;  %v3167_v60 = vmul.f32 0.1, %v3095_v22  ;;  %v7308_v36 = vpop.f32.mrb[12].mxu0  ;;  %7384 = vmatprep.subr.bf16.mxu1 %v8388_v56  ;;  %12021 = vst [vmem:[#allocation93_spill] sm:$0xff] %v10045_v45  ;;  %v10057_v52 = vmul.f32 %v9937_v0, %v3204_v27  ;;  %v10086_v27 = vpop.permute.xlu0 %3397 }
 0x36d   : > { %v10053_v2 = vmul.f32 %v9933_v44, %v3202_v38  ;;  %v3058_v49 = vmul.f32 %v7308_v36, %v9944_v4  ;;  %v2905_v42 = vpop.f32.mrb[13].mxu0 }
 0x36e   : > { %12024 = vst [vmem:[#allocation100_spill] sm:$0xff] %v10057_v52  ;;  %v3203_v8 = vsel %vm3131_vm13, %v3095_v22, %v3167_v60  ;;  %v3056_v43 = vmul.f32 %v9944_v4, %v2905_v42  ;;  %v7309_v9 = vpop.f32.mrb[14].mxu0  ;;  %v10084_v22 = vpop.permute.xlu1 %3342  ;;  %v3158_v60 = vmul.f32 0.1, %v10026_v26 }
 0x36f   : > { %12023 = vst [vmem:[#allocation97_spill] sm:$0xff] %v10053_v2  ;;  %v10061_v39 = vmul.f32 %v9921_v41, %v3203_v8  ;;  %v3100_v37 = vadd.f32 %v9951_v53, %v3058_v49  ;;  %v3059_v44 = vmul.f32 %v7309_v9, %v9944_v4  ;;  %v2908_v61 = vpop.f32.mrb[15].mxu0  ;;  %v10067_v62 = vpack.c.bf16 %v10053_v2, %v10050_v55  ;;  %v8390_v41 = vld [vmem:[%s11446_s5 + $0x18] sm:$0xff]  }
 0x370   : > { %7385 = vmatpush3.bf16.msra.mxu1 %v8388_v56  ;;  %v3098_v0 = vadd.f32 %v9951_v53, %v3056_v43  ;;  %v3057_v12 = vmul.f32 %v9944_v4, %v2908_v61  ;;  %v3205_v56 = vsel %vm3133_vm14, %v3097_v21, %v3169_v6  ;;  %v8391_v21 = vld [vmem:[%s11446_s5 + $0x20] sm:$0xff]  }
 0x371   : > { %12025 = vst [vmem:[#allocation99_spill] sm:$0xff] %v10061_v39  ;;  %12026 = vst [vmem:[#allocation103_spill] sm:$0xff] %v10067_v62  ;;  %7386 = vmatprep.subr.bf16.mxu1 %v8389_v54  ;;  %vm3136_vm15 = vcmp.ge.f32.partialorder %v3100_v37, 0.0  ;;  %v3172_v16 = vmul.f32 0.1, %v3100_v37  ;;  %v3101_v17 = vadd.f32 %v9951_v53, %v3059_v44  ;;  %v10079_v19 = vpack.c.bf16 %v10057_v52, %v10061_v39 }
 0x372   : > { %vm3134_vm0 = vcmp.ge.f32.partialorder %v3098_v0, 0.0  ;;  %v3170_v20 = vmul.f32 0.1, %v3098_v0  ;;  %v3099_v50 = vadd.f32 %v9951_v53, %v3057_v12  ;;  %7355 = vmatmul.mubr.bf16.gmra.mrb[4].mxu1 %v10067_v62  ;;  %v10095_v6 = vmul.f32 %v9923_v51, %v3205_v56 }
 0x373   : > { %12027 = vst [vmem:[#allocation70_spill] sm:$0xff] %v10079_v19  ;;  %v3208_v38 = vsel %vm3136_vm15, %v3100_v37, %v3172_v16  ;;  %7358 = vmatprep.mubr.bf16.mxu1 %v10079_v19  ;;  %vm3137_vm5 = vcmp.ge.f32.partialorder %v3101_v17, 0.0  ;;  %v3173_v37 = vmul.f32 0.1, %v3101_v17 }
 0x374   : > { %7387 = vmatpush3.bf16.msra.mxu1 %v8389_v54  ;;  %v3206_v36 = vsel %vm3134_vm0, %v3098_v0, %v3170_v20  ;;  %vm3135_vm4 = vcmp.ge.f32.partialorder %v3099_v50, 0.0  ;;  %v3171_v49 = vmul.f32 0.1, %v3099_v50  ;;  %v7312_v42 = vpop.f32.mrb[16].mxu0  ;;  %v10102_v9 = vmul.f32 %v9960_v11, %v3208_v38  ;;  %v10122_v38 = vpop.permute.xlu1 %3352 }
 0x375   : > { %7388 = vmatprep.subr.bf16.mxu1 %v8390_v41  ;;  %v10098_v8 = vmul.f32 %v9946_v5, %v3206_v36  ;;  %v3062_v54 = vmul.f32 %v7312_v42, %v9944_v4  ;;  %v2921_v43 = vpop.f32.mrb[17].mxu0  ;;  %v3194_v11 = vsel %vm3122_vm1, %v10026_v26, %v3158_v60  ;;  %v3233_v36 = vpop.permute.xlu0 %3232  ;;  %v3209_v26 = vsel %vm3137_vm5, %v3101_v17, %v3173_v37  ;;  %v8393_v17 = vld [vmem:[%s11446_s5 + $0x30] sm:$0xff]  }
 0x376   : > { %12028 = vst [vmem:[#allocation69_spill] sm:$0xff] %v10102_v9  ;;  %v3207_v44 = vsel %vm3135_vm4, %v3099_v50, %v3171_v49  ;;  %v3060_v61 = vmul.f32 %v9944_v4, %v2921_v43  ;;  %v7313_v0 = vpop.f32.mrb[18].mxu0  ;;  %v10139_v37 = vmul.f32 %v9927_v35, %v3209_v26 }
 0x377   : > { %v10106_v12 = vmul.f32 %v9925_v47, %v3207_v44  ;;  %v3104_v51 = vadd.f32 %v9951_v53, %v3062_v54  ;;  %v3063_v5 = vmul.f32 %v7313_v0, %v9944_v4  ;;  %v2924_v16 = vpop.f32.mrb[19].mxu0  ;;  %v10112_v56 = vpack.c.bf16 %v10098_v8, %v10095_v6  ;;  %v8392_v47 = vld [vmem:[%s11446_s5 + $0x28] sm:$0xff]  }
 0x378   : > { %7389 = vmatpush3.bf16.msra.mxu1 %v8390_v41  ;;  %v3102_v20 = vadd.f32 %v9951_v53, %v3060_v61  ;;  %v3061_v50 = vmul.f32 %v9944_v4, %v2924_v16  ;;  %v10133_v44 = vmul.f32 %v3233_v36, %v3194_v11  ;;  %12033 = vst [vmem:[#allocation12_spill] sm:$0xff] %v10139_v37 }
 0x379   : > { %12029 = vst [vmem:[#allocation73_spill] sm:$0xff] %v10106_v12  ;;  %12030 = vst [vmem:[#allocation9_spill] sm:$0xff] %v10112_v56  ;;  %7390 = vmatprep.subr.bf16.mxu1 %v8391_v21  ;;  %vm3140_vm6 = vcmp.ge.f32.partialorder %v3104_v51, 0.0  ;;  %v3176_v49 = vmul.f32 0.1, %v3104_v51  ;;  %v3105_v41 = vadd.f32 %v9951_v53, %v3063_v5  ;;  %v10127_v42 = vpack.c.bf16 %v10102_v9, %v10106_v12 }
 0x37a   : > { %vm3138_vm7 = vcmp.ge.f32.partialorder %v3102_v20, 0.0  ;;  %v3174_v60 = vmul.f32 0.1, %v3102_v20  ;;  %v3103_v54 = vadd.f32 %v9951_v53, %v3061_v50  ;;  %7359 = vmatmul.mubr.bf16.gmra.mrb[8].mxu1 %v10112_v56  ;;  %12032 = vst [vmem:[#allocation11_spill] sm:$0xff] %v10133_v44 }
 0x37b   : > { %12031 = vst [vmem:[#allocation10_spill] sm:$0xff] %v10127_v42  ;;  %v3212_v43 = vsel %vm3140_vm6, %v3104_v51, %v3176_v49  ;;  %7362 = vmatprep.mubr.bf16.mxu1 %v10127_v42  ;;  %vm3141_vm9 = vcmp.ge.f32.partialorder %v3105_v41, 0.0 }
 0x37c   : > { %7391 = vmatpush3.bf16.msra.mxu1 %v8391_v21  ;;  %v3210_v61 = vsel %vm3138_vm7, %v3102_v20, %v3174_v60  ;;  %vm3139_vm8 = vcmp.ge.f32.partialorder %v3103_v54, 0.0  ;;  %v3175_v0 = vmul.f32 0.1, %v3103_v54  ;;  %v7316_v5 = vpop.f32.mrb[20].mxu0  ;;  %v10146_v11 = vmul.f32 %v9993_v10, %v3212_v43  ;;  %v10149_v60 = vpop.permute.xlu1 %3362 }
 0x37d   : > { %7392 = vmatprep.subr.bf16.mxu1 %v8392_v47  ;;  %v10142_v16 = vmul.f32 %v9972_v28, %v3210_v61  ;;  %v3066_v21 = vmul.f32 %v7316_v5, %v9944_v4  ;;  %v2937_v51 = vpop.f32.mrb[21].mxu0  ;;  %v3177_v20 = vmul.f32 0.1, %v3105_v41 }
 0x37e   : > { %12035 = vst [vmem:[#allocation112_spill] sm:$0xff] %v10146_v11  ;;  %v3211_v50 = vsel %vm3139_vm8, %v3103_v54, %v3175_v0  ;;  %v3064_v36 = vmul.f32 %v9944_v4, %v2937_v51  ;;  %v7317_v49 = vpop.f32.mrb[22].mxu0 }
 0x37f   : > { %12034 = vst [vmem:[#allocation111_spill] sm:$0xff] %v10142_v16  ;;  %v10152_v35 = vmul.f32 %v9931_v46, %v3211_v50  ;;  %v3108_v28 = vadd.f32 %v9951_v53, %v3066_v21  ;;  %v3067_v26 = vmul.f32 %v7317_v49, %v9944_v4  ;;  %v2940_v61 = vpop.f32.mrb[23].mxu0  ;;  %v10158_v5 = vpack.c.bf16 %v10142_v16, %v10139_v37  ;;  %v8394_v46 = vld [vmem:[%s11446_s5 + $0x38] sm:$0xff]  }
 0x380   : > { %7393 = vmatpush3.bf16.msra.mxu1 %v8392_v47  ;;  %v3106_v10 = vadd.f32 %v9951_v53, %v3064_v36  ;;  %v3065_v54 = vmul.f32 %v9944_v4, %v2940_v61  ;;  %v3213_v51 = vsel %vm3141_vm9, %v3105_v41, %v3177_v20  ;;  %v10179_v41 = vld [vmem:[%s11446_s5 + $0x80] sm:$0xff]   ;;  %v3450_v20 = vrot.slane %v9990_v40, 7 }
 0x381   : > { %12036 = vst [vmem:[#allocation115_spill] sm:$0xff] %v10152_v35  ;;  %12037 = vst [vmem:[#allocation117_spill] sm:$0xff] %v10158_v5  ;;  %7394 = vmatprep.subr.bf16.mxu1 %v8393_v17  ;;  %vm3144_vm10 = vcmp.ge.f32.partialorder %v3108_v28, 0.0  ;;  %v3180_v43 = vmul.f32 0.1, %v3108_v28  ;;  %v3109_v0 = vadd.f32 %v9951_v53, %v3067_v26  ;;  %v10168_v21 = vpack.c.bf16 %v10146_v11, %v10152_v35 }
 0x382   : > { %vm3142_vm11 = vcmp.ge.f32.partialorder %v3106_v10, 0.0  ;;  %v3178_v47 = vmul.f32 0.1, %v3106_v10  ;;  %v3107_v50 = vadd.f32 %v9951_v53, %v3065_v54  ;;  %7363 = vmatmul.mubr.bf16.gmra.mrb[12].mxu1 %v10158_v5  ;;  %v10182_v54 = vpop.permute.xlu1 %3372  ;;  %v10185_v49 = vmul.f32 %v9935_v48, %v3213_v51 }
 0x383   : > { %12038 = vst [vmem:[#allocation60_spill] sm:$0xff] %v10168_v21  ;;  %v3216_v61 = vsel %vm3144_vm10, %v3108_v28, %v3180_v43  ;;  %7366 = vmatprep.mubr.bf16.mxu1 %v10168_v21  ;;  %vm3145_vm13 = vcmp.ge.f32.partialorder %v3109_v0, 0.0 }
 0x384   : > { %7395 = vmatpush3.bf16.msra.mxu1 %v8393_v17  ;;  %v3214_v26 = vsel %vm3142_vm11, %v3106_v10, %v3178_v47  ;;  %vm3143_vm12 = vcmp.ge.f32.partialorder %v3107_v50, 0.0  ;;  %v3179_v14 = vmul.f32 0.1, %v3107_v50  ;;  %v7320_v34 = vpop.f32.mrb[24].mxu0  ;;  %v10192_v43 = vmul.f32 %v10084_v22, %v3216_v61 }
 0x385   : > { %7396 = vmatprep.subr.bf16.mxu1 %v8394_v46  ;;  %v10188_v28 = vmul.f32 %v10035_v31, %v3214_v26  ;;  %v3070_v17 = vmul.f32 %v7320_v34, %v9944_v4  ;;  %v2953_v10 = vpop.f32.mrb[25].mxu0  ;;  %v3181_v47 = vmul.f32 0.1, %v3109_v0 }
 0x386   : > { %v3215_v36 = vsel %vm3143_vm12, %v3107_v50, %v3179_v14  ;;  %v3068_v59 = vmul.f32 %v9944_v4, %v2953_v10  ;;  %v7321_v58 = vpop.f32.mrb[26].mxu0 }
 0x387   : > { %v10196_v21 = vmul.f32 %v9939_v1, %v3215_v36  ;;  %v3112_v48 = vadd.f32 %v9951_v53, %v3070_v17  ;;  %v3071_v31 = vmul.f32 %v7321_v58, %v9944_v4  ;;  %v2956_v51 = vpop.f32.mrb[27].mxu0  ;;  %v10202_v34 = vpack.c.bf16 %v10188_v28, %v10185_v49 }
 0x388   : > { %7397 = vmatpush3.bf16.msra.mxu1 %v8394_v46  ;;  %v3110_v14 = vadd.f32 %v9951_v53, %v3068_v59  ;;  %v3069_v50 = vmul.f32 %v9944_v4, %v2956_v51  ;;  %v12040_v1 = vrot.slane %v9969_v25, 7  ;;  %v12041_v36 = vrot.slane %v10133_v44, 7  ;;  %v3383_v51 = vpop.permute.xlu1 %3382 }
 0x389   : > { %12039 = vst [vmem:[#allocation59_spill] sm:$0xff] %v10202_v34  ;;  %7434 = vmatprep.subr.bf16.mxu1 %v10179_v41  ;;  %vm3148_vm14 = vcmp.ge.f32.partialorder %v3112_v48, 0.0  ;;  %v3184_v61 = vmul.f32 0.1, %v3112_v48  ;;  %v3113_v46 = vadd.f32 %v9951_v53, %v3071_v31  ;;  %v10219_v26 = vpack.c.bf16 %v10192_v43, %v10196_v21 }
 0x38a   : > { %v10214_v58 = vsel %vm603_vm2, %v12041_v36, %v12040_v1  ;;  %v3217_v59 = vsel %vm3145_vm13, %v3109_v0, %v3181_v47  ;;  %vm3146_vm15 = vcmp.ge.f32.partialorder %v3110_v14, 0.0  ;;  %v3182_v17 = vmul.f32 0.1, %v3110_v14  ;;  %7367 = vmatmul.mubr.bf16.gmra.mrb[16].mxu1 %v10202_v34 }
 0x38b   : > { %12042 = vst [vmem:[#allocation116_spill] sm:$0xff] %v10214_v58  ;;  %12043 = vst [vmem:[#allocation121_spill] sm:$0xff] %v10219_v26  ;;  %v3111_v10 = vadd.f32 %v9951_v53, %v3069_v50  ;;  %v3220_v22 = vsel %vm3148_vm14, %v3112_v48, %v3184_v61  ;;  %7370 = vmatprep.mubr.bf16.mxu1 %v10219_v26  ;;  %v10227_v1 = vpack.c.bf16 %v10045_v45, %v10214_v58 }
 0x38c   : > { %v12045_v31 = vrot.slane %v9979_v33, 7  ;;  %v3451_v0 = vrot.slane %v10006_v15, 7  ;;  %v3218_v47 = vsel %vm3146_vm15, %v3110_v14, %v3182_v17  ;;  %v7324_v34 = vpop.f32.mrb[28].mxu0  ;;  %v10238_v61 = vmul.f32 %v9953_v7, %v3217_v59 }
 0x38d   : > { %12044 = vst [vmem:[#allocation120_spill] sm:$0xff] %v10227_v1  ;;  %vm3147_vm0 = vcmp.ge.f32.partialorder %v3111_v10, 0.0  ;;  %v3183_v50 = vmul.f32 0.1, %v3111_v10  ;;  %v10241_v26 = vmul.f32 %v10122_v38, %v3218_v47  ;;  %vm3149_vm1 = vcmp.ge.f32.partialorder %v3113_v46, 0.0  ;;  %v2969_v42 = vpop.f32.mrb[29].mxu0 }
 0x38e   : > { %v10233_v36 = vsel %vm603_vm2, %v12045_v31, %v3450_v20  ;;  %v3074_v5 = vmul.f32 %v7324_v34, %v9944_v4  ;;  %v10245_v31 = vmul.f32 %v10149_v60, %v3220_v22  ;;  %v3185_v56 = vmul.f32 0.1, %v3113_v46  ;;  %v7325_v19 = vpop.f32.mrb[30].mxu0 }
 0x38f   : > { %12046 = vst [vmem:[#allocation123_spill] sm:$0xff] %v10233_v36  ;;  %v3219_v14 = vsel %vm3147_vm0, %v3111_v10, %v3183_v50  ;;  %v3072_v17 = vmul.f32 %v9944_v4, %v2969_v42  ;;  %v3075_v38 = vmul.f32 %v7325_v19, %v9944_v4  ;;  %v2972_v59 = vpop.f32.mrb[31].mxu0  ;;  %v10255_v34 = vpack.c.bf16 %v10241_v26, %v10238_v61  ;;  %v3393_v19 = vpop.permute.xlu1 %3392 }
 0x390   : > { %12047 = vst [vmem:[#allocation122_spill] sm:$0xff] %v10245_v31  ;;  %v10249_v48 = vmul.f32 %v9963_v13, %v3219_v14  ;;  %v3116_v7 = vadd.f32 %v9951_v53, %v3074_v5  ;;  %v3073_v22 = vmul.f32 %v9944_v4, %v2972_v59  ;;  %v12049_v10 = vrot.slane %v10001_v3, 7 }
 0x391   : > { %12048 = vst [vmem:[#allocation127_spill] sm:$0xff] %v10255_v34  ;;  %v3114_v60 = vadd.f32 %v9951_v53, %v3072_v17  ;;  %v10267_v13 = vsel %vm603_vm2, %v3450_v20, %v3451_v0  ;;  %v3117_v47 = vadd.f32 %v9951_v53, %v3075_v38  ;;  %v3221_v14 = vsel %vm3149_vm1, %v3113_v46, %v3185_v56 }
 0x392   : > { %v10263_v42 = vsel %vm603_vm2, %v3451_v0, %v12049_v10  ;;  %12051 = vst [vmem:[#allocation129_spill] sm:$0xff] %v10267_v13  ;;  %vm3152_vm4 = vcmp.ge.f32.partialorder %v3116_v7, 0.0  ;;  %v3188_v5 = vmul.f32 0.1, %v3116_v7  ;;  %v10272_v50 = vpack.c.bf16 %v10245_v31, %v10249_v48  ;;  %7371 = vmatmul.mubr.bf16.gmra.mrb[20].mxu1 %v10255_v34 }
 0x393   : > { %12050 = vst [vmem:[#allocation126_spill] sm:$0xff] %v10263_v42  ;;  %vm3150_vm5 = vcmp.ge.f32.partialorder %v3114_v60, 0.0  ;;  %v3186_v17 = vmul.f32 0.1, %v3114_v60  ;;  %v3115_v59 = vadd.f32 %v9951_v53, %v3073_v22  ;;  %v10280_v20 = vpack.c.bf16 %v10233_v36, %v10033_v30 }
 0x394   : > { %12052 = vst [vmem:[#allocation128_spill] sm:$0xff] %v10272_v50  ;;  %v3224_v10 = vsel %vm3152_vm4, %v3116_v7, %v3188_v5  ;;  %7374 = vmatprep.mubr.bf16.mxu1 %v10272_v50  ;;  %v10284_v0 = vpack.c.bf16 %v10263_v42, %v10267_v13  ;;  %v7328_v62 = vpop.f32.mrb[32].mxu0  ;;  %v10289_v7 = vmul.f32 %v9977_v32, %v3221_v14  ;;  %vm3153_vm7 = vcmp.ge.f32.partialorder %v3117_v47, 0.0  ;;  %v3403_v42 = vpop.permute.xlu1 %3402 }
 0x395   : > { %12053 = vst [vmem:[#allocation133_spill] sm:$0xff] %v10280_v20  ;;  %v3222_v56 = vsel %vm3150_vm5, %v3114_v60, %v3186_v17  ;;  %vm3151_vm6 = vcmp.ge.f32.partialorder %v3115_v59, 0.0  ;;  %v3187_v46 = vmul.f32 0.1, %v3115_v59  ;;  %v3078_v50 = vmul.f32 %v7328_v62, %v9944_v4  ;;  %v2985_v34 = vpop.f32.mrb[33].mxu0 }
 0x396   : > { %12054 = vst [vmem:[#allocation132_spill] sm:$0xff] %v10284_v0  ;;  %12055 = vst [vmem:[#allocation135_spill] sm:$0xff] %v10289_v7  ;;  %v10292_v5 = vmul.f32 %v10182_v54, %v3222_v56  ;;  %v10295_v23 = vmul.f32 %v3383_v51, %v3224_v10  ;;  %v3189_v18 = vmul.f32 0.1, %v3117_v47  ;;  %v3076_v60 = vmul.f32 %v9944_v4, %v2985_v34  ;;  %v7329_v17 = vpop.f32.mrb[34].mxu0 }
 0x397   : > { %v3223_v38 = vsel %vm3151_vm6, %v3115_v59, %v3187_v46  ;;  %v3120_v32 = vadd.f32 %v9951_v53, %v3078_v50  ;;  %v3079_v54 = vmul.f32 %v7329_v17, %v9944_v4  ;;  %v2988_v14 = vpop.f32.mrb[35].mxu0  ;;  %v12060_v34 = vrot.slane %v10053_v2, 7 }
 0x398   : > { %12056 = vst [vmem:[#allocation134_spill] sm:$0xff] %v10292_v5  ;;  %12057 = vst [vmem:[#allocation139_spill] sm:$0xff] %v10295_v23  ;;  %v10299_v22 = vmul.f32 %v9998_v63, %v3223_v38  ;;  %v10305_v62 = vpack.c.bf16 %v10292_v5, %v10289_v7  ;;  %v3118_v51 = vadd.f32 %v9951_v53, %v3076_v60  ;;  %v12061_v10 = vrot.slane %v10050_v55, 7  ;;  %v3408_v30 = vpop.permute.xlu1 %3407 }
 0x399   : > { %v3077_v59 = vmul.f32 %v9944_v4, %v2988_v14  ;;  %vm3156_vm8 = vcmp.ge.f32.partialorder %v3120_v32, 0.0  ;;  %v3192_v38 = vmul.f32 0.1, %v3120_v32  ;;  %v3121_v56 = vadd.f32 %v9951_v53, %v3079_v54 }
 0x39a   : > { %12058 = vst [vmem:[#allocation138_spill] sm:$0xff] %v10299_v22  ;;  %12059 = vst [vmem:[#allocation141_spill] sm:$0xff] %v10305_v62  ;;  %v10315_v63 = vsel %vm603_vm2, %v12061_v10, %v12060_v34  ;;  %v10321_v46 = vpack.c.bf16 %v10295_v23, %v10299_v22  ;;  %v3225_v4 = vsel %vm3153_vm7, %v3117_v47, %v3189_v18  ;;  %vm3154_vm9 = vcmp.ge.f32.partialorder %v3118_v51, 0.0 }
 0x39b   : > { %12062 = vst [vmem:[#allocation140_spill] sm:$0xff] %v10315_v63  ;;  %v3190_v60 = vmul.f32 0.1, %v3118_v51  ;;  %v3119_v17 = vadd.f32 %v9951_v53, %v3077_v59  ;;  %7375 = vmatmul.mubr.bf16.gmra.mrb[24].mxu1 %v10305_v62  ;;  %v3228_v14 = vsel %vm3156_vm8, %v3120_v32, %v3192_v38  ;;  %vm3157_vm10 = vcmp.ge.f32.partialorder %v3121_v56, 0.0 }
 0x39c   : > { %12063 = vst [vmem:[#allocation144_spill] sm:$0xff] %v10321_v46  ;;  %v3193_v34 = vmul.f32 0.1, %v3121_v56  ;;  %7378 = vmatprep.mubr.bf16.mxu1 %v10321_v46  ;;  %v10328_v54 = vmul.f32 %v3403_v42, %v3228_v14  ;;  %v10331_v18 = vmul.f32 %v10047_v57, %v3225_v4  ;;  %v3465_v32 = vrot.slane %v10185_v49, 7 }
 0x39d   : > { %v3226_v50 = vsel %vm3154_vm9, %v3118_v51, %v3190_v60  ;;  %vm3155_vm11 = vcmp.ge.f32.partialorder %v3119_v17, 0.0  ;;  %v3191_v45 = vmul.f32 0.1, %v3119_v17  ;;  %v11579_v42 = vrot.slane %v10146_v11, 7 }
 0x39e   : > { %12064 = vst [vmem:[#allocation146_spill] sm:$0xff] %v10328_v54  ;;  %12065 = vst [vmem:[#allocation145_spill] sm:$0xff] %v10331_v18  ;;  %v10333_v47 = vmul.f32 %v3393_v19, %v3226_v50  ;;  %v3229_v53 = vsel %vm3157_vm10, %v3121_v56, %v3193_v34  ;;  %v3480_v46 = vrot.slane %v10328_v54, 7  ;;  %v3466_v19 = vrot.slane %v10188_v28, 7 }
 0x39f   : > { %v10336_v59 = vmul.f32 %v3408_v30, %v3229_v53  ;;  %v3227_v38 = vsel %vm3155_vm11, %v3119_v17, %v3191_v45  ;;  %v10358_v45 = vsel %vm603_vm2, %v11579_v42, %v3465_v32  ;;  %v3468_v14 = vrot.slane %v10192_v43, 7 }
 0x3a0   : > { %12066 = vst [vmem:[#allocation107_spill] sm:$0xff] %v10333_v47  ;;  %v10341_v51 = vmul.f32 %v10086_v27, %v3227_v38  ;;  %v10345_v60 = vpack.c.bf16 %v10333_v47, %v10331_v18  ;;  %v3478_v57 = vrot.slane %v10333_v47, 7  ;;  %12071 = vst [vmem:[#allocation78_spill] sm:$0xff] %v10358_v45  ;;  %v3467_v27 = vrot.slane %v10196_v21, 7 }
 0x3a1   : > { %12067 = vst [vmem:[#allocation106_spill] sm:$0xff] %v10336_v59  ;;  %v3481_v50 = vrot.slane %v10336_v59, 7  ;;  %v10352_v30 = vpack.c.bf16 %v10133_v44, %v10336_v59  ;;  %v10368_v17 = vsel %vm603_vm2, %v3465_v32, %v3466_v19  ;;  %v12075_v53 = vrot.slane %v10133_v44, 7 }
 0x3a2   : > { %12068 = vst [vmem:[#allocation110_spill] sm:$0xff] %v10341_v51  ;;  %12069 = vst [vmem:[#allocation76_spill] sm:$0xff] %v10345_v60  ;;  %v10363_v56 = vpack.c.bf16 %v10328_v54, %v10341_v51  ;;  %v3479_v4 = vrot.slane %v10341_v51, 7  ;;  %v10384_v42 = vpack.c.bf16 %v10368_v17, %v10358_v45  ;;  %v10388_v32 = vsel %vm603_vm2, %v3466_v19, %v3467_v27 }
 0x3a3   : > { %12070 = vst [vmem:[#allocation77_spill] sm:$0xff] %v10352_v30  ;;  %12073 = vst [vmem:[#allocation83_spill] sm:$0xff] %v10368_v17  ;;  %7379 = vmatmul.mubr.bf16.gmra.mrb[28].mxu1 %v10345_v60  ;;  %v10374_v34 = vsel %vm603_vm2, %v3480_v46, %v3481_v50  ;;  %v10380_v38 = vsel %vm603_vm2, %v3481_v50, %v12075_v53  ;;  %v10405_v53 = vsel %vm603_vm2, %v3467_v27, %v3468_v14 }
 0x3a4   : > { %12072 = vst [vmem:[#allocation79_spill] sm:$0xff] %v10363_v56  ;;  %12074 = vst [vmem:[#allocation84_spill] sm:$0xff] %v10374_v34  ;;  %7346 = vmatprep.mubr.bf16.mxu0 %v10363_v56  ;;  %v10393_v10 = vsel %vm603_vm2, %v3479_v4, %v3480_v46  ;;  %v10397_v60 = vsel %vm603_vm2, %v3478_v57, %v3479_v4  ;;  %v10401_v50 = vpack.c.bf16 %v10380_v38, %v10374_v34 }
 0x3a5   : > { %12076 = vst [vmem:[#allocation89_spill] sm:$0xff] %v10380_v38  ;;  %12077 = vst [vmem:[#allocation90_spill] sm:$0xff] %v10384_v42  ;;  %7347 = vmatmul.mubr.bf16.vlgmr.msra.gmra.mrb[36].mxu0 %v10352_v30  ;;  %v10410_v19 = vpack.c.bf16 %v10393_v10, %v10397_v60  ;;  %v10414_v46 = vpack.c.bf16 %v10405_v53, %v10388_v32  ;;  %v3469_v4 = vrot.slane %v10238_v61, 7  ;;  %v3470_v56 = vrot.slane %v10241_v26, 7 }
 0x3a6   : > { %12078 = vst [vmem:[#allocation95_spill] sm:$0xff] %v10388_v32  ;;  %12079 = vst [vmem:[#allocation96_spill] sm:$0xff] %v10393_v10  ;;  %v3471_v62 = vrot.slane %v10249_v48, 7  ;;  %v3472_v13 = vrot.slane %v10245_v31, 7  ;;  %v3473_v27 = vrot.slane %v10289_v7, 7  ;;  %v3474_v30 = vrot.slane %v10292_v5, 7 }
 0x3a7   : > { %12080 = vst [vmem:[#allocation101_spill] sm:$0xff] %v10397_v60  ;;  %12081 = vst [vmem:[#allocation14_spill] sm:$0xff] %v10401_v50  ;;  %7398 = vmatprep.mubr.bf16.mxu1 %v10410_v19  ;;  %v10425_v36 = vsel %vm603_vm2, %v3469_v4, %v3470_v56  ;;  %v10429_v58 = vsel %vm603_vm2, %v3468_v14, %v3469_v4  ;;  %v3475_v38 = vrot.slane %v10299_v22, 7  ;;  %v8396_v4 = vld [vmem:[%s11446_s5 + $0x88] sm:$0xff]  }
 0x3a8   : > { %12082 = vst [vmem:[#allocation16_spill] sm:$0xff] %v10405_v53  ;;  %12083 = vst [vmem:[#allocation15_spill] sm:$0xff] %v10410_v19  ;;  %v10435_v42 = vpack.c.bf16 %v10425_v36, %v10429_v58  ;;  %v10439_v34 = vsel %vm603_vm2, %v3471_v62, %v3472_v13  ;;  %v10443_v19 = vsel %vm603_vm2, %v3470_v56, %v3471_v62 }
 0x3a9   : > { %12084 = vst [vmem:[#allocation17_spill] sm:$0xff] %v10414_v46  ;;  %12085 = vst [vmem:[#allocation102_spill] sm:$0xff] %v10425_v36  ;;  %v3476_v46 = vrot.slane %v10295_v23, 7  ;;  %v10447_v14 = vsel %vm603_vm2, %v3473_v27, %v3474_v30  ;;  %v10454_v10 = vpack.c.bf16 %v10439_v34, %v10443_v19  ;;  %v10466_v56 = vsel %vm603_vm2, %v3474_v30, %v3475_v38 }
 0x3aa   : > { %12086 = vst [vmem:[#allocation104_spill] sm:$0xff] %v10429_v58  ;;  %12087 = vst [vmem:[#allocation18_spill] sm:$0xff] %v10435_v42  ;;  %v10458_v42 = vsel %vm603_vm2, %v3472_v13, %v3473_v27  ;;  %v3458_v27 = vrot.slane %v10098_v8, 7  ;;  %v4048_v30 = vrot.slane %v10336_v59, 1  ;;  %v3462_v59 = vrot.slane %v10142_v16, 7 }
 0x3ab   : > { %12088 = vst [vmem:[#allocation19_spill] sm:$0xff] %v10439_v34  ;;  %12089 = vst [vmem:[#allocation20_spill] sm:$0xff] %v10443_v19  ;;  %v10462_v62 = vsel %vm603_vm2, %v3475_v38, %v3476_v46  ;;  %v10470_v60 = vpack.c.bf16 %v10447_v14, %v10458_v42  ;;  %7399 = vmatmul.mubr.bf16.vlgmr.msra.gmra.mrb[32].mxu1 %v10401_v50  ;;  %v4047_v19 = vrot.slane %v10328_v54, 1  ;;  %v4016_v38 = vrot.slane %v9979_v33, 1  ;;  %v8397_v33 = vld [vmem:[%s11446_s5 + $0x90] sm:$0xff]   ;;  %v12163_v58 = vld [vmem:[#allocation84_spill] sm:$0xff] }
 0x3ac   : > { %12090 = vst [vmem:[#allocation21_spill] sm:$0xff] %v10447_v14  ;;  %12091 = vst [vmem:[#allocation105_spill] sm:$0xff] %v10454_v10  ;;  %v10474_v34 = vpack.c.bf16 %v10462_v62, %v10466_v56  ;;  %v3477_v10 = vrot.slane %v10331_v18, 7  ;;  %7402 = vmatprep.mubr.bf16.mxu1 %v10227_v1  ;;  %7435 = vmatpush3.bf16.msra.mxu1 %v10179_v41  ;;  %v4017_v50 = vrot.slane %v9990_v40, 1  ;;  %v3456_v40 = vrot.slane %v10057_v52, 7 }
 0x3ad   : > { %12092 = vst [vmem:[#allocation108_spill] sm:$0xff] %v10458_v42  ;;  %12093 = vst [vmem:[#allocation22_spill] sm:$0xff] %v10462_v62  ;;  %7436 = vmatprep.subr.bf16.mxu1 %v8396_v4  ;;  %v10504_v1 = vsel %vm1185_vm3, %v4047_v19, %v4048_v30  ;;  %v3463_v54 = vrot.slane %v10152_v35, 7  ;;  %v12164_v36 = vrot.slane %v10057_v52, 1 }
 0x3ae   : > { %12094 = vst [vmem:[#allocation23_spill] sm:$0xff] %v10466_v56  ;;  %12095 = vst [vmem:[#allocation24_spill] sm:$0xff] %v10470_v60  ;;  %v10488_v60 = vsel %vm603_vm2, %v3477_v10, %v3478_v57  ;;  %v10492_v13 = vsel %vm603_vm2, %v3476_v46, %v3477_v10  ;;  %v12101_v57 = vrot.slane %v10341_v51, 1  ;;  %v4015_v46 = vrot.slane %v9967_v24, 1  ;;  %v12161_v45 = vld [vmem:[#allocation101_spill] sm:$0xff] }
 0x3af   : > { %12096 = vst [vmem:[#allocation25_spill] sm:$0xff] %v10474_v34  ;;  %v3459_v34 = vrot.slane %v10106_v12, 7  ;;  %12097 = vst [vmem:[#allocation72_spill] sm:$0xff] %v10488_v60  ;;  %v10500_v41 = vpack.c.bf16 %v10488_v60, %v10492_v13  ;;  %v12104_v60 = vrot.slane %v10061_v39, 7  ;;  %v10535_v62 = vsel %vm1185_vm3, %v4016_v38, %v4017_v50 }
 0x3b0   : > { %12098 = vst [vmem:[#allocation74_spill] sm:$0xff] %v10492_v13  ;;  %12100 = vst [vmem:[#allocation27_spill] sm:$0xff] %v10504_v1  ;;  %v10510_v10 = vsel %vm1185_vm3, %v12101_v57, %v4047_v19  ;;  %v12105_v13 = vrot.slane %v10053_v2, 7  ;;  %v3460_v57 = vrot.slane %v10102_v9, 7  ;;  %v10531_v24 = vsel %vm1185_vm3, %v4015_v46, %v4016_v38  ;;  %7437 = vmatpush3.bf16.msra.mxu1 %v8396_v4 }
 0x3b1   : > { %12099 = vst [vmem:[#allocation26_spill] sm:$0xff] %v10500_v41  ;;  %12102 = vst [vmem:[#allocation28_spill] sm:$0xff] %v10510_v10  ;;  %v10518_v41 = vpack.c.bf16 %v10504_v1, %v10510_v10  ;;  %v3461_v10 = vrot.slane %v10139_v37, 7  ;;  %v12111_v38 = vrot.slane %v10050_v55, 7  ;;  %v12112_v4 = vrot.slane %v10001_v3, 7  ;;  %7438 = vmatprep.subr.bf16.mxu1 %v8397_v33 }
 0x3b2   : > { %v10526_v19 = vsel %vm603_vm2, %v12105_v13, %v12104_v60  ;;  %12107 = vst [vmem:[#allocation53_spill] sm:$0xff] %v10531_v24  ;;  %12108 = vst [vmem:[#allocation30_spill] sm:$0xff] %v10535_v62  ;;  %v10568_v42 = vsel %vm603_vm2, %v3459_v34, %v3460_v57  ;;  %v10572_v56 = vsel %vm603_vm2, %v3458_v27, %v3459_v34  ;;  %v12116_v62 = vrot.slane %v10146_v11, 7 }
 0x3b3   : > { %12103 = vst [vmem:[#allocation29_spill] sm:$0xff] %v10518_v41  ;;  %12106 = vst [vmem:[#allocation75_spill] sm:$0xff] %v10526_v19  ;;  %v12109_v41 = vmov %v12104_v60  ;;  %v12110_v60 = vrot.slane %v10095_v6, 7  ;;  %v10558_v14 = vsel %vm603_vm2, %v12112_v4, %v12111_v38  ;;  %v8398_v38 = vld [vmem:[%s11446_s5 + $0x98] sm:$0xff]   ;;  %v10579_v4 = vsel %vm603_vm2, %v3461_v10, %v3462_v59  ;;  %7403 = vmatmul.mubr.bf16.gmra.mrb[0].mxu1 %v10280_v20 }
 0x3b4   : > { %v10541_v1 = vsel %vm603_vm2, %v12109_v41, %v3456_v40  ;;  %12113 = vst [vmem:[#allocation31_spill] sm:$0xff] %v10558_v14  ;;  %12115 = vst [vmem:[#allocation32_spill] sm:$0xff] %v10568_v42  ;;  %v4018_v34 = vrot.slane %v10006_v15, 1  ;;  %v12121_v11 = vrot.slane %v9969_v25, 1  ;;  %7406 = vmatprep.mubr.bf16.mxu1 %v10284_v0  ;;  %7439 = vmatpush3.bf16.msra.mxu1 %v8397_v33  ;;  %v4019_v15 = vrot.slane %v10001_v3, 1 }
 0x3b5   : > { %v10547_v13 = vsel %vm603_vm2, %v12110_v60, %v3458_v27  ;;  %v12114_v41 = vmov %v12110_v60  ;;  %v10595_v27 = vpack.c.bf16 %v10315_v63, %v10558_v14  ;;  %v10599_v24 = vpack.c.bf16 %v10541_v1, %v10526_v19  ;;  %7440 = vmatprep.subr.bf16.mxu1 %v8398_v38  ;;  %v12157_v17 = vld [vmem:[#allocation23_spill] sm:$0xff] }
 0x3b6   : > { %v10564_v60 = vsel %vm603_vm2, %v3456_v40, %v12114_v41  ;;  %v10585_v40 = vsel %vm603_vm2, %v3463_v54, %v12116_v62  ;;  %v10589_v41 = vsel %vm603_vm2, %v3462_v59, %v3463_v54  ;;  %v12122_v54 = vrot.slane %v10133_v44, 1 }
 0x3b7   : > { %12117 = vst [vmem:[#allocation33_spill] sm:$0xff] %v10585_v40  ;;  %12118 = vst [vmem:[#allocation54_spill] sm:$0xff] %v10595_v27  ;;  %v10603_v62 = vpack.c.bf16 %v10547_v13, %v10564_v60  ;;  %v10616_v20 = vsel %vm603_vm2, %v3460_v57, %v3461_v10  ;;  %v4020_v19 = vrot.slane %v10050_v55, 1  ;;  %v4021_v63 = vrot.slane %v10053_v2, 1  ;;  %v8399_v10 = vld [vmem:[%s11446_s5 + $0xa0] sm:$0xff]   ;;  %v8400_v57 = vld [vmem:[%s11446_s5 + $0xa8] sm:$0xff]  }
 0x3b8   : > { %12119 = vst [vmem:[#allocation55_spill] sm:$0xff] %v10599_v24  ;;  %v10611_v59 = vsel %vm1185_vm3, %v12122_v54, %v12121_v11  ;;  %12123 = vst [vmem:[#allocation35_spill] sm:$0xff] %v10616_v20  ;;  %v10623_v14 = vpack.c.bf16 %v10568_v42, %v10572_v56  ;;  %v10627_v11 = vpack.c.bf16 %v10579_v4, %v10616_v20  ;;  %v12128_v2 = vrot.slane %v9969_v25, 1  ;;  %v12159_v32 = vld [vmem:[#allocation74_spill] sm:$0xff] }
 0x3b9   : > { %12120 = vst [vmem:[#allocation34_spill] sm:$0xff] %v10603_v62  ;;  %v10631_v33 = vpack.c.bf16 %v10585_v40, %v10589_v41  ;;  %v10641_v0 = vsel %vm1185_vm3, %v4048_v30, %v12122_v54  ;;  %v10651_v3 = vsel %vm1185_vm3, %v4017_v50, %v4018_v34  ;;  %v11652_v30 = vrot.slane %v10185_v49, 1  ;;  %7441 = vmatpush3.bf16.msra.mxu1 %v8398_v38  ;;  %v12160_v40 = vld [vmem:[#allocation72_spill] sm:$0xff] }
 0x3ba   : > { %12124 = vst [vmem:[#allocation36_spill] sm:$0xff] %v10623_v14  ;;  %12125 = vst [vmem:[#allocation37_spill] sm:$0xff] %v10627_v11  ;;  %v10647_v55 = vsel %vm1185_vm3, %v12128_v2, %v4015_v46  ;;  %v4033_v54 = vrot.slane %v10188_v28, 1  ;;  %v10663_v2 = vsel %vm1185_vm3, %v4019_v15, %v4020_v19  ;;  %v10667_v50 = vsel %vm1185_vm3, %v4020_v19, %v4021_v63 }
 0x3bb   : > { %12126 = vst [vmem:[#allocation56_spill] sm:$0xff] %v10631_v33  ;;  %12127 = vst [vmem:[#allocation57_spill] sm:$0xff] %v10641_v0  ;;  %v10655_v33 = vsel %vm1185_vm3, %v4018_v34, %v4019_v15  ;;  %7442 = vmatprep.subr.bf16.mxu1 %v8399_v10  ;;  %v12131_v44 = vrot.slane %v10061_v39, 1  ;;  %v4034_v15 = vrot.slane %v10196_v21, 1  ;;  %v4035_v46 = vrot.slane %v10192_v43, 1  ;;  %7407 = vmatmul.mubr.bf16.gmra.mrb[4].mxu1 %v10595_v27 }
 0x3bc   : > { %12129 = vst [vmem:[#allocation38_spill] sm:$0xff] %v10663_v2  ;;  %12130 = vst [vmem:[#allocation39_spill] sm:$0xff] %v10667_v50  ;;  %v10685_v19 = vsel %vm1185_vm3, %v11652_v30, %v4033_v54  ;;  %v4036_v34 = vrot.slane %v10238_v61, 1  ;;  %v4037_v25 = vrot.slane %v10241_v26, 1  ;;  %v4038_v0 = vrot.slane %v10249_v48, 1  ;;  %7410 = vmatprep.mubr.bf16.mxu1 %v10599_v24  ;;  %v8401_v24 = vld [vmem:[%s11446_s5 + $0xb0] sm:$0xff]  }
 0x3bd   : > { %v10678_v38 = vsel %vm1185_vm3, %v4021_v63, %v12131_v44  ;;  %12133 = vst [vmem:[#allocation41_spill] sm:$0xff] %v10685_v19  ;;  %v4039_v50 = vrot.slane %v10245_v31, 1  ;;  %v10695_v44 = vsel %vm1185_vm3, %v4033_v54, %v4034_v15  ;;  %v10699_v63 = vsel %vm1185_vm3, %v4034_v15, %v4035_v46  ;;  %7443 = vmatpush3.bf16.msra.mxu1 %v8399_v10 }
 0x3be   : > { %12132 = vst [vmem:[#allocation40_spill] sm:$0xff] %v10678_v38  ;;  %12134 = vst [vmem:[#allocation58_spill] sm:$0xff] %v10695_v44  ;;  %v4040_v30 = vrot.slane %v10289_v7, 1  ;;  %v4041_v38 = vrot.slane %v10292_v5, 1  ;;  %v10706_v2 = vpack.c.bf16 %v10695_v44, %v10685_v19  ;;  %v10710_v27 = vsel %vm1185_vm3, %v4035_v46, %v4036_v34  ;;  %7444 = vmatprep.subr.bf16.mxu1 %v8400_v57  ;;  %v12215_v7 = vld [vmem:[#allocation116_spill] sm:$0xff] }
 0x3bf   : > { %12135 = vst [vmem:[#allocation61_spill] sm:$0xff] %v10699_v63  ;;  %12137 = vst [vmem:[#allocation43_spill] sm:$0xff] %v10710_v27  ;;  %v10714_v54 = vsel %vm1185_vm3, %v4037_v25, %v4038_v0  ;;  %v4042_v15 = vrot.slane %v10299_v22, 1  ;;  %v10722_v10 = vpack.c.bf16 %v10710_v27, %v10699_v63  ;;  %v10734_v44 = vsel %vm1185_vm3, %v4038_v0, %v4039_v50  ;;  %v12189_v63 = vld [vmem:[#allocation90_spill] sm:$0xff] }
 0x3c0   : > { %12136 = vst [vmem:[#allocation42_spill] sm:$0xff] %v10706_v2  ;;  %12138 = vst [vmem:[#allocation44_spill] sm:$0xff] %v10714_v54  ;;  %v10726_v2 = vsel %vm1185_vm3, %v4036_v34, %v4037_v25  ;;  %v10730_v46 = vsel %vm1185_vm3, %v4039_v50, %v4040_v30  ;;  %v10750_v34 = vsel %vm1185_vm3, %v4040_v30, %v4041_v38  ;;  %v4043_v50 = vrot.slane %v10295_v23, 1  ;;  %v12195_v22 = vld [vmem:[#allocation26_spill] sm:$0xff] }
 0x3c1   : > { %12139 = vst [vmem:[#allocation45_spill] sm:$0xff] %v10722_v10  ;;  %12140 = vst [vmem:[#allocation62_spill] sm:$0xff] %v10730_v46  ;;  %v10738_v19 = vpack.c.bf16 %v10714_v54, %v10726_v2  ;;  %v10742_v27 = vpack.c.bf16 %v10730_v46, %v10734_v44  ;;  %v10746_v25 = vsel %vm1185_vm3, %v4041_v38, %v4042_v15  ;;  %v4045_v10 = vrot.slane %v10333_v47, 1  ;;  %v12192_v54 = vld [vmem:[#allocation105_spill] sm:$0xff] }
 0x3c2   : > { %12141 = vst [vmem:[#allocation63_spill] sm:$0xff] %v10734_v44  ;;  %12144 = vst [vmem:[#allocation13_spill] sm:$0xff] %v10746_v25  ;;  %v10754_v0 = vpack.c.bf16 %v10746_v25, %v10750_v34  ;;  %7445 = vmatpush3.bf16.msra.mxu1 %v8400_v57  ;;  %v12148_v46 = vrot.slane %v10057_v52, 1  ;;  %v4028_v30 = vrot.slane %v10139_v37, 1  ;;  %v4029_v38 = vrot.slane %v10142_v16, 1  ;;  %v8402_v25 = vld [vmem:[%s11446_s5 + $0xb8] sm:$0xff]  }
 0x3c3   : > { %12142 = vst [vmem:[#allocation46_spill] sm:$0xff] %v10738_v19  ;;  %12143 = vst [vmem:[#allocation47_spill] sm:$0xff] %v10742_v27  ;;  %v4044_v19 = vrot.slane %v10331_v18, 1  ;;  %v12147_v27 = vrot.slane %v10095_v6, 1  ;;  %7446 = vmatprep.subr.bf16.mxu1 %v8401_v24  ;;  %7411 = vmatmul.mubr.bf16.gmra.mrb[8].mxu1 %v10603_v62  ;;  %v12153_v62 = vld [vmem:[#allocation20_spill] sm:$0xff]  ;;  %v12166_v20 = vrot.slane %v10106_v12, 1 }
 0x3c4   : > { %12145 = vst [vmem:[#allocation48_spill] sm:$0xff] %v10750_v34  ;;  %12146 = vst [vmem:[#allocation64_spill] sm:$0xff] %v10754_v0  ;;  %v4030_v0 = vrot.slane %v10152_v35, 1  ;;  %v10779_v34 = vsel %vm1185_vm3, %v4042_v15, %v4043_v50  ;;  %7414 = vmatprep.mubr.bf16.mxu1 %v10623_v14  ;;  %v4027_v15 = vrot.slane %v10102_v9, 1  ;;  %v12167_v14 = vrot.slane %v10098_v8, 1  ;;  %v12176_v31 = vld [vmem:[#allocation39_spill] sm:$0xff] }
 0x3c5   : > { %v10765_v44 = vsel %vm1185_vm3, %v12148_v46, %v12147_v27  ;;  %v10775_v57 = vsel %vm1185_vm3, %v4043_v50, %v4044_v19  ;;  %v12149_v27 = vrot.slane %v10341_v51, 1  ;;  %v10789_v35 = vsel %vm1185_vm3, %v4044_v19, %v4045_v10  ;;  %v12177_v5 = vld [vmem:[#allocation40_spill] sm:$0xff]  ;;  %v12188_v29 = vld [vmem:[#allocation57_spill] sm:$0xff] }
 0x3c6   : > { %v10793_v16 = vpack.c.bf16 %v10775_v57, %v10779_v34  ;;  %7447 = vmatpush3.bf16.msra.mxu1 %v8401_v24  ;;  %v12158_v24 = vld [vmem:[#allocation22_spill] sm:$0xff]  ;;  %v10845_v9 = vsel %vm1185_vm3, %v12167_v14, %v12166_v20  ;;  %v12168_v50 = vmov %v12167_v14  ;;  %v12169_v19 = vrot.slane %v10095_v6, 1  ;;  %v12181_v47 = vld [vmem:[#allocation43_spill] sm:$0xff]  ;;  %v12193_v18 = vld [vmem:[#allocation24_spill] sm:$0xff] }
 0x3c7   : > { %v10785_v46 = vsel %vm1185_vm3, %v4045_v10, %v12149_v27  ;;  %7448 = vmatprep.subr.bf16.mxu1 %v8402_v25  ;;  %v8403_v27 = vld [vmem:[%s11446_s5 + $0xc0] sm:$0xff]   ;;  %v12165_v10 = vrot.slane %v10061_v39, 1  ;;  %v12170_v39 = vld [vmem:[#allocation112_spill] sm:$0xff]  ;;  %v10868_v14 = vsel %vm1185_vm3, %v4029_v38, %v4030_v0 }
 0x3c8   : > { %12150 = vst [vmem:[#allocation65_spill] sm:$0xff] %v10785_v46  ;;  %12151 = vst [vmem:[#allocation66_spill] sm:$0xff] %v10793_v16  ;;  %v10797_v37 = vpack.c.bf16 %v10785_v46, %v10789_v35  ;;  %v10853_v52 = vsel %vm1185_vm3, %v12169_v19, %v12168_v50  ;;  %v4031_v53 = vrot.slane %v12170_v39, 1  ;;  %v10872_v50 = vsel %vm1185_vm3, %v4028_v30, %v4029_v38  ;;  %v12183_v23 = vld [vmem:[#allocation62_spill] sm:$0xff]  ;;  %v12220_v38 = vld [vmem:[#allocation93_spill] sm:$0xff] }
 0x3c9   : > { %v10837_v42 = vsel %vm1185_vm3, %v12165_v10, %v12164_v36  ;;  %v10858_v36 = vsel %vm1185_vm3, %v4027_v15, %v4028_v30  ;;  %v12171_v10 = vmov %v12166_v20  ;;  %v12172_v19 = vrot.slane %v10185_v49, 1  ;;  %v12175_v30 = vld [vmem:[#allocation38_spill] sm:$0xff]  ;;  %v12182_v51 = vld [vmem:[#allocation63_spill] sm:$0xff] }
 0x3ca   : > { %12152 = vst [vmem:[#allocation67_spill] sm:$0xff] %v10797_v37  ;;  %v12156_v37 = vld [vmem:[#allocation21_spill] sm:$0xff]  ;;  %v10864_v20 = vsel %vm1185_vm3, %v12171_v10, %v4027_v15  ;;  %7449 = vmatpush3.bf16.msra.mxu1 %v8402_v25  ;;  %v10882_v12 = vsel %vm1185_vm3, %v4030_v0, %v4031_v53  ;;  %v12178_v0 = vld [vmem:[#allocation56_spill] sm:$0xff]  ;;  %v12191_v15 = vld [vmem:[#allocation18_spill] sm:$0xff] }
 0x3cb   : > { %v10878_v39 = vsel %vm1185_vm3, %v4031_v53, %v12172_v19  ;;  %7486 = vmatprep.subr.bf16.mxu1 %v8403_v27  ;;  %7415 = vmatmul.mubr.bf16.gmra.mrb[12].mxu1 %v10627_v11  ;;  %v12190_v53 = vld [vmem:[#allocation17_spill] sm:$0xff]  ;;  %v10946_v11 = vpack.c.bf16 %v10611_v59, %v12188_v29  ;;  %v8404_v19 = vld [vmem:[%s11446_s5 + $0xc8] sm:$0xff]  }
 0x3cc   : > { %7418 = vmatprep.mubr.bf16.mxu1 %v12178_v0  ;;  %v12184_v0 = vld [vmem:[#allocation48_spill] sm:$0xff]  ;;  %v12194_v10 = vld [vmem:[#allocation25_spill] sm:$0xff] }
 0x3cd   : > { %v12196_v25 = vld [vmem:[#allocation29_spill] sm:$0xff]  ;;  %12197 = vst [vmem:[#allocation68_spill] sm:$0xff] %v10946_v11 }
 0x3d1   : > { %v12216_v46 = vld [vmem:[#allocation67_spill] sm:$0xff] }
 0x3d3   : > { %7419 = vmatmul.mubr.bf16.gmra.mrb[16].mxu1 %v12189_v63  ;;  %v12214_v63 = vld [vmem:[#allocation89_spill] sm:$0xff] }
 0x3d4   : > { %7422 = vmatprep.mubr.bf16.mxu1 %v12190_v53  ;;  %v4357_v29 = vpack.c.bf16 %v12215_v7, %v12214_v63  ;;  %v8413_v7 = vld [vmem:[%s11446_s5 + $0x110] sm:$0xff]   ;;  %v12222_v63 = vld [vmem:[#allocation126_spill] sm:$0xff] }
 0x3db   : > { %7423 = vmatmul.mubr.bf16.gmra.mrb[20].mxu1 %v12191_v15  ;;  %v12198_v15 = vld [vmem:[#allocation53_spill] sm:$0xff] }
 0x3dc   : > { %7426 = vmatprep.mubr.bf16.mxu1 %v12192_v54  ;;  %v10953_v53 = vpack.c.bf16 %v12198_v15, %v10647_v55  ;;  %v12213_v54 = vld [vmem:[#allocation64_spill] sm:$0xff] }
 0x3de   : > { %12199 = vst [vmem:[#allocation71_spill] sm:$0xff] %v10953_v53 }
 0x3e3   : > { %7427 = vmatmul.mubr.bf16.gmra.mrb[24].mxu1 %v12193_v18  ;;  %v8406_v18 = vld [vmem:[%s11446_s5 + $0xd8] sm:$0xff]  }
 0x3e4   : > { %7430 = vmatprep.mubr.bf16.mxu1 %v12194_v10 }
 0x3eb   : > { %7431 = vmatmul.mubr.bf16.gmra.mrb[36].mxu1 %v12195_v22  ;;  %v12200_v22 = vld [vmem:[#allocation30_spill] sm:$0xff] }
 0x3ec   : > { %7450 = vmatprep.mubr.bf16.mxu1 %v12196_v25  ;;  %v8405_v25 = vld [vmem:[%s11446_s5 + $0xd0] sm:$0xff]   ;;  %v10962_v10 = vpack.c.bf16 %v10651_v3, %v12200_v22 }
 0x3ee   : > { %12201 = vst [vmem:[#allocation49_spill] sm:$0xff] %v10962_v10 }
 0x3f3   : > { %7451 = vmatmul.mubr.bf16.vlgmr.msra.gmra.mrb[40].mxu1 %v10946_v11  ;;  %v10969_v11 = vpack.c.bf16 %v12175_v30, %v10655_v33 }
 0x3f4   : > { %7454 = vmatprep.mubr.bf16.mxu1 %v10953_v53  ;;  %7487 = vmatpush3.bf16.msra.mxu1 %v8403_v27  ;;  %v8407_v27 = vld [vmem:[%s11446_s5 + $0xe0] sm:$0xff]   ;;  %v8408_v53 = vld [vmem:[%s11446_s5 + $0xe8] sm:$0xff]  }
 0x3f5   : > { %7488 = vmatprep.subr.bf16.mxu1 %v8404_v19  ;;  %12202 = vst [vmem:[#allocation50_spill] sm:$0xff] %v10969_v11 }
 0x3f8   : > { %7489 = vmatpush3.bf16.msra.mxu1 %v8404_v19  ;;  %v10978_v19 = vpack.c.bf16 %v12177_v5, %v12176_v31 }
 0x3f9   : > { %7490 = vmatprep.subr.bf16.mxu1 %v8405_v25 }
 0x3fa   : > { %12203 = vst [vmem:[#allocation52_spill] sm:$0xff] %v10978_v19 }
 0x3fb   : > { %7455 = vmatmul.mubr.bf16.gmra.mrb[0].mxu1 %v10962_v10  ;;  %v10985_v10 = vpack.c.bf16 %v10765_v44, %v10837_v42 }
 0x3fc   : > { %7458 = vmatprep.mubr.bf16.mxu1 %v10969_v11  ;;  %7491 = vmatpush3.bf16.msra.mxu1 %v8405_v25  ;;  %v10994_v25 = vpack.c.bf16 %v10845_v9, %v10853_v52  ;;  %v8410_v11 = vld [vmem:[%s11446_s5 + $0xf8] sm:$0xff]  }
 0x3fd   : > { %7492 = vmatprep.subr.bf16.mxu1 %v8406_v18  ;;  %12204 = vst [vmem:[#allocation118_spill] sm:$0xff] %v10985_v10 }
 0x3fe   : > { %12205 = vst [vmem:[#allocation119_spill] sm:$0xff] %v10994_v25 }
 0x400   : > { %7493 = vmatpush3.bf16.msra.mxu1 %v8406_v18  ;;  %v8409_v18 = vld [vmem:[%s11446_s5 + $0xf0] sm:$0xff]  }
 0x401   : > { %7494 = vmatprep.subr.bf16.mxu1 %v8407_v27 }
 0x403   : > { %7459 = vmatmul.mubr.bf16.gmra.mrb[4].mxu1 %v10978_v19  ;;  %v11001_v19 = vpack.c.bf16 %v10858_v36, %v10864_v20 }
 0x404   : > { %7462 = vmatprep.mubr.bf16.mxu1 %v10985_v10  ;;  %7495 = vmatpush3.bf16.msra.mxu1 %v8407_v27  ;;  %v11010_v27 = vpack.c.bf16 %v10868_v14, %v10872_v50  ;;  %v11014_v10 = vpack.c.bf16 %v10878_v39, %v10882_v12 }
 0x405   : > { %7496 = vmatprep.subr.bf16.mxu1 %v8408_v53  ;;  %12206 = vst [vmem:[#allocation124_spill] sm:$0xff] %v11001_v19 }
 0x406   : > { %12207 = vst [vmem:[#allocation125_spill] sm:$0xff] %v11010_v27  ;;  %12208 = vst [vmem:[#allocation130_spill] sm:$0xff] %v11014_v10 }
 0x408   : > { %7497 = vmatpush3.bf16.msra.mxu1 %v8408_v53  ;;  %v8411_v53 = vld [vmem:[%s11446_s5 + $0x100] sm:$0xff]  }
 0x409   : > { %7498 = vmatprep.subr.bf16.mxu1 %v8409_v18 }
 0x40b   : > { %7463 = vmatmul.mubr.bf16.gmra.mrb[8].mxu1 %v10994_v25  ;;  %v12211_v25 = vld [vmem:[#allocation46_spill] sm:$0xff] }
 0x40c   : > { %7466 = vmatprep.mubr.bf16.mxu1 %v11001_v19  ;;  %7499 = vmatpush3.bf16.msra.mxu1 %v8409_v18  ;;  %v12209_v18 = vld [vmem:[#allocation42_spill] sm:$0xff]  ;;  %v12210_v19 = vld [vmem:[#allocation45_spill] sm:$0xff] }
 0x40d   : > { %7500 = vmatprep.subr.bf16.mxu1 %v8410_v11 }
 0x410   : > { %7501 = vmatpush3.bf16.msra.mxu1 %v8410_v11  ;;  %v12212_v11 = vld [vmem:[#allocation47_spill] sm:$0xff] }
 0x411   : > { %7538 = vmatprep.subr.bf16.mxu1 %v8411_v53 }
 0x413   : > { %7467 = vmatmul.mubr.bf16.gmra.mrb[12].mxu1 %v11010_v27 }
 0x414   : > { %7470 = vmatprep.mubr.bf16.mxu1 %v11014_v10  ;;  %v12217_v10 = vld [vmem:[#allocation123_spill] sm:$0xff] }
 0x41b   : > { %7471 = vmatmul.mubr.bf16.gmra.mrb[16].mxu1 %v12209_v18  ;;  %v8412_v18 = vld [vmem:[%s11446_s5 + $0x108] sm:$0xff]  }
 0x41c   : > { %7474 = vmatprep.mubr.bf16.mxu1 %v12210_v19  ;;  %v12218_v19 = vld [vmem:[#allocation129_spill] sm:$0xff] }
 0x41d   : > { %v4359_v27 = vpack.c.bf16 %v12218_v19, %v12217_v10  ;;  %v8414_v10 = vld [vmem:[%s11446_s5 + $0x118] sm:$0xff]  }
 0x41e   : > { %v12224_v19 = vld [vmem:[#allocation140_spill] sm:$0xff] }
 0x423   : > { %7475 = vmatmul.mubr.bf16.gmra.mrb[20].mxu1 %v12211_v25  ;;  %v12219_v25 = vld [vmem:[#allocation94_spill] sm:$0xff] }
 0x424   : > { %7478 = vmatprep.mubr.bf16.mxu1 %v12212_v11  ;;  %v12221_v11 = vpack.c.bf16 %v12219_v25, %v12220_v38  ;;  %v8415_v25 = vld [vmem:[%s11446_s5 + $0x120] sm:$0xff]  }
 0x42b   : > { %7479 = vmatmul.mubr.bf16.gmra.mrb[24].mxu1 %v12213_v54 }
 0x42c   : > { %7482 = vmatprep.mubr.bf16.mxu1 %v10793_v16  ;;  %v12225_v16 = vld [vmem:[#allocation75_spill] sm:$0xff] }
 0x42d   : > { %v4361_v38 = vpack.c.bf16 %v12225_v16, %v12224_v19  ;;  %v12227_v16 = vpack.c.bf16 %v10572_v56, %v10547_v13  ;;  %v12231_v56 = vpack.c.bf16 %v10589_v41, %v10579_v4  ;;  %v8419_v13 = vld [vmem:[%s11446_s5 + $0x140] sm:$0xff]   ;;  %v12236_v19 = vld [vmem:[#allocation83_spill] sm:$0xff]  ;;  %v12241_v41 = vld [vmem:[#allocation102_spill] sm:$0xff] }
 0x433   : > { %7483 = vmatmul.mubr.bf16.gmra.mrb[44].mxu1 %v12216_v46 }
 0x434   : > { %7502 = vmatprep.mubr.bf16.mxu1 %v4357_v29  ;;  %v12223_v29 = vld [vmem:[#allocation31_spill] sm:$0xff] }
 0x435   : > { %v4360_v46 = vpack.c.bf16 %v12223_v29, %v12222_v63  ;;  %v12233_v63 = vld [vmem:[#allocation33_spill] sm:$0xff] }
 0x43b   : > { %7503 = vmatmul.mubr.bf16.vlgmr.msra.gmra.mrb[48].mxu1 %v12221_v11  ;;  %v12228_v11 = vld [vmem:[#allocation35_spill] sm:$0xff] }
 0x43c   : > { %7506 = vmatprep.mubr.bf16.mxu1 %v4359_v27  ;;  %7539 = vmatpush3.bf16.msra.mxu1 %v8411_v53  ;;  %v8416_v53 = vld [vmem:[%s11446_s5 + $0x128] sm:$0xff]   ;;  %v12226_v27 = vpack.c.bf16 %v10564_v60, %v10541_v1 }
 0x43d   : > { %7540 = vmatprep.subr.bf16.mxu1 %v8412_v18  ;;  %v12232_v60 = vld [vmem:[#allocation78_spill] sm:$0xff] }
 0x43e   : > { %v12234_v29 = vpack.c.bf16 %v12232_v60, %v12233_v63 }
 0x440   : > { %7541 = vmatpush3.bf16.msra.mxu1 %v8412_v18  ;;  %v8418_v18 = vld [vmem:[%s11446_s5 + $0x138] sm:$0xff]  }
 0x441   : > { %7542 = vmatprep.subr.bf16.mxu1 %v8413_v7 }
 0x443   : > { %7507 = vmatmul.mubr.bf16.gmra.mrb[0].mxu1 %v4360_v46  ;;  %v8417_v46 = vld [vmem:[%s11446_s5 + $0x130] sm:$0xff]  }
 0x444   : > { %7510 = vmatprep.mubr.bf16.mxu1 %v4361_v38  ;;  %7543 = vmatpush3.bf16.msra.mxu1 %v8413_v7  ;;  %v12229_v7 = vld [vmem:[#allocation32_spill] sm:$0xff] }
 0x445   : > { %7544 = vmatprep.subr.bf16.mxu1 %v8414_v10  ;;  %v12230_v1 = vpack.c.bf16 %v12228_v11, %v12229_v7  ;;  %v12246_v11 = vpack.c.bf16 %v12157_v17, %v12156_v37  ;;  %v12247_v7 = vpack.c.bf16 %v12159_v32, %v12158_v24  ;;  %v12251_v37 = vld [vmem:[#allocation96_spill] sm:$0xff] }
 0x446   : > { %v12252_v17 = vpack.c.bf16 %v12163_v58, %v12251_v37  ;;  %v8421_v58 = vld [vmem:[%s11446_s5 + $0x150] sm:$0xff]  }
 0x448   : > { %7545 = vmatpush3.bf16.msra.mxu1 %v8414_v10  ;;  %v12235_v10 = vld [vmem:[#allocation95_spill] sm:$0xff] }
 0x449   : > { %7546 = vmatprep.subr.bf16.mxu1 %v8415_v25  ;;  %v12237_v38 = vpack.c.bf16 %v12235_v10, %v12236_v19 }
 0x44b   : > { %7511 = vmatmul.mubr.bf16.gmra.mrb[4].mxu1 %v12226_v27  ;;  %v12242_v27 = vpack.c.bf16 %v12153_v62, %v12241_v41  ;;  %v12253_v41 = vld [vmem:[#allocation80_spill] sm:$0xff] }
 0x44c   : > { %7514 = vmatprep.mubr.bf16.mxu1 %v12227_v16  ;;  %7547 = vmatpush3.bf16.msra.mxu1 %v8415_v25  ;;  %v12238_v25 = vld [vmem:[#allocation104_spill] sm:$0xff] }
 0x44d   : > { %7548 = vmatprep.subr.bf16.mxu1 %v8416_v53  ;;  %v12243_v16 = vld [vmem:[#allocation108_spill] sm:$0xff] }
 0x450   : > { %7549 = vmatpush3.bf16.msra.mxu1 %v8416_v53  ;;  %v12239_v53 = vld [vmem:[#allocation16_spill] sm:$0xff] }
 0x451   : > { %7550 = vmatprep.subr.bf16.mxu1 %v8417_v46  ;;  %v12240_v4 = vpack.c.bf16 %v12238_v25, %v12239_v53  ;;  %v12250_v25 = vld [vmem:[#allocation82_spill] sm:$0xff] }
 0x453   : > { %7515 = vmatmul.mubr.bf16.gmra.mrb[8].mxu1 %v12230_v1  ;;  %v12248_v1 = vpack.c.bf16 %v12161_v45, %v12160_v40 }
 0x454   : > { %7518 = vmatprep.mubr.bf16.mxu1 %v12231_v56  ;;  %7551 = vmatpush3.bf16.msra.mxu1 %v8417_v46  ;;  %v12244_v46 = vld [vmem:[#allocation19_spill] sm:$0xff] }
 0x455   : > { %7552 = vmatprep.subr.bf16.mxu1 %v8418_v18 }
 0x458   : > { %7553 = vmatpush3.bf16.msra.mxu1 %v8418_v18  ;;  %v12245_v18 = vpack.c.bf16 %v12243_v16, %v12244_v46  ;;  %v8420_v46 = vld [vmem:[%s11446_s5 + $0x148] sm:$0xff]  }
 0x459   : > { %7590 = vmatprep.subr.bf16.mxu1 %v8419_v13 }
 0x45b   : > { %7519 = vmatmul.mubr.bf16.gmra.mrb[12].mxu1 %v12234_v29 }
 0x45c   : > { %7522 = vmatprep.mubr.bf16.mxu1 %v12237_v38  ;;  %v12249_v38 = vld [vmem:[#allocation11_spill] sm:$0xff] }
 0x45d   : > { %v4629_v53 = vpack.c.bf16 %v12250_v25, %v12249_v38  ;;  %v8424_v25 = vld [vmem:[%s11446_s5 + $0x168] sm:$0xff]  }
 0x463   : > { %7523 = vmatmul.mubr.bf16.gmra.mrb[16].mxu1 %v12240_v4 }
 0x464   : > { %7526 = vmatprep.mubr.bf16.mxu1 %v12242_v27  ;;  %v12254_v27 = vld [vmem:[#allocation81_spill] sm:$0xff] }
 0x465   : > { %v4630_v16 = vpack.c.bf16 %v12254_v27, %v12253_v41  ;;  %v8427_v41 = vld [vmem:[%s11446_s5 + $0x180] sm:$0xff]   ;;  %v12267_v27 = vld [vmem:[#allocation112_spill] sm:$0xff] }
 0x46b   : > { %7527 = vmatmul.mubr.bf16.gmra.mrb[20].mxu1 %v12245_v18  ;;  %v12255_v18 = vld [vmem:[#allocation85_spill] sm:$0xff] }
 0x46c   : > { %7530 = vmatprep.mubr.bf16.mxu1 %v12246_v11  ;;  %v12256_v11 = vld [vmem:[#allocation87_spill] sm:$0xff] }
 0x473   : > { %7531 = vmatmul.mubr.bf16.gmra.mrb[24].mxu1 %v12247_v7  ;;  %v4631_v7 = vpack.c.bf16 %v12256_v11, %v12255_v18  ;;  %v12269_v18 = vpack.c.bf16 %v10238_v61, %v10192_v43  ;;  %v12270_v11 = vpack.c.bf16 %v10249_v48, %v10241_v26 }
 0x474   : > { %7534 = vmatprep.mubr.bf16.mxu1 %v12248_v1  ;;  %v12257_v1 = vld [vmem:[#allocation88_spill] sm:$0xff] }
 0x476   : > { %v7380_v56 = vpop.f32.mrb[28].mxu1 }
 0x477   : > { %v3789_v60 = vpop.f32.mrb[29].mxu1  ;;  %v12258_v56 = vld [vmem:[#allocation98_spill] sm:$0xff] }
 0x478   : > { %v7381_v62 = vpop.f32.mrb[30].mxu1  ;;  %v7348_v63 = vpop.f32.mrb[36].mxu0  ;;  %v4632_v60 = vpack.c.bf16 %v12258_v56, %v12257_v1  ;;  %v12274_v56 = vld [vmem:[#allocation138_spill] sm:$0xff] }
 0x479   : > { %v3791_v29 = vpop.f32.mrb[31].mxu1  ;;  %v3669_v10 = vpop.f32.mrb[37].mxu0  ;;  %v8422_v62 = vld [vmem:[%s11446_s5 + $0x158] sm:$0xff]   ;;  %v12259_v63 = vld [vmem:[#allocation97_spill] sm:$0xff] }
 0x47a   : > { %v7349_v19 = vpop.f32.mrb[38].mxu0  ;;  %v12260_v29 = vld [vmem:[#allocation99_spill] sm:$0xff] }
 0x47b   : > { %7535 = vmatmul.mubr.bf16.gmra.mrb[52].mxu1 %v12252_v17  ;;  %v3671_v32 = vpop.f32.mrb[39].mxu0  ;;  %v4633_v10 = vpack.c.bf16 %v12260_v29, %v12259_v63  ;;  %v12261_v19 = vld [vmem:[#allocation100_spill] sm:$0xff]  ;;  %v8425_v17 = vld [vmem:[%s11446_s5 + $0x170] sm:$0xff]  }
 0x47c   : > { %7554 = vmatprep.mubr.bf16.mxu1 %v4629_v53  ;;  %v4634_v38 = vpack.c.bf16 %v10095_v6, %v12261_v19  ;;  %v12262_v53 = vld [vmem:[#allocation73_spill] sm:$0xff]  ;;  %v12278_v63 = vld [vmem:[#allocation139_spill] sm:$0xff]  ;;  %v12284_v19 = vld [vmem:[#allocation146_spill] sm:$0xff] }
 0x47d   : > { %v4635_v37 = vpack.c.bf16 %v12262_v53, %v10098_v8  ;;  %v12263_v32 = vld [vmem:[#allocation69_spill] sm:$0xff]  ;;  %v12281_v29 = vld [vmem:[#allocation107_spill] sm:$0xff] }
 0x47e   : > { %v7400_v24 = vpop.f32.mrb[32].mxu1 }
 0x47f   : > { %v3882_v4 = vpop.f32.mrb[33].mxu1  ;;  %v12264_v24 = vld [vmem:[#allocation12_spill] sm:$0xff] }
 0x480   : > { %v7401_v45 = vpop.f32.mrb[34].mxu1  ;;  %v4636_v6 = vpack.c.bf16 %v12264_v24, %v12263_v32  ;;  %v8426_v4 = vld [vmem:[%s11446_s5 + $0x178] sm:$0xff]   ;;  %v8428_v24 = vld [vmem:[%s11446_s5 + $0x188] sm:$0xff]  }
 0x481   : > { %v3884_v40 = vpop.f32.mrb[35].mxu1  ;;  %v12265_v45 = vld [vmem:[#allocation111_spill] sm:$0xff] }
 0x482   : > { %v12266_v40 = vld [vmem:[#allocation115_spill] sm:$0xff] }
 0x483   : > { %7555 = vmatmul.mubr.bf16.vlgmr.msra.gmra.mrb[56].mxu1 %v4630_v16  ;;  %v4637_v8 = vpack.c.bf16 %v12266_v40, %v12265_v45  ;;  %v4638_v16 = vpack.c.bf16 %v10185_v49, %v12267_v27  ;;  %v12275_v49 = vld [vmem:[#allocation134_spill] sm:$0xff]  ;;  %v12297_v40 = vld [vmem:[#allocation61_spill] sm:$0xff] }
 0x484   : > { %7558 = vmatprep.mubr.bf16.mxu1 %v4631_v7  ;;  %7591 = vmatpush3.bf16.msra.mxu1 %v8419_v13  ;;  %v8423_v13 = vld [vmem:[%s11446_s5 + $0x160] sm:$0xff]   ;;  %v12271_v7 = vld [vmem:[#allocation135_spill] sm:$0xff] }
 0x485   : > { %7592 = vmatprep.subr.bf16.mxu1 %v8420_v46  ;;  %v12304_v27 = vld [vmem:[#allocation13_spill] sm:$0xff] }
 0x488   : > { %7593 = vmatpush3.bf16.msra.mxu1 %v8420_v46  ;;  %v12268_v46 = vpack.c.bf16 %v10196_v21, %v10188_v28  ;;  %v12280_v28 = vld [vmem:[#allocation110_spill] sm:$0xff] }
 0x489   : > { %7594 = vmatprep.subr.bf16.mxu1 %v8421_v58  ;;  %v12282_v43 = vpack.c.bf16 %v12280_v28, %v12281_v29  ;;  %v12316_v28 = vld [vmem:[#allocation55_spill] sm:$0xff]  ;;  %v12317_v29 = vld [vmem:[#allocation34_spill] sm:$0xff] }
 0x48b   : > { %7559 = vmatmul.mubr.bf16.gmra.mrb[0].mxu1 %v4632_v60  ;;  %v12276_v60 = vpack.c.bf16 %v12274_v56, %v12275_v49 }
 0x48c   : > { %7562 = vmatprep.mubr.bf16.mxu1 %v4633_v10  ;;  %7595 = vmatpush3.bf16.msra.mxu1 %v8421_v58  ;;  %v12272_v58 = vld [vmem:[#allocation122_spill] sm:$0xff] }
 0x48d   : > { %7596 = vmatprep.subr.bf16.mxu1 %v8422_v62  ;;  %v12273_v1 = vpack.c.bf16 %v12271_v7, %v12272_v58  ;;  %v12310_v58 = vld [vmem:[#allocation57_spill] sm:$0xff] }
 0x490   : > { %7597 = vmatpush3.bf16.msra.mxu1 %v8422_v62  ;;  %v12277_v62 = vld [vmem:[#allocation145_spill] sm:$0xff] }
 0x491   : > { %7598 = vmatprep.subr.bf16.mxu1 %v8423_v13  ;;  %v12279_v21 = vpack.c.bf16 %v12277_v62, %v12278_v63  ;;  %v12315_v62 = vld [vmem:[#allocation54_spill] sm:$0xff]  ;;  %v8437_v63 = vld [vmem:[%s11446_s5 + $0x1d0] sm:$0xff]  }
 0x493   : > { %7563 = vmatmul.mubr.bf16.gmra.mrb[4].mxu1 %v4634_v38 }
 0x494   : > { %7566 = vmatprep.mubr.bf16.mxu1 %v4635_v37  ;;  %7599 = vmatpush3.bf16.msra.mxu1 %v8423_v13  ;;  %v12283_v13 = vld [vmem:[#allocation106_spill] sm:$0xff] }
 0x495   : > { %7600 = vmatprep.subr.bf16.mxu1 %v8424_v25  ;;  %v12285_v38 = vpack.c.bf16 %v12283_v13, %v12284_v19  ;;  %v8442_v13 = vld [vmem:[%s11446_s5 + $0x1f8] sm:$0xff]  }
 0x496   : > { %v12320_v19 = vld [vmem:[#allocation56_spill] sm:$0xff] }
 0x498   : > { %7601 = vmatpush3.bf16.msra.mxu1 %v8424_v25  ;;  %v12286_v25 = vpack.c.bf16 %v10647_v55, %v10611_v59  ;;  %v8429_v55 = vld [vmem:[%s11446_s5 + $0x190] sm:$0xff]   ;;  %v8430_v59 = vld [vmem:[%s11446_s5 + $0x198] sm:$0xff]  }
 0x499   : > { %7602 = vmatprep.subr.bf16.mxu1 %v8425_v17 }
 0x49b   : > { %7567 = vmatmul.mubr.bf16.gmra.mrb[8].mxu1 %v4636_v6  ;;  %v12287_v6 = vpack.c.bf16 %v12200_v22, %v12198_v15  ;;  %v12289_v22 = vpack.c.bf16 %v12176_v31, %v12175_v30  ;;  %v8432_v15 = vld [vmem:[%s11446_s5 + $0x1a8] sm:$0xff]   ;;  %v12291_v31 = vpack.c.bf16 %v10853_v52, %v10765_v44  ;;  %v8434_v30 = vld [vmem:[%s11446_s5 + $0x1b8] sm:$0xff]   ;;  %v12293_v52 = vpack.c.bf16 %v10872_v50, %v10858_v36  ;;  %v8435_v44 = vld [vmem:[%s11446_s5 + $0x1c0] sm:$0xff]  }
 0x49c   : > { %7570 = vmatprep.mubr.bf16.mxu1 %v4637_v8  ;;  %7603 = vmatpush3.bf16.msra.mxu1 %v8425_v17  ;;  %v12298_v8 = vld [vmem:[#allocation58_spill] sm:$0xff] }
 0x49d   : > { %7604 = vmatprep.subr.bf16.mxu1 %v8426_v4  ;;  %v12299_v36 = vpack.c.bf16 %v12297_v40, %v12298_v8  ;;  %v8446_v40 = vld [vmem:[%s11446_s5 + $0x218] sm:$0xff]   ;;  %v12334_v8 = vld [vmem:[#allocation70_spill] sm:$0xff] }
 0x4a0   : > { %7605 = vmatpush3.bf16.msra.mxu1 %v8426_v4  ;;  %v12288_v4 = vpack.c.bf16 %v10655_v33, %v10651_v3  ;;  %v12290_v3 = vpack.c.bf16 %v10837_v42, %v12177_v5  ;;  %v8431_v33 = vld [vmem:[%s11446_s5 + $0x1a0] sm:$0xff]   ;;  %v12292_v5 = vpack.c.bf16 %v10864_v20, %v10845_v9  ;;  %v8433_v42 = vld [vmem:[%s11446_s5 + $0x1b0] sm:$0xff]   ;;  %v12294_v9 = vpack.c.bf16 %v10882_v12, %v10868_v14  ;;  %v12301_v14 = vld [vmem:[#allocation44_spill] sm:$0xff] }
 0x4a1   : > { %7642 = vmatprep.subr.bf16.mxu1 %v8427_v41  ;;  %v12295_v20 = vld [vmem:[#allocation41_spill] sm:$0xff]  ;;  %v12300_v12 = vpack.c.bf16 %v10726_v2, %v12181_v47  ;;  %v12302_v50 = vpack.c.bf16 %v12182_v51, %v12301_v14  ;;  %v8448_v14 = vld [vmem:[%s11446_s5 + $0x228] sm:$0xff]  }
 0x4a2   : > { %v12296_v45 = vpack.c.bf16 %v12295_v20, %v10878_v39  ;;  %v12305_v39 = vpack.c.bf16 %v10779_v34, %v12304_v27  ;;  %v12333_v20 = vld [vmem:[#allocation103_spill] sm:$0xff] }
 0x4a3   : > { %7571 = vmatmul.mubr.bf16.gmra.mrb[12].mxu1 %v4638_v16  ;;  %v12306_v16 = vpack.c.bf16 %v10789_v35, %v10775_v57  ;;  %v8436_v35 = vld [vmem:[%s11446_s5 + $0x1c8] sm:$0xff]   ;;  %v12314_v57 = vld [vmem:[#allocation132_spill] sm:$0xff]  ;;  %v8449_v27 = vld [vmem:[%s11446_s5 + $0x230] sm:$0xff]  }
 0x4a4   : > { %7574 = vmatprep.mubr.bf16.mxu1 %v12268_v46  ;;  %v12307_v46 = vld [vmem:[#allocation28_spill] sm:$0xff] }
 0x4ab   : > { %7575 = vmatmul.mubr.bf16.gmra.mrb[16].mxu1 %v12269_v18  ;;  %v12308_v18 = vld [vmem:[#allocation65_spill] sm:$0xff] }
 0x4ac   : > { %7578 = vmatprep.mubr.bf16.mxu1 %v12270_v11  ;;  %v12309_v47 = vpack.c.bf16 %v12307_v46, %v12308_v18  ;;  %v12339_v46 = vld [vmem:[#allocation59_spill] sm:$0xff]  ;;  %v12340_v18 = vld [vmem:[#allocation121_spill] sm:$0xff] }
 0x4b3   : > { %7579 = vmatmul.mubr.bf16.gmra.mrb[20].mxu1 %v12273_v1  ;;  %v12311_v1 = vld [vmem:[#allocation27_spill] sm:$0xff] }
 0x4b4   : > { %7582 = vmatprep.mubr.bf16.mxu1 %v12276_v60 }
 0x4bb   : > { %7583 = vmatmul.mubr.bf16.gmra.mrb[24].mxu1 %v12279_v21  ;;  %v8438_v21 = vld [vmem:[%s11446_s5 + $0x1d8] sm:$0xff]  }
 0x4bc   : > { %7586 = vmatprep.mubr.bf16.mxu1 %v12282_v43  ;;  %v8439_v43 = vld [vmem:[%s11446_s5 + $0x1e0] sm:$0xff]  }
 0x4be   : > { %v7432_v61 = vpop.f32.mrb[36].mxu1 }
 0x4bf   : > { %v4002_v10 = vpop.f32.mrb[37].mxu1  ;;  %v8440_v61 = vld [vmem:[%s11446_s5 + $0x1e8] sm:$0xff]  }
 0x4c0   : > { %v7433_v26 = vpop.f32.mrb[38].mxu1  ;;  %v12318_v10 = vld [vmem:[#allocation36_spill] sm:$0xff] }
 0x4c1   : > { %v4004_v48 = vpop.f32.mrb[39].mxu1  ;;  %v12319_v26 = vld [vmem:[#allocation37_spill] sm:$0xff] }
 0x4c2   : > { %v8441_v48 = vld [vmem:[%s11446_s5 + $0x1f0] sm:$0xff]  }
 0x4c3   : > { %7587 = vmatmul.mubr.bf16.gmra.mrb[60].mxu1 %v12285_v38  ;;  %v12321_v38 = vld [vmem:[#allocation90_spill] sm:$0xff] }
 0x4c4   : > { %7606 = vmatprep.mubr.bf16.mxu1 %v12286_v25  ;;  %v8443_v25 = vld [vmem:[%s11446_s5 + $0x200] sm:$0xff]  }
 0x4c6   : > { %v7452_v53 = vpop.f32.mrb[40].mxu1 }
 0x4c7   : > { %v4202_v37 = vpop.f32.mrb[41].mxu1  ;;  %v12322_v53 = vld [vmem:[#allocation17_spill] sm:$0xff] }
 0x4c8   : > { %v7453_v17 = vpop.f32.mrb[42].mxu1  ;;  %v12323_v37 = vld [vmem:[#allocation18_spill] sm:$0xff] }
 0x4c9   : > { %v4204_v32 = vpop.f32.mrb[43].mxu1  ;;  %v12324_v17 = vld [vmem:[#allocation105_spill] sm:$0xff] }
 0x4ca   : > { %v12325_v32 = vld [vmem:[#allocation24_spill] sm:$0xff] }
 0x4cb   : > { %7607 = vmatmul.mubr.bf16.vlgmr.msra.gmra.mrb[64].mxu1 %v12287_v6  ;;  %v12327_v6 = vld [vmem:[#allocation26_spill] sm:$0xff] }
 0x4cc   : > { %7610 = vmatprep.mubr.bf16.mxu1 %v12288_v4  ;;  %7643 = vmatpush3.bf16.msra.mxu1 %v8427_v41  ;;  %v12303_v41 = vpack.c.bf16 %v12184_v0, %v12183_v23  ;;  %v12312_v23 = vpack.c.bf16 %v12310_v58, %v12311_v1  ;;  %v12313_v0 = vld [vmem:[#allocation133_spill] sm:$0xff]  ;;  %v12328_v4 = vld [vmem:[#allocation15_spill] sm:$0xff] }
 0x4cd   : > { %7644 = vmatprep.subr.bf16.mxu1 %v8428_v24  ;;  %v12346_v58 = vld [vmem:[#allocation79_spill] sm:$0xff]  ;;  %v12347_v1 = vld [vmem:[#allocation77_spill] sm:$0xff] }
 0x4d0   : > { %7645 = vmatpush3.bf16.msra.mxu1 %v8428_v24  ;;  %v12326_v24 = vld [vmem:[#allocation25_spill] sm:$0xff] }
 0x4d1   : > { %7646 = vmatprep.subr.bf16.mxu1 %v8429_v55 }
 0x4d3   : > { %7611 = vmatmul.mubr.bf16.gmra.mrb[0].mxu1 %v12289_v22 }
 0x4d4   : > { %7614 = vmatprep.mubr.bf16.mxu1 %v12290_v3  ;;  %7647 = vmatpush3.bf16.msra.mxu1 %v8429_v55  ;;  %v12329_v55 = vld [vmem:[#allocation14_spill] sm:$0xff] }
 0x4d5   : > { %7648 = vmatprep.subr.bf16.mxu1 %v8430_v59 }
 0x4d8   : > { %7649 = vmatpush3.bf16.msra.mxu1 %v8430_v59 }
 0x4d9   : > { %7650 = vmatprep.subr.bf16.mxu1 %v8431_v33 }
 0x4db   : > { %7615 = vmatmul.mubr.bf16.gmra.mrb[4].mxu1 %v12291_v31  ;;  %v12331_v31 = vld [vmem:[#allocation92_spill] sm:$0xff] }
 0x4dc   : > { %7618 = vmatprep.mubr.bf16.mxu1 %v12292_v5  ;;  %7651 = vmatpush3.bf16.msra.mxu1 %v8431_v33 }
 0x4dd   : > { %7652 = vmatprep.subr.bf16.mxu1 %v8432_v15 }
 0x4e0   : > { %7653 = vmatpush3.bf16.msra.mxu1 %v8432_v15  ;;  %v12330_v15 = vld [vmem:[#allocation120_spill] sm:$0xff] }
 0x4e1   : > { %7654 = vmatprep.subr.bf16.mxu1 %v8433_v42 }
 0x4e3   : > { %7619 = vmatmul.mubr.bf16.gmra.mrb[8].mxu1 %v12293_v52 }
 0x4e4   : > { %7622 = vmatprep.mubr.bf16.mxu1 %v12294_v9  ;;  %7655 = vmatpush3.bf16.msra.mxu1 %v8433_v42  ;;  %v8444_v9 = vld [vmem:[%s11446_s5 + $0x208] sm:$0xff]  }
 0x4e5   : > { %7656 = vmatprep.subr.bf16.mxu1 %v8434_v30 }
 0x4e8   : > { %7657 = vmatpush3.bf16.msra.mxu1 %v8434_v30 }
 0x4e9   : > { %7694 = vmatprep.subr.bf16.mxu1 %v8435_v44 }
 0x4eb   : > { %7623 = vmatmul.mubr.bf16.gmra.mrb[12].mxu1 %v12296_v45  ;;  %v8445_v45 = vld [vmem:[%s11446_s5 + $0x210] sm:$0xff]  }
 0x4ec   : > { %7626 = vmatprep.mubr.bf16.mxu1 %v12299_v36  ;;  %v12335_v36 = vld [vmem:[#allocation9_spill] sm:$0xff] }
 0x4f3   : > { %7627 = vmatmul.mubr.bf16.gmra.mrb[16].mxu1 %v12300_v12  ;;  %v8447_v12 = vld [vmem:[%s11446_s5 + $0x220] sm:$0xff]  }
 0x4f4   : > { %7630 = vmatprep.mubr.bf16.mxu1 %v12302_v50  ;;  %v12336_v50 = vld [vmem:[#allocation10_spill] sm:$0xff] }
 0x4fb   : > { %7631 = vmatmul.mubr.bf16.gmra.mrb[20].mxu1 %v12303_v41  ;;  %v12337_v41 = vld [vmem:[#allocation117_spill] sm:$0xff] }
 0x4fc   : > { %7634 = vmatprep.mubr.bf16.mxu1 %v12305_v39  ;;  %v8450_v39 = vld [vmem:[%s11446_s5 + $0x238] sm:$0xff]  }
 0x503   : > { %7635 = vmatmul.mubr.bf16.gmra.mrb[24].mxu1 %v12306_v16  ;;  %v12338_v16 = vld [vmem:[#allocation60_spill] sm:$0xff] }
 0x504   : > { %7638 = vmatprep.mubr.bf16.mxu1 %v12309_v47  ;;  %v12341_v47 = vld [vmem:[#allocation127_spill] sm:$0xff] }
 0x506   : > { %v7484_v2 = vpop.f32.mrb[44].mxu1 }
 0x507   : > { %v4322_v11 = vpop.f32.mrb[45].mxu1  ;;  %v12342_v2 = vld [vmem:[#allocation128_spill] sm:$0xff] }
 0x508   : > { %v7485_v51 = vpop.f32.mrb[46].mxu1  ;;  %v12343_v11 = vld [vmem:[#allocation141_spill] sm:$0xff] }
 0x509   : > { %v4324_v7 = vpop.f32.mrb[47].mxu1  ;;  %v12344_v51 = vld [vmem:[#allocation144_spill] sm:$0xff] }
 0x50a   : > { %v12345_v7 = vld [vmem:[#allocation76_spill] sm:$0xff] }
 0x50b   : > { %7639 = vmatmul.mubr.bf16.gmra.mrb[68].mxu1 %v12312_v23 }
 0x50c   : > { %7658 = vmatprep.mubr.bf16.mxu1 %v12313_v0 }
 0x50e   : > { %v7504_v34 = vpop.f32.mrb[48].mxu1 }
 0x50f   : > { %v4474_v56 = vpop.f32.mrb[49].mxu1 }
 0x510   : > { %v7505_v49 = vpop.f32.mrb[50].mxu1 }
 0x511   : > { %v4476_v60 = vpop.f32.mrb[51].mxu1  ;;  %v12348_v49 = vld [vmem:[#allocation86_spill] sm:$0xff] }
 0x512   : > { %v12349_v60 = vld [vmem:[#allocation49_spill] sm:$0xff] }
 0x513   : > { %7659 = vmatmul.mubr.bf16.vlgmr.msra.gmra.mrb[72].mxu1 %v12314_v57 }
 0x514   : > { %7662 = vmatprep.mubr.bf16.mxu1 %v12315_v62  ;;  %7695 = vmatpush3.bf16.msra.mxu1 %v8435_v44  ;;  %v12332_v44 = vld [vmem:[#allocation91_spill] sm:$0xff] }
 0x515   : > { %7696 = vmatprep.subr.bf16.mxu1 %v8436_v35 }
 0x518   : > { %7697 = vmatpush3.bf16.msra.mxu1 %v8436_v35 }
 0x519   : > { %7698 = vmatprep.subr.bf16.mxu1 %v8437_v63 }
 0x51b   : > { %7663 = vmatmul.mubr.bf16.gmra.mrb[0].mxu1 %v12316_v28  ;;  %v12351_v28 = vld [vmem:[#allocation52_spill] sm:$0xff] }
 0x51c   : > { %7666 = vmatprep.mubr.bf16.mxu1 %v12317_v29  ;;  %7699 = vmatpush3.bf16.msra.mxu1 %v8437_v63  ;;  %v12352_v29 = vld [vmem:[#allocation118_spill] sm:$0xff] }
 0x51d   : > { %7700 = vmatprep.subr.bf16.mxu1 %v8438_v21 }
 0x520   : > { %7701 = vmatpush3.bf16.msra.mxu1 %v8438_v21  ;;  %v12350_v21 = vld [vmem:[#allocation50_spill] sm:$0xff] }
 0x521   : > { %7702 = vmatprep.subr.bf16.mxu1 %v8439_v43 }
 0x523   : > { %7667 = vmatmul.mubr.bf16.gmra.mrb[4].mxu1 %v12318_v10  ;;  %v12355_v10 = vld [vmem:[#allocation125_spill] sm:$0xff] }
 0x524   : > { %7670 = vmatprep.mubr.bf16.mxu1 %v12319_v26  ;;  %7703 = vmatpush3.bf16.msra.mxu1 %v8439_v43  ;;  %v12353_v43 = vld [vmem:[#allocation119_spill] sm:$0xff]  ;;  %v12356_v26 = vld [vmem:[#allocation130_spill] sm:$0xff] }
 0x525   : > { %7704 = vmatprep.subr.bf16.mxu1 %v8440_v61 }
 0x528   : > { %7705 = vmatpush3.bf16.msra.mxu1 %v8440_v61  ;;  %v12354_v61 = vld [vmem:[#allocation124_spill] sm:$0xff] }
 0x529   : > { %7706 = vmatprep.subr.bf16.mxu1 %v8441_v48 }
 0x52b   : > { %7671 = vmatmul.mubr.bf16.gmra.mrb[8].mxu1 %v12320_v19  ;;  %v12359_v19 = vld [vmem:[#allocation46_spill] sm:$0xff] }
 0x52c   : > { %7674 = vmatprep.mubr.bf16.mxu1 %v12321_v38  ;;  %7707 = vmatpush3.bf16.msra.mxu1 %v8441_v48  ;;  %v12357_v48 = vld [vmem:[#allocation42_spill] sm:$0xff]  ;;  %v12360_v38 = vld [vmem:[#allocation47_spill] sm:$0xff] }
 0x52d   : > { %7708 = vmatprep.subr.bf16.mxu1 %v8442_v13 }
 0x530   : > { %7709 = vmatpush3.bf16.msra.mxu1 %v8442_v13  ;;  %v12358_v13 = vld [vmem:[#allocation45_spill] sm:$0xff] }
 0x531   : > { %7746 = vmatprep.subr.bf16.mxu1 %v8443_v25 }
 0x533   : > { %7675 = vmatmul.mubr.bf16.gmra.mrb[12].mxu1 %v12322_v53  ;;  %v12362_v53 = vld [vmem:[#allocation67_spill] sm:$0xff] }
 0x534   : > { %7678 = vmatprep.mubr.bf16.mxu1 %v12323_v37  ;;  %v12363_v37 = vld [vmem:[#allocation29_spill] sm:$0xff] }
 0x53b   : > { %7679 = vmatmul.mubr.bf16.gmra.mrb[16].mxu1 %v12324_v17  ;;  %v12364_v17 = vld [vmem:[#allocation68_spill] sm:$0xff] }
 0x53c   : > { %7682 = vmatprep.mubr.bf16.mxu1 %v12325_v32 }
 0x543   : > { %7683 = vmatmul.mubr.bf16.gmra.mrb[20].mxu1 %v12326_v24 }
 0x544   : > { %7686 = vmatprep.mubr.bf16.mxu1 %v12327_v6 }
 0x54b   : > { %7687 = vmatmul.mubr.bf16.gmra.mrb[24].mxu1 %v12328_v4 }
 0x54c   : > { %7690 = vmatprep.mubr.bf16.mxu1 %v12329_v55  ;;  %v12365_v55 = vld [vmem:[#allocation71_spill] sm:$0xff] }
 0x54e   : > { %v7536_v59 = vpop.f32.mrb[52].mxu1 }
 0x54f   : > { %v4594_v22 = vpop.f32.mrb[53].mxu1 }
 0x550   : > { %v7537_v3 = vpop.f32.mrb[54].mxu1 }
 0x551   : > { %v4596_v33 = vpop.f32.mrb[55].mxu1 }
 0x553   : > { %7691 = vmatmul.mubr.bf16.gmra.mrb[76].mxu1 %v12330_v15 }
 0x554   : > { %7710 = vmatprep.mubr.bf16.mxu1 %v12331_v31 }
 0x556   : > { %v7556_v5 = vpop.f32.mrb[56].mxu1 }
 0x557   : > { %v4746_v42 = vpop.f32.mrb[57].mxu1 }
 0x558   : > { %v7557_v30 = vpop.f32.mrb[58].mxu1 }
 0x559   : > { %v4748_v52 = vpop.f32.mrb[59].mxu1 }
 0x55b   : > { %7711 = vmatmul.mubr.bf16.vlgmr.msra.gmra.mrb[80].mxu1 %v12332_v44 }
 0x55c   : > { %7714 = vmatprep.mubr.bf16.mxu1 %v12333_v20  ;;  %7747 = vmatpush3.bf16.msra.mxu1 %v8443_v25  ;;  %v12361_v25 = vld [vmem:[#allocation66_spill] sm:$0xff] }
 0x55d   : > { %7748 = vmatprep.subr.bf16.mxu1 %v8444_v9 }
 0x560   : > { %7749 = vmatpush3.bf16.msra.mxu1 %v8444_v9 }
 0x561   : > { %7750 = vmatprep.subr.bf16.mxu1 %v8445_v45 }
 0x563   : > { %7715 = vmatmul.mubr.bf16.gmra.mrb[0].mxu1 %v12334_v8 }
 0x564   : > { %7718 = vmatprep.mubr.bf16.mxu1 %v12335_v36  ;;  %7751 = vmatpush3.bf16.msra.mxu1 %v8445_v45 }
 0x565   : > { %7752 = vmatprep.subr.bf16.mxu1 %v8446_v40 }
 0x568   : > { %7753 = vmatpush3.bf16.msra.mxu1 %v8446_v40 }
 0x569   : > { %7754 = vmatprep.subr.bf16.mxu1 %v8447_v12 }
 0x56b   : > { %7719 = vmatmul.mubr.bf16.gmra.mrb[4].mxu1 %v12336_v50  ;;  %v11347_v50 = vld [vmem:[%s11447_s6] ss:$0 sm:$0xff] }
 0x56c   : > { %7722 = vmatprep.mubr.bf16.mxu1 %v12337_v41  ;;  %7755 = vmatpush3.bf16.msra.mxu1 %v8447_v12 }
 0x56d   : > { %7756 = vmatprep.subr.bf16.mxu1 %v8448_v14 }
 0x570   : > { %7757 = vmatpush3.bf16.msra.mxu1 %v8448_v14 }
 0x571   : > { %7758 = vmatprep.subr.bf16.mxu1 %v8449_v27 }
 0x573   : > { %7723 = vmatmul.mubr.bf16.gmra.mrb[8].mxu1 %v12338_v16 }
 0x574   : > { %7726 = vmatprep.mubr.bf16.mxu1 %v12339_v46  ;;  %7759 = vmatpush3.bf16.msra.mxu1 %v8449_v27  ;;  %v11352_v27 = vld [vmem:[%s11448_s7] ss:$0 sm:$0xff] }
 0x575   : > { %7760 = vmatprep.subr.bf16.mxu1 %v8450_v39 }
 0x578   : > { %7761 = vmatpush3.bf16.msra.mxu1 %v8450_v39 }
 0x57b   : > { %7727 = vmatmul.mubr.bf16.gmra.mrb[12].mxu1 %v12340_v18 }
 0x57c   : > { %7730 = vmatprep.mubr.bf16.mxu1 %v12341_v47 }
 0x583   : > { %7731 = vmatmul.mubr.bf16.gmra.mrb[16].mxu1 %v12342_v2 }
 0x584   : > { %7734 = vmatprep.mubr.bf16.mxu1 %v12343_v11 }
 0x58b   : > { %7735 = vmatmul.mubr.bf16.gmra.mrb[20].mxu1 %v12344_v51 }
 0x58c   : > { %7738 = vmatprep.mubr.bf16.mxu1 %v12345_v7 }
 0x593   : > { %7739 = vmatmul.mubr.bf16.gmra.mrb[24].mxu1 %v12346_v58 }
 0x594   : > { %7742 = vmatprep.mubr.bf16.mxu1 %v12347_v1 }
 0x596   : > { %v7588_v23 = vpop.f32.mrb[60].mxu1 }
 0x597   : > { %v4866_v0 = vpop.f32.mrb[61].mxu1 }
 0x598   : > { %v7589_v34 = vpop.f32.mrb[62].mxu1 }
 0x599   : > { %v4868_v56 = vpop.f32.mrb[63].mxu1 }
 0x59b   : > { %7743 = vmatmul.mubr.bf16.gmra.mrb[84].mxu1 %v12348_v49 }
 0x59c   : > { %7762 = vmatprep.mubr.bf16.mxu1 %v12349_v60 }
 0x59e   : > { %v7608_v35 = vpop.f32.mrb[64].mxu1 }
 0x59f   : > { %v5018_v57 = vpop.f32.mrb[65].mxu1 }
 0x5a0   : > { %v7609_v62 = vpop.f32.mrb[66].mxu1 }
 0x5a1   : > { %v5020_v63 = vpop.f32.mrb[67].mxu1 }
 0x5a3   : > { %7763 = vmatmul.mubr.bf16.vlgmr.msra.gmra.mrb[88].mxu1 %v12350_v21 }
 0x5a4   : > { %7766 = vmatprep.mubr.bf16.mxu1 %v12351_v28 }
 0x5ab   : > { %7767 = vmatmul.mubr.bf16.gmra.mrb[0].mxu1 %v12352_v29 }
 0x5ac   : > { %7770 = vmatprep.mubr.bf16.mxu1 %v12353_v43 }
 0x5b3   : > { %7771 = vmatmul.mubr.bf16.gmra.mrb[4].mxu1 %v12354_v61 }
 0x5b4   : > { %7774 = vmatprep.mubr.bf16.mxu1 %v12355_v10 }
 0x5bb   : > { %7775 = vmatmul.mubr.bf16.gmra.mrb[8].mxu1 %v12356_v26 }
 0x5bc   : > { %7778 = vmatprep.mubr.bf16.mxu1 %v12357_v48 }
 0x5c3   : > { %7779 = vmatmul.mubr.bf16.gmra.mrb[12].mxu1 %v12358_v13 }
 0x5c4   : > { %7782 = vmatprep.mubr.bf16.mxu1 %v12359_v19 }
 0x5cb   : > { %7783 = vmatmul.mubr.bf16.gmra.mrb[16].mxu1 %v12360_v38 }
 0x5cc   : > { %7786 = vmatprep.mubr.bf16.mxu1 %v12213_v54 }
 0x5d3   : > { %7787 = vmatmul.mubr.bf16.gmra.mrb[20].mxu1 %v12361_v25 }
 0x5d4   : > { %7790 = vmatprep.mubr.bf16.mxu1 %v12362_v53 }
 0x5db   : > { %7791 = vmatmul.mubr.bf16.gmra.mrb[24].mxu1 %v12363_v37 }
 0x5dc   : > { %7794 = vmatprep.mubr.bf16.mxu1 %v12364_v17 }
 0x5de   : > { %v7640_v32 = vpop.f32.mrb[68].mxu1 }
 0x5df   : > { %v5138_v24 = vpop.f32.mrb[69].mxu1 }
 0x5e0   : > { %v7641_v6 = vpop.f32.mrb[70].mxu1 }
 0x5e1   : > { %v5140_v4 = vpop.f32.mrb[71].mxu1 }
 0x5e3   : > { %7795 = vmatmul.mubr.bf16.gmra.mrb[92].mxu1 %v12365_v55 }
 0x5e6   : > { %v7660_v59 = vpop.f32.mrb[72].mxu1 }
 0x5e7   : > { %v5272_v22 = vpop.f32.mrb[73].mxu1 }
 0x5e8   : > { %v7661_v3 = vpop.f32.mrb[74].mxu1 }
 0x5e9   : > { %v5274_v33 = vpop.f32.mrb[75].mxu1 }
 0x626   : > { %v7692_v15 = vpop.f32.mrb[76].mxu1 }
 0x627   : > { %v5392_v54 = vpop.f32.mrb[77].mxu1 }
 0x628   : > { %v7693_v31 = vpop.f32.mrb[78].mxu1 }
 0x629   : > { %v5394_v5 = vpop.f32.mrb[79].mxu1 }
 0x62e   : > { %v7712_v42 = vpop.f32.mrb[80].mxu1 }
 0x62f   : > { %v5526_v30 = vpop.f32.mrb[81].mxu1 }
 0x630   : > { %v7713_v52 = vpop.f32.mrb[82].mxu1 }
 0x631   : > { %v5528_v9 = vpop.f32.mrb[83].mxu1 }
 0x66e   : > { %v7744_v44 = vpop.f32.mrb[84].mxu1 }
 0x66f   : > { %v5646_v20 = vpop.f32.mrb[85].mxu1 }
 0x670   : > { %v7745_v45 = vpop.f32.mrb[86].mxu1 }
 0x671   : > { %v5648_v40 = vpop.f32.mrb[87].mxu1 }
 0x676   : > { %v7764_v8 = vpop.f32.mrb[88].mxu1 }
 0x677   : > { %v5780_v36 = vpop.f32.mrb[89].mxu1 }
 0x678   : > { %v7765_v12 = vpop.f32.mrb[90].mxu1 }
 0x679   : > { %v5782_v14 = vpop.f32.mrb[91].mxu1 }
 0x67e   : > { %v7768_v41 = vpop.f32.mrb[0].mxu1 }
 0x67f   : > { %v5943_v39 = vmul.f32 %v7768_v41, %v11347_v50  ;;  %v5792_v16 = vpop.f32.mrb[1].mxu1 }
 0x680   : > { %v7769_v46 = vpop.f32.mrb[2].mxu1 }
 0x681   : > { %v5973_v18 = vadd.f32 %v11352_v27, %v5943_v39  ;;  %v5944_v47 = vmul.f32 %v7769_v46, %v11347_v50  ;;  %v5794_v2 = vpop.f32.mrb[3].mxu1 }
 0x683   : > { %vm5997_vm2 = vcmp.ge.f32.partialorder %v5973_v18, 0.0  ;;  %v6021_v11 = vmul.f32 0.1, %v5973_v18  ;;  %v5974_v51 = vadd.f32 %v11352_v27, %v5944_v47 }
 0x685   : > { %v6045_v7 = vsel %vm5997_vm2, %v5973_v18, %v6021_v11  ;;  %vm5998_vm3 = vcmp.ge.f32.partialorder %v5974_v51, 0.0  ;;  %v6022_v58 = vmul.f32 0.1, %v5974_v51 }
 0x686   : > { %6069 = vst [vmem:[%s8594_s25] sm:$0xff] %v6045_v7  ;;  %v7772_v1 = vpop.f32.mrb[4].mxu1 }
 0x687   : > { %v6046_v23 = vsel %vm5998_vm3, %v5974_v51, %v6022_v58  ;;  %v5947_v0 = vmul.f32 %v7772_v1, %v11347_v50  ;;  %v5806_v34 = vpop.f32.mrb[5].mxu1 }
 0x688   : > { %6070 = vst [vmem:[%s8594_s25 + $0x8] sm:$0xff] %v6046_v23  ;;  %v5945_v56 = vmul.f32 %v11347_v50, %v5806_v34  ;;  %v7773_v49 = vpop.f32.mrb[6].mxu1 }
 0x689   : > { %v5977_v60 = vadd.f32 %v11352_v27, %v5947_v0  ;;  %v5948_v35 = vmul.f32 %v7773_v49, %v11347_v50  ;;  %v5809_v57 = vpop.f32.mrb[7].mxu1 }
 0x68a   : > { %v5975_v62 = vadd.f32 %v11352_v27, %v5945_v56  ;;  %v5946_v63 = vmul.f32 %v11347_v50, %v5809_v57 }
 0x68b   : > { %vm6001_vm12 = vcmp.ge.f32.partialorder %v5977_v60, 0.0  ;;  %v6025_v21 = vmul.f32 0.1, %v5977_v60  ;;  %v5978_v28 = vadd.f32 %v11352_v27, %v5948_v35 }
 0x68c   : > { %vm5999_vm13 = vcmp.ge.f32.partialorder %v5975_v62, 0.0  ;;  %v6023_v29 = vmul.f32 0.1, %v5975_v62  ;;  %v5976_v43 = vadd.f32 %v11352_v27, %v5946_v63 }
 0x68d   : > { %v6049_v61 = vsel %vm6001_vm12, %v5977_v60, %v6025_v21  ;;  %vm6002_vm14 = vcmp.ge.f32.partialorder %v5978_v28, 0.0  ;;  %v6026_v10 = vmul.f32 0.1, %v5978_v28 }
 0x68e   : > { %6073 = vst [vmem:[%s8594_s25 + $0x20] sm:$0xff] %v6049_v61  ;;  %v6047_v26 = vsel %vm5999_vm13, %v5975_v62, %v6023_v29  ;;  %vm6000_vm15 = vcmp.ge.f32.partialorder %v5976_v43, 0.0  ;;  %v6024_v48 = vmul.f32 0.1, %v5976_v43  ;;  %v7776_v13 = vpop.f32.mrb[8].mxu1 }
 0x68f   : > { %6071 = vst [vmem:[%s8594_s25 + $0x10] sm:$0xff] %v6047_v26  ;;  %v6050_v19 = vsel %vm6002_vm14, %v5978_v28, %v6026_v10  ;;  %v5951_v38 = vmul.f32 %v7776_v13, %v11347_v50  ;;  %v5822_v25 = vpop.f32.mrb[9].mxu1 }
 0x690   : > { %6074 = vst [vmem:[%s8594_s25 + $0x28] sm:$0xff] %v6050_v19  ;;  %v6048_v53 = vsel %vm6000_vm15, %v5976_v43, %v6024_v48  ;;  %v5949_v37 = vmul.f32 %v11347_v50, %v5822_v25  ;;  %v7777_v17 = vpop.f32.mrb[10].mxu1 }
 0x691   : > { %6072 = vst [vmem:[%s8594_s25 + $0x18] sm:$0xff] %v6048_v53  ;;  %v5981_v32 = vadd.f32 %v11352_v27, %v5951_v38  ;;  %v5952_v24 = vmul.f32 %v7777_v17, %v11347_v50  ;;  %v5825_v6 = vpop.f32.mrb[11].mxu1 }
 0x692   : > { %v5979_v4 = vadd.f32 %v11352_v27, %v5949_v37  ;;  %v5950_v55 = vmul.f32 %v11347_v50, %v5825_v6 }
 0x693   : > { %vm6005_vm0 = vcmp.ge.f32.partialorder %v5981_v32, 0.0  ;;  %v6029_v59 = vmul.f32 0.1, %v5981_v32  ;;  %v5982_v22 = vadd.f32 %v11352_v27, %v5952_v24 }
 0x694   : > { %vm6003_vm1 = vcmp.ge.f32.partialorder %v5979_v4, 0.0  ;;  %v6027_v3 = vmul.f32 0.1, %v5979_v4  ;;  %v5980_v33 = vadd.f32 %v11352_v27, %v5950_v55 }
 0x695   : > { %v6053_v15 = vsel %vm6005_vm0, %v5981_v32, %v6029_v59  ;;  %vm6006_vm4 = vcmp.ge.f32.partialorder %v5982_v22, 0.0  ;;  %v6030_v54 = vmul.f32 0.1, %v5982_v22 }
 0x696   : > { %6077 = vst [vmem:[%s8594_s25 + $0x40] sm:$0xff] %v6053_v15  ;;  %v6051_v31 = vsel %vm6003_vm1, %v5979_v4, %v6027_v3  ;;  %vm6004_vm5 = vcmp.ge.f32.partialorder %v5980_v33, 0.0  ;;  %v6028_v5 = vmul.f32 0.1, %v5980_v33  ;;  %v7780_v42 = vpop.f32.mrb[12].mxu1 }
 0x697   : > { %6075 = vst [vmem:[%s8594_s25 + $0x30] sm:$0xff] %v6051_v31  ;;  %v6054_v30 = vsel %vm6006_vm4, %v5982_v22, %v6030_v54  ;;  %v5955_v52 = vmul.f32 %v7780_v42, %v11347_v50  ;;  %v5838_v9 = vpop.f32.mrb[13].mxu1 }
 0x698   : > { %6078 = vst [vmem:[%s8594_s25 + $0x48] sm:$0xff] %v6054_v30  ;;  %v6052_v44 = vsel %vm6004_vm5, %v5980_v33, %v6028_v5  ;;  %v5953_v20 = vmul.f32 %v11347_v50, %v5838_v9  ;;  %v7781_v45 = vpop.f32.mrb[14].mxu1 }
 0x699   : > { %6076 = vst [vmem:[%s8594_s25 + $0x38] sm:$0xff] %v6052_v44  ;;  %v5985_v40 = vadd.f32 %v11352_v27, %v5955_v52  ;;  %v5956_v8 = vmul.f32 %v7781_v45, %v11347_v50  ;;  %v5841_v36 = vpop.f32.mrb[15].mxu1 }
 0x69a   : > { %v5983_v12 = vadd.f32 %v11352_v27, %v5953_v20  ;;  %v5954_v14 = vmul.f32 %v11347_v50, %v5841_v36 }
 0x69b   : > { %vm6009_vm6 = vcmp.ge.f32.partialorder %v5985_v40, 0.0  ;;  %v6033_v41 = vmul.f32 0.1, %v5985_v40  ;;  %v5986_v39 = vadd.f32 %v11352_v27, %v5956_v8 }
 0x69c   : > { %vm6007_vm7 = vcmp.ge.f32.partialorder %v5983_v12, 0.0  ;;  %v6031_v16 = vmul.f32 0.1, %v5983_v12  ;;  %v5984_v46 = vadd.f32 %v11352_v27, %v5954_v14 }
 0x69d   : > { %v6057_v18 = vsel %vm6009_vm6, %v5985_v40, %v6033_v41  ;;  %vm6010_vm8 = vcmp.ge.f32.partialorder %v5986_v39, 0.0  ;;  %v6034_v47 = vmul.f32 0.1, %v5986_v39 }
 0x69e   : > { %6081 = vst [vmem:[%s8594_s25 + $0x60] sm:$0xff] %v6057_v18  ;;  %v6055_v2 = vsel %vm6007_vm7, %v5983_v12, %v6031_v16  ;;  %vm6008_vm9 = vcmp.ge.f32.partialorder %v5984_v46, 0.0  ;;  %v6032_v11 = vmul.f32 0.1, %v5984_v46  ;;  %v7784_v51 = vpop.f32.mrb[16].mxu1 }
 0x69f   : > { %6079 = vst [vmem:[%s8594_s25 + $0x50] sm:$0xff] %v6055_v2  ;;  %v6058_v7 = vsel %vm6010_vm8, %v5986_v39, %v6034_v47  ;;  %v5959_v58 = vmul.f32 %v7784_v51, %v11347_v50  ;;  %v5854_v1 = vpop.f32.mrb[17].mxu1 }
 0x6a0   : > { %6082 = vst [vmem:[%s8594_s25 + $0x68] sm:$0xff] %v6058_v7  ;;  %v6056_v23 = vsel %vm6008_vm9, %v5984_v46, %v6032_v11  ;;  %v5957_v0 = vmul.f32 %v11347_v50, %v5854_v1  ;;  %v7785_v34 = vpop.f32.mrb[18].mxu1 }
 0x6a1   : > { %6080 = vst [vmem:[%s8594_s25 + $0x58] sm:$0xff] %v6056_v23  ;;  %v5989_v56 = vadd.f32 %v11352_v27, %v5959_v58  ;;  %v5960_v49 = vmul.f32 %v7785_v34, %v11347_v50  ;;  %v5857_v60 = vpop.f32.mrb[19].mxu1 }
 0x6a2   : > { %v5987_v35 = vadd.f32 %v11352_v27, %v5957_v0  ;;  %v5958_v57 = vmul.f32 %v11347_v50, %v5857_v60 }
 0x6a3   : > { %vm6013_vm10 = vcmp.ge.f32.partialorder %v5989_v56, 0.0  ;;  %v6037_v62 = vmul.f32 0.1, %v5989_v56  ;;  %v5990_v63 = vadd.f32 %v11352_v27, %v5960_v49 }
 0x6a4   : > { %vm6011_vm11 = vcmp.ge.f32.partialorder %v5987_v35, 0.0  ;;  %v6035_v21 = vmul.f32 0.1, %v5987_v35  ;;  %v5988_v28 = vadd.f32 %v11352_v27, %v5958_v57 }
 0x6a5   : > { %v6061_v29 = vsel %vm6013_vm10, %v5989_v56, %v6037_v62  ;;  %vm6014_vm2 = vcmp.ge.f32.partialorder %v5990_v63, 0.0  ;;  %v6038_v43 = vmul.f32 0.1, %v5990_v63 }
 0x6a6   : > { %6085 = vst [vmem:[%s8594_s25 + $0x80] sm:$0xff] %v6061_v29  ;;  %v6059_v61 = vsel %vm6011_vm11, %v5987_v35, %v6035_v21  ;;  %vm6012_vm3 = vcmp.ge.f32.partialorder %v5988_v28, 0.0  ;;  %v6036_v10 = vmul.f32 0.1, %v5988_v28  ;;  %v7788_v26 = vpop.f32.mrb[20].mxu1 }
 0x6a7   : > { %6083 = vst [vmem:[%s8594_s25 + $0x70] sm:$0xff] %v6059_v61  ;;  %v6062_v48 = vsel %vm6014_vm2, %v5990_v63, %v6038_v43  ;;  %v5963_v13 = vmul.f32 %v7788_v26, %v11347_v50  ;;  %v5870_v19 = vpop.f32.mrb[21].mxu1 }
 0x6a8   : > { %6086 = vst [vmem:[%s8594_s25 + $0x88] sm:$0xff] %v6062_v48  ;;  %v6060_v38 = vsel %vm6012_vm3, %v5988_v28, %v6036_v10  ;;  %v5961_v25 = vmul.f32 %v11347_v50, %v5870_v19  ;;  %v7789_v53 = vpop.f32.mrb[22].mxu1 }
 0x6a9   : > { %6084 = vst [vmem:[%s8594_s25 + $0x78] sm:$0xff] %v6060_v38  ;;  %v5993_v37 = vadd.f32 %v11352_v27, %v5963_v13  ;;  %v5964_v17 = vmul.f32 %v7789_v53, %v11347_v50  ;;  %v5873_v32 = vpop.f32.mrb[23].mxu1 }
 0x6aa   : > { %v5991_v24 = vadd.f32 %v11352_v27, %v5961_v25  ;;  %v5962_v6 = vmul.f32 %v11347_v50, %v5873_v32 }
 0x6ab   : > { %vm6017_vm12 = vcmp.ge.f32.partialorder %v5993_v37, 0.0  ;;  %v6041_v4 = vmul.f32 0.1, %v5993_v37  ;;  %v5994_v55 = vadd.f32 %v11352_v27, %v5964_v17 }
 0x6ac   : > { %vm6015_vm13 = vcmp.ge.f32.partialorder %v5991_v24, 0.0  ;;  %v6039_v59 = vmul.f32 0.1, %v5991_v24  ;;  %v5992_v22 = vadd.f32 %v11352_v27, %v5962_v6 }
 0x6ad   : > { %v6065_v3 = vsel %vm6017_vm12, %v5993_v37, %v6041_v4  ;;  %vm6018_vm14 = vcmp.ge.f32.partialorder %v5994_v55, 0.0  ;;  %v6042_v33 = vmul.f32 0.1, %v5994_v55 }
 0x6ae   : > { %6089 = vst [vmem:[%s8594_s25 + $0xa0] sm:$0xff] %v6065_v3  ;;  %v6063_v15 = vsel %vm6015_vm13, %v5991_v24, %v6039_v59  ;;  %vm6016_vm15 = vcmp.ge.f32.partialorder %v5992_v22, 0.0  ;;  %v6040_v54 = vmul.f32 0.1, %v5992_v22  ;;  %v7792_v31 = vpop.f32.mrb[24].mxu1 }
 0x6af   : > { %6087 = vst [vmem:[%s8594_s25 + $0x90] sm:$0xff] %v6063_v15  ;;  %v6066_v5 = vsel %vm6018_vm14, %v5994_v55, %v6042_v33  ;;  %v5886_v42 = vpop.f32.mrb[25].mxu1 }
 0x6b0   : > { %6090 = vst [vmem:[%s8594_s25 + $0xa8] sm:$0xff] %v6066_v5  ;;  %v6064_v30 = vsel %vm6016_vm15, %v5992_v22, %v6040_v54  ;;  %v5965_v52 = vmul.f32 %v11347_v50, %v5886_v42  ;;  %v7793_v9 = vpop.f32.mrb[26].mxu1 }
 0x6b1   : > { %6088 = vst [vmem:[%s8594_s25 + $0x98] sm:$0xff] %v6064_v30  ;;  %v5889_v44 = vpop.f32.mrb[27].mxu1 }
 0x6b2   : > { %v5995_v20 = vadd.f32 %v11352_v27, %v5965_v52  ;;  %v5966_v45 = vmul.f32 %v11347_v50, %v5889_v44 }
 0x6b4   : > { %vm6019_vm0 = vcmp.ge.f32.partialorder %v5995_v20, 0.0  ;;  %v6043_v40 = vmul.f32 0.1, %v5995_v20  ;;  %v5996_v8 = vadd.f32 %v11352_v27, %v5966_v45 }
 0x6b6   : > { %v6067_v36 = vsel %vm6019_vm0, %v5995_v20, %v6043_v40  ;;  %vm6020_vm1 = vcmp.ge.f32.partialorder %v5996_v8, 0.0  ;;  %v6044_v12 = vmul.f32 0.1, %v5996_v8  ;;  %v7796_v14 = vpop.f32.mrb[92].mxu1 }
 0x6b7   : > { %6091 = vst [vmem:[%s8594_s25 + $0xb0] sm:$0xff] %v6067_v36  ;;  %v5900_v41 = vpop.f32.mrb[93].mxu1 }
 0x6b8   : > { %v6068_v39 = vsel %vm6020_vm1, %v5996_v8, %v6044_v12  ;;  %v7797_v16 = vpop.f32.mrb[94].mxu1 }
 0x6b9   : > { %6092 = vst [vmem:[%s8594_s25 + $0xb8] sm:$0xff] %v6068_v39  ;;  %v5902_v46 = vpop.f32.mrb[95].mxu1 }
 0x6ba PF: > { %s18_s9 = sadd.s32 1, %s8493_s9   ;;  %s12366_s27 = smov %s8485_s29 }
 0x6bb   : > { %p15_p7 = scmp.ge.s32.totalorder %s18_s9, 6   ;;  %s12367_s28 = smov %s8489_s30 }
 0x6bc   : > { %s12368_s29 = smov %s12371_s10  ;;  %s12369_s30 = smov %s12375_s11 }
 0x6bd   :  { %17 = sbr.rel (!%p15_p7) target bundleno = 3 (0x3), region = 175 }
 0x6c4   :  { %6123 = vsyncmov [#allocation4] }
 0x6c7   :  { %s6124_s25 = vpop.sfrf %6123 }
 0x6c8   :  { %p6581_p8 = scmp.ne.s32.totalorder %s6124_s25, 0 }
 0x6ca   :  { %6128 = shalt.err (%p6581_p8)  }
 0x6cb   :  { %6130 = vsyncmov [#allocation4 + $0x1] }
 0x6ce   :  { %s6131_s22 = vpop.sfrf %6130 }
 0x6cf   :  { %p6582_p9 = scmp.ne.s32.totalorder %s6131_s22, 0 }
 0x6d1   :  { %6135 = shalt.err (%p6582_p9)  }

</bundles_post_ra>
